<compile_context>
chip_gen: v6e
topology: v6e:2x2x1
jax: 0.10.0
libtpu: 0.0.40
codegen_flags: <defaults>
</compile_context>

<pallas_src>
import functools

import numpy as np

import jax
import jax.numpy as jnp
from jax.experimental import pallas as pl
from jax.experimental.pallas import tpu as pltpu


# ----------------------- constant-matrix construction ----------------------- #

def _fold_conv_kxk(w_hwio, scale, bias, H, W, stride, pad):
    """Fold a kxk conv (+BN scale) into row-select S and weight-select U matrices.

    Layout: activation A[h, w*Cin + ci], output O[ho, wo*Cout + co],
            O = sum_di S[di] @ A @ U[di]  (pre-bias, pre-ReLU).
    """
    w = np.asarray(w_hwio, np.float32)          # (k, k, Cin, Cout)
    sc = np.asarray(scale, np.float32)
    k, _, cin, cout = w.shape
    Ho = (H + 2 * pad - k) // stride + 1
    Wo = (W + 2 * pad - k) // stride + 1
    ws = w * sc[None, None, None, :]

    S = np.zeros((k, Ho, H), np.float32)
    U = np.zeros((k, W * cin, Wo * cout), np.float32)
    for di in range(k):
        for ho in range(Ho):
            h = stride * ho + di - pad
            if 0 <= h < H:
                S[di, ho, h] = 1.0
        for wo in range(Wo):
            for dj in range(k):
                wcol = stride * wo + dj - pad
                if 0 <= wcol < W:
                    U[di, wcol * cin:(wcol + 1) * cin,
                          wo * cout:(wo + 1) * cout] = ws[di, dj]
    b = np.tile(np.asarray(bias, np.float32), Wo).reshape(1, Wo * cout)
    return jnp.asarray(S), jnp.asarray(U), jnp.asarray(b), Ho, Wo


def _fold_conv_1x1(w_hwio, scale, bias, W):
    """1x1/s1/p0 conv (+BN scale): block-diagonal weight matrix, O = A @ U."""
    w = np.asarray(w_hwio, np.float32)[0, 0]               # (Cin, Cout)
    ws = w * np.asarray(scale, np.float32)[None, :]
    U = np.kron(np.eye(W, dtype=np.float32), ws)            # (W*Cin, W*Cout)
    cout = w.shape[1]
    b = np.tile(np.asarray(bias, np.float32), W).reshape(1, W * cout)
    return jnp.asarray(U), jnp.asarray(b)


def _upsample_mats(h_in, w_in, H, W, C):
    """Nearest upsample (PyTorch floor semantics): Up = R @ D @ E."""
    R = np.zeros((H, h_in), np.float32)
    for h in range(H):
        R[h, (h * h_in) // H] = 1.0
    E = np.zeros((w_in * C, W * C), np.float32)
    eye = np.eye(C, dtype=np.float32)
    for w in range(W):
        src = (w * w_in) // W
        E[src * C:(src + 1) * C, w * C:(w + 1) * C] = eye
    return jnp.asarray(R), jnp.asarray(E)


# ------------------------------ fused kernel -------------------------------- #

def _make_tum_kernel(n_layer, n_in, is_smooth):
    def kernel(*refs):
        in_refs, out_refs = refs[:n_in], refs[n_in:]
        it = iter(in_refs)

        def mm(a, b):
            return jnp.dot(a, b, preferred_element_type=jnp.float32)

        def conv_kxk(a, s_ref, u_ref, b_ref):
            acc = None
            for di in range(s_ref.shape[0]):                 # static (k taps)
                t = mm(mm(s_ref[di], a), u_ref[di])
                acc = t if acc is None else acc + t
            return jnp.maximum(acc + b_ref[...], 0.0)

        def conv_1x1(a, u_ref, b_ref):
            return jnp.maximum(mm(a, u_ref[...]) + b_ref[...], 0.0)

        x = next(it)[0]                                      # (H, W*Cin)
        conved = [x]
        for _ in range(n_layer):
            s_ref, u_ref, b_ref = next(it), next(it), next(it)
            conved.append(conv_kxk(conved[-1], s_ref, u_ref, b_ref))

        u_ref, b_ref = next(it), next(it)                    # toplayer (1x1)
        deconved = [conv_1x1(conved[-1], u_ref, b_ref)]

        for i in range(n_layer):                             # lateral + upsample
            s_ref, u_ref, b_ref = next(it), next(it), next(it)
            r_ref, e_ref = next(it), next(it)
            lat = conv_kxk(conved[n_layer - 1 - i], s_ref, u_ref, b_ref)
            up = mm(mm(r_ref[...], deconved[i]), e_ref[...])
            deconved.append(lat + up)

        out_refs[0][0] = deconved[0]
        for i in range(n_layer):
            if is_smooth:
                u_ref, b_ref = next(it), next(it)
                out_refs[i + 1][0] = conv_1x1(deconved[i + 1], u_ref, b_ref)
            else:
                out_refs[i + 1][0] = deconved[i + 1]
    return kernel


# ----------------------------- model construction --------------------------- #

def build_tum(key, N, H, W, first_level=True, input_planes=4, is_smooth=True,
              side_channel=8, scales=4):
    planes = 2 * input_planes
    in1 = input_planes + side_channel if not first_level else input_planes
    n_layer = scales - 1
    keys = iter(jax.random.split(key, 16 * scales))

    def new_conv(cin, cout, k):
        kw, kg, kb = jax.random.split(next(keys), 3)
        w_oihw = 0.05 * jax.random.normal(kw, (cout, cin, k, k), jnp.float32)
        gamma = 1.0 + 0.1 * jax.random.normal(kg, (cout,), jnp.float32)
        beta = 0.1 * jax.random.normal(kb, (cout,), jnp.float32)
        run_mean = jnp.zeros((cout,), jnp.float32)
        run_var = jnp.ones((cout,), jnp.float32)
        scale = gamma / jnp.sqrt(run_var + 1e-5)
        bias = beta - run_mean * scale
        w_hwio = jnp.transpose(w_oihw, (2, 3, 1, 0))          # (kh, kw, Cin, Cout)
        return dict(w=w_hwio, scale=scale, bias=bias, k=k)

    layer_defs = [(new_conv(in1, planes, 3), 2, 1)]
    for i in range(scales - 2):
        if i != scales - 3:
            layer_defs.append((new_conv(planes, planes, 3), 2, 1))
        else:
            layer_defs.append((new_conv(planes, planes, 3), 1, 0))
    top_def = (new_conv(planes, planes, 1), 1, 0)
    lat_defs = [(new_conv(planes, planes, 3), 1, 1) for _ in range(scales - 2)]
    lat_defs.append((new_conv(in1, planes, 3), 1, 1))
    smooth_defs = [(new_conv(planes, planes, 1), 1, 0) for _ in range(scales - 1)]

    # Spatial chain of conved features.
    hs, ws_, cs = [H], [W], [in1]
    for conv, s, p in layer_defs:
        k = conv['k']
        hs.append((hs[-1] + 2 * p - k) // s + 1)
        ws_.append((ws_[-1] + 2 * p - k) // s + 1)
        cs.append(planes)

    const_inputs = []
    ref = dict(layers=[], top=None, lat=[], smooth=[])

    for idx, (conv, s, p) in enumerate(layer_defs):
        S, U, b, _, _ = _fold_conv_kxk(conv['w'], conv['scale'], conv['bias'],
                                       hs[idx], ws_[idx], s, p)
        const_inputs += [S, U, b]
        ref['layers'].append((conv, s, p))

    tconv, ts, tp = top_def
    U, b = _fold_conv_1x1(tconv['w'], tconv['scale'], tconv['bias'], ws_[-1])
    const_inputs += [U, b]
    ref['top'] = (tconv, ts, tp)

    dec_h, dec_w = hs[-1], ws_[-1]
    lat_hw = []
    for i, (conv, s, p) in enumerate(lat_defs):
        j = n_layer - 1 - i
        S, U, b, Ho, Wo = _fold_conv_kxk(conv['w'], conv['scale'], conv['bias'],
                                         hs[j], ws_[j], s, p)
        R, E = _upsample_mats(dec_h, dec_w, Ho, Wo, planes)
        const_inputs += [S, U, b, R, E]
        ref['lat'].append((conv, s, p))
        lat_hw.append((Ho, Wo))
        dec_h, dec_w = Ho, Wo

    if is_smooth:
        for i, (conv, s, p) in enumerate(smooth_defs):
            _, Wo = lat_hw[i]
            U, b = _fold_conv_1x1(conv['w'], conv['scale'], conv['bias'], Wo)
            const_inputs += [U, b]
            ref['smooth'].append((conv, s, p))

    out_hw = [(hs[-1], ws_[-1])] + lat_hw
    out_shapes = [jax.ShapeDtypeStruct((N, ho, wo * planes), jnp.float32)
                  for ho, wo in out_hw]
    out_specs = [pl.BlockSpec((1, ho, wo * planes), lambda i: (i, 0, 0))
                 for ho, wo in out_hw]

    in_specs = [pl.BlockSpec((1, H, W * in1), lambda i: (i, 0, 0))]
    for arr in const_inputs:
        in_specs.append(pl.BlockSpec(arr.shape, lambda i, nd=arr.ndim: (0,) * nd))

    n_in = 1 + len(const_inputs)
    kernel = _make_tum_kernel(n_layer, n_in, is_smooth)

    return dict(kernel=kernel, const_inputs=const_inputs, in_specs=in_specs,
                out_shapes=out_shapes, out_specs=out_specs, out_hw=out_hw,
                N=N, planes=planes, first_level=first_level, is_smooth=is_smooth,
                ref=ref)


# ------------------------------- forward passes ------------------------------ #

def tum_forward(model, x, y=None):
    """x: NHWC. Returns list of NHWC pyramid features (coarse -> fine)."""
    if not model['first_level']:
        x = jnp.concatenate([x, y], axis=-1)
    N, H, W, C = x.shape
    x2d = x.reshape(N, H, W * C)
    outs = pl.pallas_call(
        model['kernel'],
        out_shape=model['out_shapes'],
        grid=(model['N'],),
        in_specs=model['in_specs'],
        out_specs=model['out_specs'],
        compiler_params=pltpu.CompilerParams(dimension_semantics=("parallel",)),
    )(x2d, *model['const_inputs'])
    planes = model['planes']
    return [o.reshape(o.shape[0], ho, wo, planes)
            for o, (ho, wo) in zip(outs, model['out_hw'])]


# Pure-JAX reference (for validation only).
def _basic_conv_ref(x, conv, stride, pad):
    out = jax.lax.conv_general_dilated(
        x, conv['w'], (stride, stride), [(pad, pad), (pad, pad)],
        dimension_numbers=('NHWC', 'HWIO', 'NHWC'),
        precision=jax.lax.Precision.HIGHEST)
    out = out * conv['scale'][None, None, None, :] + conv['bias'][None, None, None, :]
    return jnp.maximum(out, 0.0)


def _upsample_ref(x, Hn, Wn):
    _, h, w, _ = x.shape
    ih = (jnp.arange(Hn) * h) // Hn
    iw = (jnp.arange(Wn) * w) // Wn
    return x[:, ih][:, :, iw]


def tum_reference(model, x, y=None):
    if not model['first_level']:
        x = jnp.concatenate([x, y], axis=-1)
    ref = model['ref']
    conved = [x]
    for conv, s, p in ref['layers']:
        conved.append(_basic_conv_ref(conved[-1], conv, s, p))
    tconv, ts, tp = ref['top']
    deconved = [_basic_conv_ref(conved[-1], tconv, ts, tp)]
    n_layer = len(ref['layers'])
    for i, (conv, s, p) in enumerate(ref['lat']):
        target = conved[n_layer - 1 - i]
        lat = _basic_conv_ref(target, conv, s, p)
        up = _upsample_ref(deconved[i], target.shape[1], target.shape[2])
        deconved.append(lat + up)
    if not ref['smooth']:
        return deconved
    out = [deconved[0]]
    for i, (conv, s, p) in enumerate(ref['smooth']):
        out.append(_basic_conv_ref(deconved[i + 1], conv, s, p))
    return out


# ---------------------------------- main ------------------------------------ #

if __name__ == "__main__":
    key = jax.random.PRNGKey(0)
    k_param, k_x = jax.random.split(key)

    N, H, W = 2, 16, 16
    input_planes, side_channel, scales = 4, 8, 4

    model = build_tum(k_param, N, H, W, first_level=True,
                      input_planes=input_planes, is_smooth=True,
                      side_channel=side_channel, scales=scales)

    # NHWC input (PyTorch equivalent: NCHW (2, 4, 16, 16)).
    x = jax.random.normal(k_x, (N, H, W, input_planes), jnp.float32)

    fwd = jax.jit(functools.partial(tum_forward, model))
    outs = fwd(x)
    outs = [jax.block_until_ready(o) for o in outs]

    expected = [(2, 2, 2, 8), (2, 4, 4, 8), (2, 8, 8, 8), (2, 16, 16, 8)]
    assert [tuple(o.shape) for o in outs] == expected, [o.shape for o in outs]
    assert all(o.dtype == jnp.float32 for o in outs)

    # Numerical check against a pure-JAX reference.
    refs = jax.jit(functools.partial(tum_reference, model))(x)
    for o, r in zip(outs, refs):
        num = float(jnp.linalg.norm(o - r))
        den = float(jnp.linalg.norm(r)) + 1e-6
        assert num / den < 3e-2, ("mismatch", num / den)

    print("KERNEL_OK")
</pallas_src>

<mosaic_0001>
module attributes {stable_mosaic.version = 11 : i64} {
  func.func @kernel(%arg0: i32, %arg1: memref<1x16x64xf32, #tpu.memory_space<vmem>>, %arg2: memref<3x8x16xf32, #tpu.memory_space<vmem>>, %arg3: memref<3x64x64xf32, #tpu.memory_space<vmem>>, %arg4: memref<1x64xf32, #tpu.memory_space<vmem>>, %arg5: memref<3x4x8xf32, #tpu.memory_space<vmem>>, %arg6: memref<3x64x32xf32, #tpu.memory_space<vmem>>, %arg7: memref<1x32xf32, #tpu.memory_space<vmem>>, %arg8: memref<3x2x4xf32, #tpu.memory_space<vmem>>, %arg9: memref<3x32x16xf32, #tpu.memory_space<vmem>>, %arg10: memref<1x16xf32, #tpu.memory_space<vmem>>, %arg11: memref<16x16xf32, #tpu.memory_space<vmem>>, %arg12: memref<1x16xf32, #tpu.memory_space<vmem>>, %arg13: memref<3x4x4xf32, #tpu.memory_space<vmem>>, %arg14: memref<3x32x32xf32, #tpu.memory_space<vmem>>, %arg15: memref<1x32xf32, #tpu.memory_space<vmem>>, %arg16: memref<4x2xf32, #tpu.memory_space<vmem>>, %arg17: memref<16x32xf32, #tpu.memory_space<vmem>>, %arg18: memref<3x8x8xf32, #tpu.memory_space<vmem>>, %arg19: memref<3x64x64xf32, #tpu.memory_space<vmem>>, %arg20: memref<1x64xf32, #tpu.memory_space<vmem>>, %arg21: memref<8x4xf32, #tpu.memory_space<vmem>>, %arg22: memref<32x64xf32, #tpu.memory_space<vmem>>, %arg23: memref<3x16x16xf32, #tpu.memory_space<vmem>>, %arg24: memref<3x64x128xf32, #tpu.memory_space<vmem>>, %arg25: memref<1x128xf32, #tpu.memory_space<vmem>>, %arg26: memref<16x8xf32, #tpu.memory_space<vmem>>, %arg27: memref<64x128xf32, #tpu.memory_space<vmem>>, %arg28: memref<32x32xf32, #tpu.memory_space<vmem>>, %arg29: memref<1x32xf32, #tpu.memory_space<vmem>>, %arg30: memref<64x64xf32, #tpu.memory_space<vmem>>, %arg31: memref<1x64xf32, #tpu.memory_space<vmem>>, %arg32: memref<128x128xf32, #tpu.memory_space<vmem>>, %arg33: memref<1x128xf32, #tpu.memory_space<vmem>>, %arg34: memref<1x2x16xf32, #tpu.memory_space<vmem>>, %arg35: memref<1x4x32xf32, #tpu.memory_space<vmem>>, %arg36: memref<1x8x64xf32, #tpu.memory_space<vmem>>, %arg37: memref<1x16x128xf32, #tpu.memory_space<vmem>>) attributes {dimension_semantics = [#tpu.dimension_semantics<parallel>], iteration_bounds = array<i64: 2>, scalar_prefetch = 0 : i64, scratch_operands = 0 : i64, tpu.core_type = #tpu.core_type<tc>, window_params = [{transform_indices = @transform_0, window_bounds = array<i64: 1, 16, 64>}, {pipeline_mode = #tpu.pipeline_mode<synchronous>, transform_indices = @transform_1, window_bounds = array<i64: 3, 8, 16>}, {pipeline_mode = #tpu.pipeline_mode<synchronous>, transform_indices = @transform_2, window_bounds = array<i64: 3, 64, 64>}, {pipeline_mode = #tpu.pipeline_mode<synchronous>, transform_indices = @transform_3, window_bounds = array<i64: 1, 64>}, {pipeline_mode = #tpu.pipeline_mode<synchronous>, transform_indices = @transform_4, window_bounds = array<i64: 3, 4, 8>}, {pipeline_mode = #tpu.pipeline_mode<synchronous>, transform_indices = @transform_5, window_bounds = array<i64: 3, 64, 32>}, {pipeline_mode = #tpu.pipeline_mode<synchronous>, transform_indices = @transform_6, window_bounds = array<i64: 1, 32>}, {pipeline_mode = #tpu.pipeline_mode<synchronous>, transform_indices = @transform_7, window_bounds = array<i64: 3, 2, 4>}, {pipeline_mode = #tpu.pipeline_mode<synchronous>, transform_indices = @transform_8, window_bounds = array<i64: 3, 32, 16>}, {pipeline_mode = #tpu.pipeline_mode<synchronous>, transform_indices = @transform_9, window_bounds = array<i64: 1, 16>}, {pipeline_mode = #tpu.pipeline_mode<synchronous>, transform_indices = @transform_10, window_bounds = array<i64: 16, 16>}, {pipeline_mode = #tpu.pipeline_mode<synchronous>, transform_indices = @transform_11, window_bounds = array<i64: 1, 16>}, {pipeline_mode = #tpu.pipeline_mode<synchronous>, transform_indices = @transform_12, window_bounds = array<i64: 3, 4, 4>}, {pipeline_mode = #tpu.pipeline_mode<synchronous>, transform_indices = @transform_13, window_bounds = array<i64: 3, 32, 32>}, {pipeline_mode = #tpu.pipeline_mode<synchronous>, transform_indices = @transform_14, window_bounds = array<i64: 1, 32>}, {pipeline_mode = #tpu.pipeline_mode<synchronous>, transform_indices = @transform_15, window_bounds = array<i64: 4, 2>}, {pipeline_mode = #tpu.pipeline_mode<synchronous>, transform_indices = @transform_16, window_bounds = array<i64: 16, 32>}, {pipeline_mode = #tpu.pipeline_mode<synchronous>, transform_indices = @transform_17, window_bounds = array<i64: 3, 8, 8>}, {pipeline_mode = #tpu.pipeline_mode<synchronous>, transform_indices = @transform_18, window_bounds = array<i64: 3, 64, 64>}, {pipeline_mode = #tpu.pipeline_mode<synchronous>, transform_indices = @transform_19, window_bounds = array<i64: 1, 64>}, {pipeline_mode = #tpu.pipeline_mode<synchronous>, transform_indices = @transform_20, window_bounds = array<i64: 8, 4>}, {pipeline_mode = #tpu.pipeline_mode<synchronous>, transform_indices = @transform_21, window_bounds = array<i64: 32, 64>}, {pipeline_mode = #tpu.pipeline_mode<synchronous>, transform_indices = @transform_22, window_bounds = array<i64: 3, 16, 16>}, {pipeline_mode = #tpu.pipeline_mode<synchronous>, transform_indices = @transform_23, window_bounds = array<i64: 3, 64, 128>}, {pipeline_mode = #tpu.pipeline_mode<synchronous>, transform_indices = @transform_24, window_bounds = array<i64: 1, 128>}, {pipeline_mode = #tpu.pipeline_mode<synchronous>, transform_indices = @transform_25, window_bounds = array<i64: 16, 8>}, {pipeline_mode = #tpu.pipeline_mode<synchronous>, transform_indices = @transform_26, window_bounds = array<i64: 64, 128>}, {pipeline_mode = #tpu.pipeline_mode<synchronous>, transform_indices = @transform_27, window_bounds = array<i64: 32, 32>}, {pipeline_mode = #tpu.pipeline_mode<synchronous>, transform_indices = @transform_28, window_bounds = array<i64: 1, 32>}, {pipeline_mode = #tpu.pipeline_mode<synchronous>, transform_indices = @transform_29, window_bounds = array<i64: 64, 64>}, {pipeline_mode = #tpu.pipeline_mode<synchronous>, transform_indices = @transform_30, window_bounds = array<i64: 1, 64>}, {pipeline_mode = #tpu.pipeline_mode<synchronous>, transform_indices = @transform_31, window_bounds = array<i64: 128, 128>}, {pipeline_mode = #tpu.pipeline_mode<synchronous>, transform_indices = @transform_32, window_bounds = array<i64: 1, 128>}, {transform_indices = @transform_33, window_bounds = array<i64: 1, 2, 16>}, {transform_indices = @transform_34, window_bounds = array<i64: 1, 4, 32>}, {transform_indices = @transform_35, window_bounds = array<i64: 1, 8, 64>}, {transform_indices = @transform_36, window_bounds = array<i64: 1, 16, 128>}]} {
    %c0 = arith.constant 0 : index
    %c0_0 = arith.constant 0 : index
    %c0_1 = arith.constant 0 : index
    %0 = vector.load %arg1[%c0, %c0_0, %c0_1] : memref<1x16x64xf32, #tpu.memory_space<vmem>>, vector<1x16x64xf32>
    %1 = vector.shape_cast %0 : vector<1x16x64xf32> to vector<16x64xf32>
    %c0_2 = arith.constant 0 : index
    %c0_3 = arith.constant 0 : index
    %c0_4 = arith.constant 0 : index
    %2 = vector.load %arg2[%c0_2, %c0_3, %c0_4] : memref<3x8x16xf32, #tpu.memory_space<vmem>>, vector<1x8x16xf32>
    %3 = vector.shape_cast %2 : vector<1x8x16xf32> to vector<8x16xf32>
    %cst = arith.constant dense<0.000000e+00> : vector<8x64xf32>
    %4 = tpu.matmul %3, %1, %cst {dimension_numbers = #tpu.dot_dimension_numbers<[1], [0], [0], [1], [0, 0, 1, 1], [], []>} : vector<8x16xf32>, vector<16x64xf32>, vector<8x64xf32> -> vector<8x64xf32>
    %c0_5 = arith.constant 0 : index
    %c0_6 = arith.constant 0 : index
    %c0_7 = arith.constant 0 : index
    %5 = vector.load %arg3[%c0_5, %c0_6, %c0_7] : memref<3x64x64xf32, #tpu.memory_space<vmem>>, vector<1x64x64xf32>
    %6 = vector.shape_cast %5 : vector<1x64x64xf32> to vector<64x64xf32>
    %cst_8 = arith.constant dense<0.000000e+00> : vector<8x64xf32>
    %7 = tpu.matmul %4, %6, %cst_8 {dimension_numbers = #tpu.dot_dimension_numbers<[1], [0], [0], [1], [0, 0, 1, 1], [], []>} : vector<8x64xf32>, vector<64x64xf32>, vector<8x64xf32> -> vector<8x64xf32>
    %c1 = arith.constant 1 : index
    %c0_9 = arith.constant 0 : index
    %c0_10 = arith.constant 0 : index
    %8 = vector.load %arg2[%c1, %c0_9, %c0_10] : memref<3x8x16xf32, #tpu.memory_space<vmem>>, vector<1x8x16xf32>
    %9 = vector.shape_cast %8 : vector<1x8x16xf32> to vector<8x16xf32>
    %cst_11 = arith.constant dense<0.000000e+00> : vector<8x64xf32>
    %10 = tpu.matmul %9, %1, %cst_11 {dimension_numbers = #tpu.dot_dimension_numbers<[1], [0], [0], [1], [0, 0, 1, 1], [], []>} : vector<8x16xf32>, vector<16x64xf32>, vector<8x64xf32> -> vector<8x64xf32>
    %c1_12 = arith.constant 1 : index
    %c0_13 = arith.constant 0 : index
    %c0_14 = arith.constant 0 : index
    %11 = vector.load %arg3[%c1_12, %c0_13, %c0_14] : memref<3x64x64xf32, #tpu.memory_space<vmem>>, vector<1x64x64xf32>
    %12 = vector.shape_cast %11 : vector<1x64x64xf32> to vector<64x64xf32>
    %cst_15 = arith.constant dense<0.000000e+00> : vector<8x64xf32>
    %13 = tpu.matmul %10, %12, %cst_15 {dimension_numbers = #tpu.dot_dimension_numbers<[1], [0], [0], [1], [0, 0, 1, 1], [], []>} : vector<8x64xf32>, vector<64x64xf32>, vector<8x64xf32> -> vector<8x64xf32>
    %14 = arith.addf %7, %13 : vector<8x64xf32>
    %c2 = arith.constant 2 : index
    %c0_16 = arith.constant 0 : index
    %c0_17 = arith.constant 0 : index
    %15 = vector.load %arg2[%c2, %c0_16, %c0_17] : memref<3x8x16xf32, #tpu.memory_space<vmem>>, vector<1x8x16xf32>
    %16 = vector.shape_cast %15 : vector<1x8x16xf32> to vector<8x16xf32>
    %cst_18 = arith.constant dense<0.000000e+00> : vector<8x64xf32>
    %17 = tpu.matmul %16, %1, %cst_18 {dimension_numbers = #tpu.dot_dimension_numbers<[1], [0], [0], [1], [0, 0, 1, 1], [], []>} : vector<8x16xf32>, vector<16x64xf32>, vector<8x64xf32> -> vector<8x64xf32>
    %c2_19 = arith.constant 2 : index
    %c0_20 = arith.constant 0 : index
    %c0_21 = arith.constant 0 : index
    %18 = vector.load %arg3[%c2_19, %c0_20, %c0_21] : memref<3x64x64xf32, #tpu.memory_space<vmem>>, vector<1x64x64xf32>
    %19 = vector.shape_cast %18 : vector<1x64x64xf32> to vector<64x64xf32>
    %cst_22 = arith.constant dense<0.000000e+00> : vector<8x64xf32>
    %20 = tpu.matmul %17, %19, %cst_22 {dimension_numbers = #tpu.dot_dimension_numbers<[1], [0], [0], [1], [0, 0, 1, 1], [], []>} : vector<8x64xf32>, vector<64x64xf32>, vector<8x64xf32> -> vector<8x64xf32>
    %21 = arith.addf %14, %20 : vector<8x64xf32>
    %c0_23 = arith.constant 0 : index
    %c0_24 = arith.constant 0 : index
    %22 = vector.load %arg4[%c0_23, %c0_24] : memref<1x64xf32, #tpu.memory_space<vmem>>, vector<1x64xf32>
    %23 = vector.broadcast %22 : vector<1x64xf32> to vector<8x64xf32>
    %24 = arith.addf %21, %23 : vector<8x64xf32>
    %cst_25 = arith.constant 0.000000e+00 : f32
    %25 = vector.broadcast %cst_25 : f32 to vector<8x64xf32>
    %26 = arith.maximumf %24, %25 : vector<8x64xf32>
    %c0_26 = arith.constant 0 : index
    %c0_27 = arith.constant 0 : index
    %c0_28 = arith.constant 0 : index
    %27 = vector.load %arg5[%c0_26, %c0_27, %c0_28] : memref<3x4x8xf32, #tpu.memory_space<vmem>>, vector<1x4x8xf32>
    %28 = vector.shape_cast %27 : vector<1x4x8xf32> to vector<4x8xf32>
    %cst_29 = arith.constant dense<0.000000e+00> : vector<4x64xf32>
    %29 = tpu.matmul %28, %26, %cst_29 {dimension_numbers = #tpu.dot_dimension_numbers<[1], [0], [0], [1], [0, 0, 1, 1], [], []>} : vector<4x8xf32>, vector<8x64xf32>, vector<4x64xf32> -> vector<4x64xf32>
    %c0_30 = arith.constant 0 : index
    %c0_31 = arith.constant 0 : index
    %c0_32 = arith.constant 0 : index
    %30 = vector.load %arg6[%c0_30, %c0_31, %c0_32] : memref<3x64x32xf32, #tpu.memory_space<vmem>>, vector<1x64x32xf32>
    %31 = vector.shape_cast %30 : vector<1x64x32xf32> to vector<64x32xf32>
    %cst_33 = arith.constant dense<0.000000e+00> : vector<4x32xf32>
    %32 = tpu.matmul %29, %31, %cst_33 {dimension_numbers = #tpu.dot_dimension_numbers<[1], [0], [0], [1], [0, 0, 1, 1], [], []>} : vector<4x64xf32>, vector<64x32xf32>, vector<4x32xf32> -> vector<4x32xf32>
    %c1_34 = arith.constant 1 : index
    %c0_35 = arith.constant 0 : index
    %c0_36 = arith.constant 0 : index
    %33 = vector.load %arg5[%c1_34, %c0_35, %c0_36] : memref<3x4x8xf32, #tpu.memory_space<vmem>>, vector<1x4x8xf32>
    %34 = vector.shape_cast %33 : vector<1x4x8xf32> to vector<4x8xf32>
    %cst_37 = arith.constant dense<0.000000e+00> : vector<4x64xf32>
    %35 = tpu.matmul %34, %26, %cst_37 {dimension_numbers = #tpu.dot_dimension_numbers<[1], [0], [0], [1], [0, 0, 1, 1], [], []>} : vector<4x8xf32>, vector<8x64xf32>, vector<4x64xf32> -> vector<4x64xf32>
    %c1_38 = arith.constant 1 : index
    %c0_39 = arith.constant 0 : index
    %c0_40 = arith.constant 0 : index
    %36 = vector.load %arg6[%c1_38, %c0_39, %c0_40] : memref<3x64x32xf32, #tpu.memory_space<vmem>>, vector<1x64x32xf32>
    %37 = vector.shape_cast %36 : vector<1x64x32xf32> to vector<64x32xf32>
    %cst_41 = arith.constant dense<0.000000e+00> : vector<4x32xf32>
    %38 = tpu.matmul %35, %37, %cst_41 {dimension_numbers = #tpu.dot_dimension_numbers<[1], [0], [0], [1], [0, 0, 1, 1], [], []>} : vector<4x64xf32>, vector<64x32xf32>, vector<4x32xf32> -> vector<4x32xf32>
    %39 = arith.addf %32, %38 : vector<4x32xf32>
    %c2_42 = arith.constant 2 : index
    %c0_43 = arith.constant 0 : index
    %c0_44 = arith.constant 0 : index
    %40 = vector.load %arg5[%c2_42, %c0_43, %c0_44] : memref<3x4x8xf32, #tpu.memory_space<vmem>>, vector<1x4x8xf32>
    %41 = vector.shape_cast %40 : vector<1x4x8xf32> to vector<4x8xf32>
    %cst_45 = arith.constant dense<0.000000e+00> : vector<4x64xf32>
    %42 = tpu.matmul %41, %26, %cst_45 {dimension_numbers = #tpu.dot_dimension_numbers<[1], [0], [0], [1], [0, 0, 1, 1], [], []>} : vector<4x8xf32>, vector<8x64xf32>, vector<4x64xf32> -> vector<4x64xf32>
    %c2_46 = arith.constant 2 : index
    %c0_47 = arith.constant 0 : index
    %c0_48 = arith.constant 0 : index
    %43 = vector.load %arg6[%c2_46, %c0_47, %c0_48] : memref<3x64x32xf32, #tpu.memory_space<vmem>>, vector<1x64x32xf32>
    %44 = vector.shape_cast %43 : vector<1x64x32xf32> to vector<64x32xf32>
    %cst_49 = arith.constant dense<0.000000e+00> : vector<4x32xf32>
    %45 = tpu.matmul %42, %44, %cst_49 {dimension_numbers = #tpu.dot_dimension_numbers<[1], [0], [0], [1], [0, 0, 1, 1], [], []>} : vector<4x64xf32>, vector<64x32xf32>, vector<4x32xf32> -> vector<4x32xf32>
    %46 = arith.addf %39, %45 : vector<4x32xf32>
    %c0_50 = arith.constant 0 : index
    %c0_51 = arith.constant 0 : index
    %47 = vector.load %arg7[%c0_50, %c0_51] : memref<1x32xf32, #tpu.memory_space<vmem>>, vector<1x32xf32>
    %48 = vector.broadcast %47 : vector<1x32xf32> to vector<4x32xf32>
    %49 = arith.addf %46, %48 : vector<4x32xf32>
    %cst_52 = arith.constant 0.000000e+00 : f32
    %50 = vector.broadcast %cst_52 : f32 to vector<4x32xf32>
    %51 = arith.maximumf %49, %50 : vector<4x32xf32>
    %c0_53 = arith.constant 0 : index
    %c0_54 = arith.constant 0 : index
    %c0_55 = arith.constant 0 : index
    %52 = vector.load %arg8[%c0_53, %c0_54, %c0_55] : memref<3x2x4xf32, #tpu.memory_space<vmem>>, vector<1x2x4xf32>
    %53 = vector.shape_cast %52 : vector<1x2x4xf32> to vector<2x4xf32>
    %cst_56 = arith.constant dense<0.000000e+00> : vector<2x32xf32>
    %54 = tpu.matmul %53, %51, %cst_56 {dimension_numbers = #tpu.dot_dimension_numbers<[1], [0], [0], [1], [0, 0, 1, 1], [], []>} : vector<2x4xf32>, vector<4x32xf32>, vector<2x32xf32> -> vector<2x32xf32>
    %c0_57 = arith.constant 0 : index
    %c0_58 = arith.constant 0 : index
    %c0_59 = arith.constant 0 : index
    %55 = vector.load %arg9[%c0_57, %c0_58, %c0_59] : memref<3x32x16xf32, #tpu.memory_space<vmem>>, vector<1x32x16xf32>
    %56 = vector.shape_cast %55 : vector<1x32x16xf32> to vector<32x16xf32>
    %cst_60 = arith.constant dense<0.000000e+00> : vector<2x16xf32>
    %57 = tpu.matmul %54, %56, %cst_60 {dimension_numbers = #tpu.dot_dimension_numbers<[1], [0], [0], [1], [0, 0, 1, 1], [], []>} : vector<2x32xf32>, vector<32x16xf32>, vector<2x16xf32> -> vector<2x16xf32>
    %c1_61 = arith.constant 1 : index
    %c0_62 = arith.constant 0 : index
    %c0_63 = arith.constant 0 : index
    %58 = vector.load %arg8[%c1_61, %c0_62, %c0_63] : memref<3x2x4xf32, #tpu.memory_space<vmem>>, vector<1x2x4xf32>
    %59 = vector.shape_cast %58 : vector<1x2x4xf32> to vector<2x4xf32>
    %cst_64 = arith.constant dense<0.000000e+00> : vector<2x32xf32>
    %60 = tpu.matmul %59, %51, %cst_64 {dimension_numbers = #tpu.dot_dimension_numbers<[1], [0], [0], [1], [0, 0, 1, 1], [], []>} : vector<2x4xf32>, vector<4x32xf32>, vector<2x32xf32> -> vector<2x32xf32>
    %c1_65 = arith.constant 1 : index
    %c0_66 = arith.constant 0 : index
    %c0_67 = arith.constant 0 : index
    %61 = vector.load %arg9[%c1_65, %c0_66, %c0_67] : memref<3x32x16xf32, #tpu.memory_space<vmem>>, vector<1x32x16xf32>
    %62 = vector.shape_cast %61 : vector<1x32x16xf32> to vector<32x16xf32>
    %cst_68 = arith.constant dense<0.000000e+00> : vector<2x16xf32>
    %63 = tpu.matmul %60, %62, %cst_68 {dimension_numbers = #tpu.dot_dimension_numbers<[1], [0], [0], [1], [0, 0, 1, 1], [], []>} : vector<2x32xf32>, vector<32x16xf32>, vector<2x16xf32> -> vector<2x16xf32>
    %64 = arith.addf %57, %63 : vector<2x16xf32>
    %c2_69 = arith.constant 2 : index
    %c0_70 = arith.constant 0 : index
    %c0_71 = arith.constant 0 : index
    %65 = vector.load %arg8[%c2_69, %c0_70, %c0_71] : memref<3x2x4xf32, #tpu.memory_space<vmem>>, vector<1x2x4xf32>
    %66 = vector.shape_cast %65 : vector<1x2x4xf32> to vector<2x4xf32>
    %cst_72 = arith.constant dense<0.000000e+00> : vector<2x32xf32>
    %67 = tpu.matmul %66, %51, %cst_72 {dimension_numbers = #tpu.dot_dimension_numbers<[1], [0], [0], [1], [0, 0, 1, 1], [], []>} : vector<2x4xf32>, vector<4x32xf32>, vector<2x32xf32> -> vector<2x32xf32>
    %c2_73 = arith.constant 2 : index
    %c0_74 = arith.constant 0 : index
    %c0_75 = arith.constant 0 : index
    %68 = vector.load %arg9[%c2_73, %c0_74, %c0_75] : memref<3x32x16xf32, #tpu.memory_space<vmem>>, vector<1x32x16xf32>
    %69 = vector.shape_cast %68 : vector<1x32x16xf32> to vector<32x16xf32>
    %cst_76 = arith.constant dense<0.000000e+00> : vector<2x16xf32>
    %70 = tpu.matmul %67, %69, %cst_76 {dimension_numbers = #tpu.dot_dimension_numbers<[1], [0], [0], [1], [0, 0, 1, 1], [], []>} : vector<2x32xf32>, vector<32x16xf32>, vector<2x16xf32> -> vector<2x16xf32>
    %71 = arith.addf %64, %70 : vector<2x16xf32>
    %c0_77 = arith.constant 0 : index
    %c0_78 = arith.constant 0 : index
    %72 = vector.load %arg10[%c0_77, %c0_78] : memref<1x16xf32, #tpu.memory_space<vmem>>, vector<1x16xf32>
    %73 = vector.broadcast %72 : vector<1x16xf32> to vector<2x16xf32>
    %74 = arith.addf %71, %73 : vector<2x16xf32>
    %cst_79 = arith.constant 0.000000e+00 : f32
    %75 = vector.broadcast %cst_79 : f32 to vector<2x16xf32>
    %76 = arith.maximumf %74, %75 : vector<2x16xf32>
    %c0_80 = arith.constant 0 : index
    %c0_81 = arith.constant 0 : index
    %77 = vector.load %arg11[%c0_80, %c0_81] : memref<16x16xf32, #tpu.memory_space<vmem>>, vector<16x16xf32>
    %cst_82 = arith.constant dense<0.000000e+00> : vector<2x16xf32>
    %78 = tpu.matmul %76, %77, %cst_82 {dimension_numbers = #tpu.dot_dimension_numbers<[1], [0], [0], [1], [0, 0, 1, 1], [], []>} : vector<2x16xf32>, vector<16x16xf32>, vector<2x16xf32> -> vector<2x16xf32>
    %c0_83 = arith.constant 0 : index
    %c0_84 = arith.constant 0 : index
    %79 = vector.load %arg12[%c0_83, %c0_84] : memref<1x16xf32, #tpu.memory_space<vmem>>, vector<1x16xf32>
    %80 = vector.broadcast %79 : vector<1x16xf32> to vector<2x16xf32>
    %81 = arith.addf %78, %80 : vector<2x16xf32>
    %cst_85 = arith.constant 0.000000e+00 : f32
    %82 = vector.broadcast %cst_85 : f32 to vector<2x16xf32>
    %83 = arith.maximumf %81, %82 : vector<2x16xf32>
    %c0_86 = arith.constant 0 : index
    %c0_87 = arith.constant 0 : index
    %c0_88 = arith.constant 0 : index
    %84 = vector.load %arg13[%c0_86, %c0_87, %c0_88] : memref<3x4x4xf32, #tpu.memory_space<vmem>>, vector<1x4x4xf32>
    %85 = vector.shape_cast %84 : vector<1x4x4xf32> to vector<4x4xf32>
    %cst_89 = arith.constant dense<0.000000e+00> : vector<4x32xf32>
    %86 = tpu.matmul %85, %51, %cst_89 {dimension_numbers = #tpu.dot_dimension_numbers<[1], [0], [0], [1], [0, 0, 1, 1], [], []>} : vector<4x4xf32>, vector<4x32xf32>, vector<4x32xf32> -> vector<4x32xf32>
    %c0_90 = arith.constant 0 : index
    %c0_91 = arith.constant 0 : index
    %c0_92 = arith.constant 0 : index
    %87 = vector.load %arg14[%c0_90, %c0_91, %c0_92] : memref<3x32x32xf32, #tpu.memory_space<vmem>>, vector<1x32x32xf32>
    %88 = vector.shape_cast %87 : vector<1x32x32xf32> to vector<32x32xf32>
    %cst_93 = arith.constant dense<0.000000e+00> : vector<4x32xf32>
    %89 = tpu.matmul %86, %88, %cst_93 {dimension_numbers = #tpu.dot_dimension_numbers<[1], [0], [0], [1], [0, 0, 1, 1], [], []>} : vector<4x32xf32>, vector<32x32xf32>, vector<4x32xf32> -> vector<4x32xf32>
    %c1_94 = arith.constant 1 : index
    %c0_95 = arith.constant 0 : index
    %c0_96 = arith.constant 0 : index
    %90 = vector.load %arg13[%c1_94, %c0_95, %c0_96] : memref<3x4x4xf32, #tpu.memory_space<vmem>>, vector<1x4x4xf32>
    %91 = vector.shape_cast %90 : vector<1x4x4xf32> to vector<4x4xf32>
    %cst_97 = arith.constant dense<0.000000e+00> : vector<4x32xf32>
    %92 = tpu.matmul %91, %51, %cst_97 {dimension_numbers = #tpu.dot_dimension_numbers<[1], [0], [0], [1], [0, 0, 1, 1], [], []>} : vector<4x4xf32>, vector<4x32xf32>, vector<4x32xf32> -> vector<4x32xf32>
    %c1_98 = arith.constant 1 : index
    %c0_99 = arith.constant 0 : index
    %c0_100 = arith.constant 0 : index
    %93 = vector.load %arg14[%c1_98, %c0_99, %c0_100] : memref<3x32x32xf32, #tpu.memory_space<vmem>>, vector<1x32x32xf32>
    %94 = vector.shape_cast %93 : vector<1x32x32xf32> to vector<32x32xf32>
    %cst_101 = arith.constant dense<0.000000e+00> : vector<4x32xf32>
    %95 = tpu.matmul %92, %94, %cst_101 {dimension_numbers = #tpu.dot_dimension_numbers<[1], [0], [0], [1], [0, 0, 1, 1], [], []>} : vector<4x32xf32>, vector<32x32xf32>, vector<4x32xf32> -> vector<4x32xf32>
    %96 = arith.addf %89, %95 : vector<4x32xf32>
    %c2_102 = arith.constant 2 : index
    %c0_103 = arith.constant 0 : index
    %c0_104 = arith.constant 0 : index
    %97 = vector.load %arg13[%c2_102, %c0_103, %c0_104] : memref<3x4x4xf32, #tpu.memory_space<vmem>>, vector<1x4x4xf32>
    %98 = vector.shape_cast %97 : vector<1x4x4xf32> to vector<4x4xf32>
    %cst_105 = arith.constant dense<0.000000e+00> : vector<4x32xf32>
    %99 = tpu.matmul %98, %51, %cst_105 {dimension_numbers = #tpu.dot_dimension_numbers<[1], [0], [0], [1], [0, 0, 1, 1], [], []>} : vector<4x4xf32>, vector<4x32xf32>, vector<4x32xf32> -> vector<4x32xf32>
    %c2_106 = arith.constant 2 : index
    %c0_107 = arith.constant 0 : index
    %c0_108 = arith.constant 0 : index
    %100 = vector.load %arg14[%c2_106, %c0_107, %c0_108] : memref<3x32x32xf32, #tpu.memory_space<vmem>>, vector<1x32x32xf32>
    %101 = vector.shape_cast %100 : vector<1x32x32xf32> to vector<32x32xf32>
    %cst_109 = arith.constant dense<0.000000e+00> : vector<4x32xf32>
    %102 = tpu.matmul %99, %101, %cst_109 {dimension_numbers = #tpu.dot_dimension_numbers<[1], [0], [0], [1], [0, 0, 1, 1], [], []>} : vector<4x32xf32>, vector<32x32xf32>, vector<4x32xf32> -> vector<4x32xf32>
    %103 = arith.addf %96, %102 : vector<4x32xf32>
    %c0_110 = arith.constant 0 : index
    %c0_111 = arith.constant 0 : index
    %104 = vector.load %arg15[%c0_110, %c0_111] : memref<1x32xf32, #tpu.memory_space<vmem>>, vector<1x32xf32>
    %105 = vector.broadcast %104 : vector<1x32xf32> to vector<4x32xf32>
    %106 = arith.addf %103, %105 : vector<4x32xf32>
    %cst_112 = arith.constant 0.000000e+00 : f32
    %107 = vector.broadcast %cst_112 : f32 to vector<4x32xf32>
    %108 = arith.maximumf %106, %107 : vector<4x32xf32>
    %c0_113 = arith.constant 0 : index
    %c0_114 = arith.constant 0 : index
    %109 = vector.load %arg16[%c0_113, %c0_114] : memref<4x2xf32, #tpu.memory_space<vmem>>, vector<4x2xf32>
    %cst_115 = arith.constant dense<0.000000e+00> : vector<4x16xf32>
    %110 = tpu.matmul %109, %83, %cst_115 {dimension_numbers = #tpu.dot_dimension_numbers<[1], [0], [0], [1], [0, 0, 1, 1], [], []>} : vector<4x2xf32>, vector<2x16xf32>, vector<4x16xf32> -> vector<4x16xf32>
    %c0_116 = arith.constant 0 : index
    %c0_117 = arith.constant 0 : index
    %111 = vector.load %arg17[%c0_116, %c0_117] : memref<16x32xf32, #tpu.memory_space<vmem>>, vector<16x32xf32>
    %cst_118 = arith.constant dense<0.000000e+00> : vector<4x32xf32>
    %112 = tpu.matmul %110, %111, %cst_118 {dimension_numbers = #tpu.dot_dimension_numbers<[1], [0], [0], [1], [0, 0, 1, 1], [], []>} : vector<4x16xf32>, vector<16x32xf32>, vector<4x32xf32> -> vector<4x32xf32>
    %113 = arith.addf %108, %112 : vector<4x32xf32>
    %c0_119 = arith.constant 0 : index
    %c0_120 = arith.constant 0 : index
    %c0_121 = arith.constant 0 : index
    %114 = vector.load %arg18[%c0_119, %c0_120, %c0_121] : memref<3x8x8xf32, #tpu.memory_space<vmem>>, vector<1x8x8xf32>
    %115 = vector.shape_cast %114 : vector<1x8x8xf32> to vector<8x8xf32>
    %cst_122 = arith.constant dense<0.000000e+00> : vector<8x64xf32>
    %116 = tpu.matmul %115, %26, %cst_122 {dimension_numbers = #tpu.dot_dimension_numbers<[1], [0], [0], [1], [0, 0, 1, 1], [], []>} : vector<8x8xf32>, vector<8x64xf32>, vector<8x64xf32> -> vector<8x64xf32>
    %c0_123 = arith.constant 0 : index
    %c0_124 = arith.constant 0 : index
    %c0_125 = arith.constant 0 : index
    %117 = vector.load %arg19[%c0_123, %c0_124, %c0_125] : memref<3x64x64xf32, #tpu.memory_space<vmem>>, vector<1x64x64xf32>
    %118 = vector.shape_cast %117 : vector<1x64x64xf32> to vector<64x64xf32>
    %cst_126 = arith.constant dense<0.000000e+00> : vector<8x64xf32>
    %119 = tpu.matmul %116, %118, %cst_126 {dimension_numbers = #tpu.dot_dimension_numbers<[1], [0], [0], [1], [0, 0, 1, 1], [], []>} : vector<8x64xf32>, vector<64x64xf32>, vector<8x64xf32> -> vector<8x64xf32>
    %c1_127 = arith.constant 1 : index
    %c0_128 = arith.constant 0 : index
    %c0_129 = arith.constant 0 : index
    %120 = vector.load %arg18[%c1_127, %c0_128, %c0_129] : memref<3x8x8xf32, #tpu.memory_space<vmem>>, vector<1x8x8xf32>
    %121 = vector.shape_cast %120 : vector<1x8x8xf32> to vector<8x8xf32>
    %cst_130 = arith.constant dense<0.000000e+00> : vector<8x64xf32>
    %122 = tpu.matmul %121, %26, %cst_130 {dimension_numbers = #tpu.dot_dimension_numbers<[1], [0], [0], [1], [0, 0, 1, 1], [], []>} : vector<8x8xf32>, vector<8x64xf32>, vector<8x64xf32> -> vector<8x64xf32>
    %c1_131 = arith.constant 1 : index
    %c0_132 = arith.constant 0 : index
    %c0_133 = arith.constant 0 : index
    %123 = vector.load %arg19[%c1_131, %c0_132, %c0_133] : memref<3x64x64xf32, #tpu.memory_space<vmem>>, vector<1x64x64xf32>
    %124 = vector.shape_cast %123 : vector<1x64x64xf32> to vector<64x64xf32>
    %cst_134 = arith.constant dense<0.000000e+00> : vector<8x64xf32>
    %125 = tpu.matmul %122, %124, %cst_134 {dimension_numbers = #tpu.dot_dimension_numbers<[1], [0], [0], [1], [0, 0, 1, 1], [], []>} : vector<8x64xf32>, vector<64x64xf32>, vector<8x64xf32> -> vector<8x64xf32>
    %126 = arith.addf %119, %125 : vector<8x64xf32>
    %c2_135 = arith.constant 2 : index
    %c0_136 = arith.constant 0 : index
    %c0_137 = arith.constant 0 : index
    %127 = vector.load %arg18[%c2_135, %c0_136, %c0_137] : memref<3x8x8xf32, #tpu.memory_space<vmem>>, vector<1x8x8xf32>
    %128 = vector.shape_cast %127 : vector<1x8x8xf32> to vector<8x8xf32>
    %cst_138 = arith.constant dense<0.000000e+00> : vector<8x64xf32>
    %129 = tpu.matmul %128, %26, %cst_138 {dimension_numbers = #tpu.dot_dimension_numbers<[1], [0], [0], [1], [0, 0, 1, 1], [], []>} : vector<8x8xf32>, vector<8x64xf32>, vector<8x64xf32> -> vector<8x64xf32>
    %c2_139 = arith.constant 2 : index
    %c0_140 = arith.constant 0 : index
    %c0_141 = arith.constant 0 : index
    %130 = vector.load %arg19[%c2_139, %c0_140, %c0_141] : memref<3x64x64xf32, #tpu.memory_space<vmem>>, vector<1x64x64xf32>
    %131 = vector.shape_cast %130 : vector<1x64x64xf32> to vector<64x64xf32>
    %cst_142 = arith.constant dense<0.000000e+00> : vector<8x64xf32>
    %132 = tpu.matmul %129, %131, %cst_142 {dimension_numbers = #tpu.dot_dimension_numbers<[1], [0], [0], [1], [0, 0, 1, 1], [], []>} : vector<8x64xf32>, vector<64x64xf32>, vector<8x64xf32> -> vector<8x64xf32>
    %133 = arith.addf %126, %132 : vector<8x64xf32>
    %c0_143 = arith.constant 0 : index
    %c0_144 = arith.constant 0 : index
    %134 = vector.load %arg20[%c0_143, %c0_144] : memref<1x64xf32, #tpu.memory_space<vmem>>, vector<1x64xf32>
    %135 = vector.broadcast %134 : vector<1x64xf32> to vector<8x64xf32>
    %136 = arith.addf %133, %135 : vector<8x64xf32>
    %cst_145 = arith.constant 0.000000e+00 : f32
    %137 = vector.broadcast %cst_145 : f32 to vector<8x64xf32>
    %138 = arith.maximumf %136, %137 : vector<8x64xf32>
    %c0_146 = arith.constant 0 : index
    %c0_147 = arith.constant 0 : index
    %139 = vector.load %arg21[%c0_146, %c0_147] : memref<8x4xf32, #tpu.memory_space<vmem>>, vector<8x4xf32>
    %cst_148 = arith.constant dense<0.000000e+00> : vector<8x32xf32>
    %140 = tpu.matmul %139, %113, %cst_148 {dimension_numbers = #tpu.dot_dimension_numbers<[1], [0], [0], [1], [0, 0, 1, 1], [], []>} : vector<8x4xf32>, vector<4x32xf32>, vector<8x32xf32> -> vector<8x32xf32>
    %c0_149 = arith.constant 0 : index
    %c0_150 = arith.constant 0 : index
    %141 = vector.load %arg22[%c0_149, %c0_150] : memref<32x64xf32, #tpu.memory_space<vmem>>, vector<32x64xf32>
    %cst_151 = arith.constant dense<0.000000e+00> : vector<8x64xf32>
    %142 = tpu.matmul %140, %141, %cst_151 {dimension_numbers = #tpu.dot_dimension_numbers<[1], [0], [0], [1], [0, 0, 1, 1], [], []>} : vector<8x32xf32>, vector<32x64xf32>, vector<8x64xf32> -> vector<8x64xf32>
    %143 = arith.addf %138, %142 : vector<8x64xf32>
    %c0_152 = arith.constant 0 : index
    %c0_153 = arith.constant 0 : index
    %c0_154 = arith.constant 0 : index
    %144 = vector.load %arg23[%c0_152, %c0_153, %c0_154] : memref<3x16x16xf32, #tpu.memory_space<vmem>>, vector<1x16x16xf32>
    %145 = vector.shape_cast %144 : vector<1x16x16xf32> to vector<16x16xf32>
    %cst_155 = arith.constant dense<0.000000e+00> : vector<16x64xf32>
    %146 = tpu.matmul %145, %1, %cst_155 {dimension_numbers = #tpu.dot_dimension_numbers<[1], [0], [0], [1], [0, 0, 1, 1], [], []>} : vector<16x16xf32>, vector<16x64xf32>, vector<16x64xf32> -> vector<16x64xf32>
    %c0_156 = arith.constant 0 : index
    %c0_157 = arith.constant 0 : index
    %c0_158 = arith.constant 0 : index
    %147 = vector.load %arg24[%c0_156, %c0_157, %c0_158] : memref<3x64x128xf32, #tpu.memory_space<vmem>>, vector<1x64x128xf32>
    %148 = vector.shape_cast %147 : vector<1x64x128xf32> to vector<64x128xf32>
    %cst_159 = arith.constant dense<0.000000e+00> : vector<16x128xf32>
    %149 = tpu.matmul %146, %148, %cst_159 {dimension_numbers = #tpu.dot_dimension_numbers<[1], [0], [0], [1], [0, 0, 1, 1], [], []>} : vector<16x64xf32>, vector<64x128xf32>, vector<16x128xf32> -> vector<16x128xf32>
    %c1_160 = arith.constant 1 : index
    %c0_161 = arith.constant 0 : index
    %c0_162 = arith.constant 0 : index
    %150 = vector.load %arg23[%c1_160, %c0_161, %c0_162] : memref<3x16x16xf32, #tpu.memory_space<vmem>>, vector<1x16x16xf32>
    %151 = vector.shape_cast %150 : vector<1x16x16xf32> to vector<16x16xf32>
    %cst_163 = arith.constant dense<0.000000e+00> : vector<16x64xf32>
    %152 = tpu.matmul %151, %1, %cst_163 {dimension_numbers = #tpu.dot_dimension_numbers<[1], [0], [0], [1], [0, 0, 1, 1], [], []>} : vector<16x16xf32>, vector<16x64xf32>, vector<16x64xf32> -> vector<16x64xf32>
    %c1_164 = arith.constant 1 : index
    %c0_165 = arith.constant 0 : index
    %c0_166 = arith.constant 0 : index
    %153 = vector.load %arg24[%c1_164, %c0_165, %c0_166] : memref<3x64x128xf32, #tpu.memory_space<vmem>>, vector<1x64x128xf32>
    %154 = vector.shape_cast %153 : vector<1x64x128xf32> to vector<64x128xf32>
    %cst_167 = arith.constant dense<0.000000e+00> : vector<16x128xf32>
    %155 = tpu.matmul %152, %154, %cst_167 {dimension_numbers = #tpu.dot_dimension_numbers<[1], [0], [0], [1], [0, 0, 1, 1], [], []>} : vector<16x64xf32>, vector<64x128xf32>, vector<16x128xf32> -> vector<16x128xf32>
    %156 = arith.addf %149, %155 : vector<16x128xf32>
    %c2_168 = arith.constant 2 : index
    %c0_169 = arith.constant 0 : index
    %c0_170 = arith.constant 0 : index
    %157 = vector.load %arg23[%c2_168, %c0_169, %c0_170] : memref<3x16x16xf32, #tpu.memory_space<vmem>>, vector<1x16x16xf32>
    %158 = vector.shape_cast %157 : vector<1x16x16xf32> to vector<16x16xf32>
    %cst_171 = arith.constant dense<0.000000e+00> : vector<16x64xf32>
    %159 = tpu.matmul %158, %1, %cst_171 {dimension_numbers = #tpu.dot_dimension_numbers<[1], [0], [0], [1], [0, 0, 1, 1], [], []>} : vector<16x16xf32>, vector<16x64xf32>, vector<16x64xf32> -> vector<16x64xf32>
    %c2_172 = arith.constant 2 : index
    %c0_173 = arith.constant 0 : index
    %c0_174 = arith.constant 0 : index
    %160 = vector.load %arg24[%c2_172, %c0_173, %c0_174] : memref<3x64x128xf32, #tpu.memory_space<vmem>>, vector<1x64x128xf32>
    %161 = vector.shape_cast %160 : vector<1x64x128xf32> to vector<64x128xf32>
    %cst_175 = arith.constant dense<0.000000e+00> : vector<16x128xf32>
    %162 = tpu.matmul %159, %161, %cst_175 {dimension_numbers = #tpu.dot_dimension_numbers<[1], [0], [0], [1], [0, 0, 1, 1], [], []>} : vector<16x64xf32>, vector<64x128xf32>, vector<16x128xf32> -> vector<16x128xf32>
    %163 = arith.addf %156, %162 : vector<16x128xf32>
    %c0_176 = arith.constant 0 : index
    %c0_177 = arith.constant 0 : index
    %164 = vector.load %arg25[%c0_176, %c0_177] : memref<1x128xf32, #tpu.memory_space<vmem>>, vector<1x128xf32>
    %165 = vector.broadcast %164 : vector<1x128xf32> to vector<16x128xf32>
    %166 = arith.addf %163, %165 : vector<16x128xf32>
    %cst_178 = arith.constant 0.000000e+00 : f32
    %167 = vector.broadcast %cst_178 : f32 to vector<16x128xf32>
    %168 = arith.maximumf %166, %167 : vector<16x128xf32>
    %c0_179 = arith.constant 0 : index
    %c0_180 = arith.constant 0 : index
    %169 = vector.load %arg26[%c0_179, %c0_180] : memref<16x8xf32, #tpu.memory_space<vmem>>, vector<16x8xf32>
    %cst_181 = arith.constant dense<0.000000e+00> : vector<16x64xf32>
    %170 = tpu.matmul %169, %143, %cst_181 {dimension_numbers = #tpu.dot_dimension_numbers<[1], [0], [0], [1], [0, 0, 1, 1], [], []>} : vector<16x8xf32>, vector<8x64xf32>, vector<16x64xf32> -> vector<16x64xf32>
    %c0_182 = arith.constant 0 : index
    %c0_183 = arith.constant 0 : index
    %171 = vector.load %arg27[%c0_182, %c0_183] : memref<64x128xf32, #tpu.memory_space<vmem>>, vector<64x128xf32>
    %cst_184 = arith.constant dense<0.000000e+00> : vector<16x128xf32>
    %172 = tpu.matmul %170, %171, %cst_184 {dimension_numbers = #tpu.dot_dimension_numbers<[1], [0], [0], [1], [0, 0, 1, 1], [], []>} : vector<16x64xf32>, vector<64x128xf32>, vector<16x128xf32> -> vector<16x128xf32>
    %173 = arith.addf %168, %172 : vector<16x128xf32>
    %c0_185 = arith.constant 0 : index
    %c0_186 = arith.constant 0 : index
    %c0_187 = arith.constant 0 : index
    %174 = vector.load %arg34[%c0_185, %c0_186, %c0_187] : memref<1x2x16xf32, #tpu.memory_space<vmem>>, vector<1x2x16xf32>
    %175 = vector.shape_cast %174 : vector<1x2x16xf32> to vector<2x16xf32>
    %176 = vector.shape_cast %83 : vector<2x16xf32> to vector<1x2x16xf32>
    tpu.vector_store %arg34[%c0_185, %c0_186, %c0_187], %176 {strides = array<i32>} : memref<1x2x16xf32, #tpu.memory_space<vmem>>, vector<1x2x16xf32>,
    %c0_188 = arith.constant 0 : index
    %c0_189 = arith.constant 0 : index
    %177 = vector.load %arg28[%c0_188, %c0_189] : memref<32x32xf32, #tpu.memory_space<vmem>>, vector<32x32xf32>
    %cst_190 = arith.constant dense<0.000000e+00> : vector<4x32xf32>
    %178 = tpu.matmul %113, %177, %cst_190 {dimension_numbers = #tpu.dot_dimension_numbers<[1], [0], [0], [1], [0, 0, 1, 1], [], []>} : vector<4x32xf32>, vector<32x32xf32>, vector<4x32xf32> -> vector<4x32xf32>
    %c0_191 = arith.constant 0 : index
    %c0_192 = arith.constant 0 : index
    %179 = vector.load %arg29[%c0_191, %c0_192] : memref<1x32xf32, #tpu.memory_space<vmem>>, vector<1x32xf32>
    %180 = vector.broadcast %179 : vector<1x32xf32> to vector<4x32xf32>
    %181 = arith.addf %178, %180 : vector<4x32xf32>
    %cst_193 = arith.constant 0.000000e+00 : f32
    %182 = vector.broadcast %cst_193 : f32 to vector<4x32xf32>
    %183 = arith.maximumf %181, %182 : vector<4x32xf32>
    %c0_194 = arith.constant 0 : index
    %c0_195 = arith.constant 0 : index
    %c0_196 = arith.constant 0 : index
    %184 = vector.load %arg35[%c0_194, %c0_195, %c0_196] : memref<1x4x32xf32, #tpu.memory_space<vmem>>, vector<1x4x32xf32>
    %185 = vector.shape_cast %184 : vector<1x4x32xf32> to vector<4x32xf32>
    %186 = vector.shape_cast %183 : vector<4x32xf32> to vector<1x4x32xf32>
    tpu.vector_store %arg35[%c0_194, %c0_195, %c0_196], %186 {strides = array<i32>} : memref<1x4x32xf32, #tpu.memory_space<vmem>>, vector<1x4x32xf32>,
    %c0_197 = arith.constant 0 : index
    %c0_198 = arith.constant 0 : index
    %187 = vector.load %arg30[%c0_197, %c0_198] : memref<64x64xf32, #tpu.memory_space<vmem>>, vector<64x64xf32>
    %cst_199 = arith.constant dense<0.000000e+00> : vector<8x64xf32>
    %188 = tpu.matmul %143, %187, %cst_199 {dimension_numbers = #tpu.dot_dimension_numbers<[1], [0], [0], [1], [0, 0, 1, 1], [], []>} : vector<8x64xf32>, vector<64x64xf32>, vector<8x64xf32> -> vector<8x64xf32>
    %c0_200 = arith.constant 0 : index
    %c0_201 = arith.constant 0 : index
    %189 = vector.load %arg31[%c0_200, %c0_201] : memref<1x64xf32, #tpu.memory_space<vmem>>, vector<1x64xf32>
    %190 = vector.broadcast %189 : vector<1x64xf32> to vector<8x64xf32>
    %191 = arith.addf %188, %190 : vector<8x64xf32>
    %cst_202 = arith.constant 0.000000e+00 : f32
    %192 = vector.broadcast %cst_202 : f32 to vector<8x64xf32>
    %193 = arith.maximumf %191, %192 : vector<8x64xf32>
    %c0_203 = arith.constant 0 : index
    %c0_204 = arith.constant 0 : index
    %c0_205 = arith.constant 0 : index
    %194 = vector.load %arg36[%c0_203, %c0_204, %c0_205] : memref<1x8x64xf32, #tpu.memory_space<vmem>>, vector<1x8x64xf32>
    %195 = vector.shape_cast %194 : vector<1x8x64xf32> to vector<8x64xf32>
    %196 = vector.shape_cast %193 : vector<8x64xf32> to vector<1x8x64xf32>
    tpu.vector_store %arg36[%c0_203, %c0_204, %c0_205], %196 {strides = array<i32>} : memref<1x8x64xf32, #tpu.memory_space<vmem>>, vector<1x8x64xf32>,
    %c0_206 = arith.constant 0 : index
    %c0_207 = arith.constant 0 : index
    %197 = vector.load %arg32[%c0_206, %c0_207] : memref<128x128xf32, #tpu.memory_space<vmem>>, vector<128x128xf32>
    %cst_208 = arith.constant dense<0.000000e+00> : vector<16x128xf32>
    %198 = tpu.matmul %173, %197, %cst_208 {dimension_numbers = #tpu.dot_dimension_numbers<[1], [0], [0], [1], [0, 0, 1, 1], [], []>} : vector<16x128xf32>, vector<128x128xf32>, vector<16x128xf32> -> vector<16x128xf32>
    %c0_209 = arith.constant 0 : index
    %c0_210 = arith.constant 0 : index
    %199 = vector.load %arg33[%c0_209, %c0_210] : memref<1x128xf32, #tpu.memory_space<vmem>>, vector<1x128xf32>
    %200 = vector.broadcast %199 : vector<1x128xf32> to vector<16x128xf32>
    %201 = arith.addf %198, %200 : vector<16x128xf32>
    %cst_211 = arith.constant 0.000000e+00 : f32
    %202 = vector.broadcast %cst_211 : f32 to vector<16x128xf32>
    %203 = arith.maximumf %201, %202 : vector<16x128xf32>
    %c0_212 = arith.constant 0 : index
    %c0_213 = arith.constant 0 : index
    %c0_214 = arith.constant 0 : index
    %204 = vector.load %arg37[%c0_212, %c0_213, %c0_214] : memref<1x16x128xf32, #tpu.memory_space<vmem>>, vector<1x16x128xf32>
    %205 = vector.shape_cast %204 : vector<1x16x128xf32> to vector<16x128xf32>
    %206 = vector.shape_cast %203 : vector<16x128xf32> to vector<1x16x128xf32>
    tpu.vector_store %arg37[%c0_212, %c0_213, %c0_214], %206 {strides = array<i32>} : memref<1x16x128xf32, #tpu.memory_space<vmem>>, vector<1x16x128xf32>,
    return
  }
  func.func @transform_0(%arg0: i32) -> (i32, i32, i32) {
    %c0_i32 = arith.constant 0 : i32
    %c0_i32_0 = arith.constant 0 : i32
    %c0_i32_1 = arith.constant 0 : i32
    return %arg0, %c0_i32, %c0_i32_0 : i32, i32, i32
  }
  func.func @transform_1(%arg0: i32) -> (i32, i32, i32) {
    %c0_i32 = arith.constant 0 : i32
    %c0_i32_0 = arith.constant 0 : i32
    %c0_i32_1 = arith.constant 0 : i32
    %c0_i32_2 = arith.constant 0 : i32
    return %c0_i32, %c0_i32_0, %c0_i32_1 : i32, i32, i32
  }
  func.func @transform_2(%arg0: i32) -> (i32, i32, i32) {
    %c0_i32 = arith.constant 0 : i32
    %c0_i32_0 = arith.constant 0 : i32
    %c0_i32_1 = arith.constant 0 : i32
    %c0_i32_2 = arith.constant 0 : i32
    return %c0_i32, %c0_i32_0, %c0_i32_1 : i32, i32, i32
  }
  func.func @transform_3(%arg0: i32) -> (i32, i32) {
    %c0_i32 = arith.constant 0 : i32
    %c0_i32_0 = arith.constant 0 : i32
    %c0_i32_1 = arith.constant 0 : i32
    return %c0_i32, %c0_i32_0 : i32, i32
  }
  func.func @transform_4(%arg0: i32) -> (i32, i32, i32) {
    %c0_i32 = arith.constant 0 : i32
    %c0_i32_0 = arith.constant 0 : i32
    %c0_i32_1 = arith.constant 0 : i32
    %c0_i32_2 = arith.constant 0 : i32
    return %c0_i32, %c0_i32_0, %c0_i32_1 : i32, i32, i32
  }
  func.func @transform_5(%arg0: i32) -> (i32, i32, i32) {
    %c0_i32 = arith.constant 0 : i32
    %c0_i32_0 = arith.constant 0 : i32
    %c0_i32_1 = arith.constant 0 : i32
    %c0_i32_2 = arith.constant 0 : i32
    return %c0_i32, %c0_i32_0, %c0_i32_1 : i32, i32, i32
  }
  func.func @transform_6(%arg0: i32) -> (i32, i32) {
    %c0_i32 = arith.constant 0 : i32
    %c0_i32_0 = arith.constant 0 : i32
    %c0_i32_1 = arith.constant 0 : i32
    return %c0_i32, %c0_i32_0 : i32, i32
  }
  func.func @transform_7(%arg0: i32) -> (i32, i32, i32) {
    %c0_i32 = arith.constant 0 : i32
    %c0_i32_0 = arith.constant 0 : i32
    %c0_i32_1 = arith.constant 0 : i32
    %c0_i32_2 = arith.constant 0 : i32
    return %c0_i32, %c0_i32_0, %c0_i32_1 : i32, i32, i32
  }
  func.func @transform_8(%arg0: i32) -> (i32, i32, i32) {
    %c0_i32 = arith.constant 0 : i32
    %c0_i32_0 = arith.constant 0 : i32
    %c0_i32_1 = arith.constant 0 : i32
    %c0_i32_2 = arith.constant 0 : i32
    return %c0_i32, %c0_i32_0, %c0_i32_1 : i32, i32, i32
  }
  func.func @transform_9(%arg0: i32) -> (i32, i32) {
    %c0_i32 = arith.constant 0 : i32
    %c0_i32_0 = arith.constant 0 : i32
    %c0_i32_1 = arith.constant 0 : i32
    return %c0_i32, %c0_i32_0 : i32, i32
  }
  func.func @transform_10(%arg0: i32) -> (i32, i32) {
    %c0_i32 = arith.constant 0 : i32
    %c0_i32_0 = arith.constant 0 : i32
    %c0_i32_1 = arith.constant 0 : i32
    return %c0_i32, %c0_i32_0 : i32, i32
  }
  func.func @transform_11(%arg0: i32) -> (i32, i32) {
    %c0_i32 = arith.constant 0 : i32
    %c0_i32_0 = arith.constant 0 : i32
    %c0_i32_1 = arith.constant 0 : i32
    return %c0_i32, %c0_i32_0 : i32, i32
  }
  func.func @transform_12(%arg0: i32) -> (i32, i32, i32) {
    %c0_i32 = arith.constant 0 : i32
    %c0_i32_0 = arith.constant 0 : i32
    %c0_i32_1 = arith.constant 0 : i32
    %c0_i32_2 = arith.constant 0 : i32
    return %c0_i32, %c0_i32_0, %c0_i32_1 : i32, i32, i32
  }
  func.func @transform_13(%arg0: i32) -> (i32, i32, i32) {
    %c0_i32 = arith.constant 0 : i32
    %c0_i32_0 = arith.constant 0 : i32
    %c0_i32_1 = arith.constant 0 : i32
    %c0_i32_2 = arith.constant 0 : i32
    return %c0_i32, %c0_i32_0, %c0_i32_1 : i32, i32, i32
  }
  func.func @transform_14(%arg0: i32) -> (i32, i32) {
    %c0_i32 = arith.constant 0 : i32
    %c0_i32_0 = arith.constant 0 : i32
    %c0_i32_1 = arith.constant 0 : i32
    return %c0_i32, %c0_i32_0 : i32, i32
  }
  func.func @transform_15(%arg0: i32) -> (i32, i32) {
    %c0_i32 = arith.constant 0 : i32
    %c0_i32_0 = arith.constant 0 : i32
    %c0_i32_1 = arith.constant 0 : i32
    return %c0_i32, %c0_i32_0 : i32, i32
  }
  func.func @transform_16(%arg0: i32) -> (i32, i32) {
    %c0_i32 = arith.constant 0 : i32
    %c0_i32_0 = arith.constant 0 : i32
    %c0_i32_1 = arith.constant 0 : i32
    return %c0_i32, %c0_i32_0 : i32, i32
  }
  func.func @transform_17(%arg0: i32) -> (i32, i32, i32) {
    %c0_i32 = arith.constant 0 : i32
    %c0_i32_0 = arith.constant 0 : i32
    %c0_i32_1 = arith.constant 0 : i32
    %c0_i32_2 = arith.constant 0 : i32
    return %c0_i32, %c0_i32_0, %c0_i32_1 : i32, i32, i32
  }
  func.func @transform_18(%arg0: i32) -> (i32, i32, i32) {
    %c0_i32 = arith.constant 0 : i32
    %c0_i32_0 = arith.constant 0 : i32
    %c0_i32_1 = arith.constant 0 : i32
    %c0_i32_2 = arith.constant 0 : i32
    return %c0_i32, %c0_i32_0, %c0_i32_1 : i32, i32, i32
  }
  func.func @transform_19(%arg0: i32) -> (i32, i32) {
    %c0_i32 = arith.constant 0 : i32
    %c0_i32_0 = arith.constant 0 : i32
    %c0_i32_1 = arith.constant 0 : i32
    return %c0_i32, %c0_i32_0 : i32, i32
  }
  func.func @transform_20(%arg0: i32) -> (i32, i32) {
    %c0_i32 = arith.constant 0 : i32
    %c0_i32_0 = arith.constant 0 : i32
    %c0_i32_1 = arith.constant 0 : i32
    return %c0_i32, %c0_i32_0 : i32, i32
  }
  func.func @transform_21(%arg0: i32) -> (i32, i32) {
    %c0_i32 = arith.constant 0 : i32
    %c0_i32_0 = arith.constant 0 : i32
    %c0_i32_1 = arith.constant 0 : i32
    return %c0_i32, %c0_i32_0 : i32, i32
  }
  func.func @transform_22(%arg0: i32) -> (i32, i32, i32) {
    %c0_i32 = arith.constant 0 : i32
    %c0_i32_0 = arith.constant 0 : i32
    %c0_i32_1 = arith.constant 0 : i32
    %c0_i32_2 = arith.constant 0 : i32
    return %c0_i32, %c0_i32_0, %c0_i32_1 : i32, i32, i32
  }
  func.func @transform_23(%arg0: i32) -> (i32, i32, i32) {
    %c0_i32 = arith.constant 0 : i32
    %c0_i32_0 = arith.constant 0 : i32
    %c0_i32_1 = arith.constant 0 : i32
    %c0_i32_2 = arith.constant 0 : i32
    return %c0_i32, %c0_i32_0, %c0_i32_1 : i32, i32, i32
  }
  func.func @transform_24(%arg0: i32) -> (i32, i32) {
    %c0_i32 = arith.constant 0 : i32
    %c0_i32_0 = arith.constant 0 : i32
    %c0_i32_1 = arith.constant 0 : i32
    return %c0_i32, %c0_i32_0 : i32, i32
  }
  func.func @transform_25(%arg0: i32) -> (i32, i32) {
    %c0_i32 = arith.constant 0 : i32
    %c0_i32_0 = arith.constant 0 : i32
    %c0_i32_1 = arith.constant 0 : i32
    return %c0_i32, %c0_i32_0 : i32, i32
  }
  func.func @transform_26(%arg0: i32) -> (i32, i32) {
    %c0_i32 = arith.constant 0 : i32
    %c0_i32_0 = arith.constant 0 : i32
    %c0_i32_1 = arith.constant 0 : i32
    return %c0_i32, %c0_i32_0 : i32, i32
  }
  func.func @transform_27(%arg0: i32) -> (i32, i32) {
    %c0_i32 = arith.constant 0 : i32
    %c0_i32_0 = arith.constant 0 : i32
    %c0_i32_1 = arith.constant 0 : i32
    return %c0_i32, %c0_i32_0 : i32, i32
  }
  func.func @transform_28(%arg0: i32) -> (i32, i32) {
    %c0_i32 = arith.constant 0 : i32
    %c0_i32_0 = arith.constant 0 : i32
    %c0_i32_1 = arith.constant 0 : i32
    return %c0_i32, %c0_i32_0 : i32, i32
  }
  func.func @transform_29(%arg0: i32) -> (i32, i32) {
    %c0_i32 = arith.constant 0 : i32
    %c0_i32_0 = arith.constant 0 : i32
    %c0_i32_1 = arith.constant 0 : i32
    return %c0_i32, %c0_i32_0 : i32, i32
  }
  func.func @transform_30(%arg0: i32) -> (i32, i32) {
    %c0_i32 = arith.constant 0 : i32
    %c0_i32_0 = arith.constant 0 : i32
    %c0_i32_1 = arith.constant 0 : i32
    return %c0_i32, %c0_i32_0 : i32, i32
  }
  func.func @transform_31(%arg0: i32) -> (i32, i32) {
    %c0_i32 = arith.constant 0 : i32
    %c0_i32_0 = arith.constant 0 : i32
    %c0_i32_1 = arith.constant 0 : i32
    return %c0_i32, %c0_i32_0 : i32, i32
  }
  func.func @transform_32(%arg0: i32) -> (i32, i32) {
    %c0_i32 = arith.constant 0 : i32
    %c0_i32_0 = arith.constant 0 : i32
    %c0_i32_1 = arith.constant 0 : i32
    return %c0_i32, %c0_i32_0 : i32, i32
  }
  func.func @transform_33(%arg0: i32) -> (i32, i32, i32) {
    %c0_i32 = arith.constant 0 : i32
    %c0_i32_0 = arith.constant 0 : i32
    %c0_i32_1 = arith.constant 0 : i32
    return %arg0, %c0_i32, %c0_i32_0 : i32, i32, i32
  }
  func.func @transform_34(%arg0: i32) -> (i32, i32, i32) {
    %c0_i32 = arith.constant 0 : i32
    %c0_i32_0 = arith.constant 0 : i32
    %c0_i32_1 = arith.constant 0 : i32
    return %arg0, %c0_i32, %c0_i32_0 : i32, i32, i32
  }
  func.func @transform_35(%arg0: i32) -> (i32, i32, i32) {
    %c0_i32 = arith.constant 0 : i32
    %c0_i32_0 = arith.constant 0 : i32
    %c0_i32_1 = arith.constant 0 : i32
    return %arg0, %c0_i32, %c0_i32_0 : i32, i32, i32
  }
  func.func @transform_36(%arg0: i32) -> (i32, i32, i32) {
    %c0_i32 = arith.constant 0 : i32
    %c0_i32_0 = arith.constant 0 : i32
    %c0_i32_1 = arith.constant 0 : i32
    return %arg0, %c0_i32, %c0_i32_0 : i32, i32, i32
  }
}

</mosaic_0001>

<bundles_post_ra>
// kernel: tum_forward.1
= control target key start
LH: loop header
LB: loop body
LE: loop exit
PB: predicated region body
PF: predicated region fallthrough
CT: control target
= control target key end

     0   :  { %s7617_s6 = smov 1   ;;  %s7618_s10 = smov 2   ;;  %s8548_s0 = inlined_call_operand.smem [shape: u32[37], index: -1, kind: input, shape index: {}] }
   0x1   :  { %s7694_s5 = sld [smem:[%s8548_s0]]   ;;  %s7619_s14 = smov 3  }
   0x2   :  { %s7699_s9 = sld [smem:[%s8548_s0 + %s7617_s6]]   ;;  %s7620_s18 = smov 4  }
   0x3   :  { %s7704_s13 = sld [smem:[%s8548_s0 + %s7618_s10]]   ;;  %s7621_s22 = smov 5  }
   0x4   :  { %s7709_s17 = sld [smem:[%s8548_s0 + %s7619_s14]]   ;;  %s7622_s26 = smov 6  }
   0x5   :  { %s7714_s21 = sld [smem:[%s8548_s0 + %s7620_s18]]   ;;  %s7623_s30 = smov 7  }
   0x6   :  { %s7719_s25 = sld [smem:[%s8548_s0 + %s7621_s22]]   ;;  %s7624_s4 = smov 8  }
   0x7   :  { %8559 = sst [smem:[#allocation53_spill]] %s7694_s5  ;;  %s7625_s10 = smov 9  }
   0x8   :  { %8560 = sst [smem:[#allocation54_spill]] %s7699_s9  ;;  %s7626_s15 = smov 10  }
   0x9   :  { %8561 = sst [smem:[#allocation55_spill]] %s7704_s13  ;;  %s7627_s20 = smov 11  }
   0xa   :  { %8562 = sst [smem:[#allocation56_spill]] %s7709_s17  ;;  %s7629_s1 = smov 13  }
   0xb   :  { %s7724_s29 = sld [smem:[%s8548_s0 + %s7622_s26]]   ;;  %s7628_s26 = smov 12  }
   0xc   :  { %8563 = sst [smem:[#allocation57_spill]] %s7719_s25  ;;  %s7630_s7 = smov 14  }
   0xd   :  { %s7729_s3 = sld [smem:[%s8548_s0 + %s7623_s30]]   ;;  %s7632_s22 = smov 16  }
   0xe   :  { %s7734_s8 = sld [smem:[%s8548_s0 + %s7624_s4]]   ;;  %s7633_s28 = smov 17  }
   0xf   :  { %s7739_s14 = sld [smem:[%s8548_s0 + %s7625_s10]]  }
  0x10   :  { %s7744_s19 = sld [smem:[%s8548_s0 + %s7626_s15]]   ;;  %s7631_s15 = smov 15  }
  0x11   :  { %8564 = sst [smem:[#allocation58_spill]] %s7724_s29 }
  0x12   :  { %s7749_s24 = sld [smem:[%s8548_s0 + %s7627_s20]]  }
  0x13   :  { %8565 = sst [smem:[#allocation59_spill]] %s7729_s3 }
  0x14   :  { %8566 = sst [smem:[#allocation60_spill]] %s7734_s8 }
  0x15   :  { %8567 = sst [smem:[#allocation61_spill]] %s7739_s14 }
  0x16   :  { %s7754_s30 = sld [smem:[%s8548_s0 + %s7628_s26]]  }
  0x17   :  { %s7759_s6 = sld [smem:[%s8548_s0 + %s7629_s1]]  }
  0x18   :  { %8568 = sst [smem:[#allocation62_spill]] %s7749_s24 }
  0x19   :  { %s7764_s12 = sld [smem:[%s8548_s0 + %s7630_s7]]   ;;  %s7634_s7 = smov 18  }
  0x1a   :  { %s7769_s20 = sld [smem:[%s8548_s0 + %s7631_s15]]   ;;  %s7635_s15 = smov 19  }
  0x1b   :  { %s7774_s27 = sld [smem:[%s8548_s0 + %s7632_s22]]   ;;  %s7636_s22 = smov 20  }
  0x1c   :  { %s7779_s4 = sld [smem:[%s8548_s0 + %s7633_s28]]   ;;  %s7637_s28 = smov 21  }
  0x1d   :  { %8569 = sst [smem:[#allocation63_spill]] %s7759_s6 }
  0x1e   :  { %s7784_s14 = sld [smem:[%s8548_s0 + %s7634_s7]]   ;;  %s7638_s7 = smov 22  }
  0x1f   :  { %s7789_s29 = sld [smem:[%s8548_s0 + %s7635_s15]]   ;;  %s7639_s15 = smov 23  }
  0x20   :  { %8570 = sst [smem:[#allocation64_spill]] %s7769_s20 }
  0x21   :  { %s7794_s17 = sld [smem:[%s8548_s0 + %s7636_s22]]   ;;  %s7640_s22 = smov 24  }
  0x22   :  { %8571 = sst [smem:[#allocation65_spill]] %s7779_s4 }
  0x23   :  { %s7799_s25 = sld [smem:[%s8548_s0 + %s7637_s28]]   ;;  %s7641_s28 = smov 25  }
  0x24   :  { %s7804_s13 = sld [smem:[%s8548_s0 + %s7638_s7]]   ;;  %s7642_s7 = smov 26  }
  0x25   :  { %8572 = sst [smem:[#allocation66_spill]] %s7789_s29 }
  0x26   :  { %s7809_s9 = sld [smem:[%s8548_s0 + %s7639_s15]]   ;;  %s7643_s15 = smov 27  }
  0x27   :  { %s7814_s5 = sld [smem:[%s8548_s0 + %s7640_s22]]   ;;  %s7644_s22 = smov 28  }
  0x28   :  { %s7829_s29 = sld [smem:[%s8548_s0 + %s7643_s15]]   ;;  %s7647_s15 = smov 31  }
  0x29   :  { %8573 = sst [smem:[#allocation67_spill]] %s7799_s25 }
  0x2a   :  { %8574 = sst [smem:[#allocation68_spill]] %s7804_s13 }
  0x2b   :  { %s7819_s25 = sld [smem:[%s8548_s0 + %s7641_s28]]   ;;  %s7645_s28 = smov 29  }
  0x2c   :  { %s7824_s13 = sld [smem:[%s8548_s0 + %s7642_s7]]   ;;  %s7646_s7 = smov 30  }
  0x2d   :  { %8575 = sst [smem:[#allocation69_spill]] %s7814_s5 }
  0x2e   :  { %s7834_s5 = sld [smem:[%s8548_s0 + %s7644_s22]]   ;;  %s7648_s22 = smov 32  }
  0x2f   :  { %s7839_s4 = sld [smem:[%s8548_s0 + %s7645_s28]]   ;;  %s7649_s28 = smov 33  }
  0x30   :  { %s7849_s20 = sld [smem:[%s8548_s0 + %s7647_s15]]   ;;  %s7651_s15 = smov 35  }
  0x31   :  { %s7859_s6 = sld [smem:[%s8548_s0 + %s7649_s28]]  }
  0x32   :  { %8576 = sst [smem:[#allocation70_spill]] %s7824_s13 }
  0x33   :  { %s7844_s13 = sld [smem:[%s8548_s0 + %s7646_s7]]   ;;  %s7650_s7 = smov 34  }
  0x34   :  { %8577 = sst [smem:[#allocation71_spill]] %s7834_s5 }
  0x35   :  { %8578 = sst [smem:[#allocation72_spill]] %s7839_s4 }
  0x36   :  { %s7854_s5 = sld [smem:[%s8548_s0 + %s7648_s22]]   ;;  %s7652_s22 = smov 36  }
  0x37   :  { %s7869_s24 = sld [smem:[%s8548_s0 + %s7651_s15]]  }
  0x39   :  { %8579 = sst [smem:[#allocation73_spill]] %s7844_s13 }
  0x3a   :  { %s7864_s13 = sld [smem:[%s8548_s0 + %s7650_s7]]  }
  0x3c   :  { %8580 = sst [smem:[#allocation74_spill]] %s7854_s5 }
  0x3d   :  { %s7874_s5 = sld [smem:[%s8548_s0 + %s7652_s22]]  }
  0x3e   :  { %79 = vsyncpa [#allocation3], 0 }
  0x3f   :  { %80 = vsyncpa [#allocation5], 0 }
  0x40   :  { %81 = vsyncpa [#allocation8], 0 }
  0x41   :  { %82 = vsyncpa [#allocation11], 0 }
  0x42   :  { %83 = vsyncpa [#allocation14], 0 }
  0x43   :  { %84 = vsyncpa [#allocation17], 0 }
  0x44   :  { %85 = vsyncpa [#allocation20], 0 }
  0x45   :  { %86 = vsyncpa [#allocation23], 0 }
  0x46   :  { %87 = vsyncpa [#allocation26], 0 }
  0x47   :  { %88 = vsyncpa [#allocation29], 0 }
  0x48   :  { %89 = vsyncpa [#allocation32], 0 }
  0x49   :  { %90 = vsyncpa [#allocation35], 0 }
  0x4a   :  { %91 = vsyncpa [#allocation38], 0  ;;  %s7876_s28 = smov 0  }
  0x4b LB: > { %s7653_s0 = smov [#allocation4]   ;;  %s7882_s2 = sadd.s32 4294967295, %s7615_s28   ;;  %s7615_s28 = sphi %s7876_s28, %s97_s28  }
  0x4c   : > { %s944_s1 = sshll.u32 %s7653_s0, 4  ;;  %p5663_p0 = scmp.ge.s32.totalorder %s7615_s28, 1  ;;  %s945_s1 = int_to_ptr.vmem [resolvable:$true] %s944_s1 }
  0x4d   : > { %p904_p1 = scmp.lt.s32.totalorder %s7615_s28, 3  ;;  %p8553_p2 = scmp.eq.s32.totalorder %s7882_s2, 0 }
  0x4e   : > { %s7654_s11 = smov [#allocation7]   ;;  %s6918_s18 = scalar_lea.vmem %s945_s1, 96 }
  0x4f   : > { %p7887_p3 = pnand %p5663_p0, %p904_p1  ;;  %s973_s15 = sshll.u32 %s7654_s11, 4  ;;  %s974_s15 = int_to_ptr.vmem [resolvable:$true] %s973_s15 }
  0x50   : > { %p6919_p7 = scmp.ne.s32.totalorder %s945_s1, %s6918_s18  ;;  %p6926_p10 = scmp.lt.s32.totalorder %s945_s1, %s945_s1 }
  0x51   : > { %s8581_s7 = scalar_select %p7887_p3, 1, 0 }
  0x52   : > { %p6702_p4 = pneg %p7887_p3  ;;  %p6927_p11 = scmp.lt.s32.totalorder %s6918_s18, %s6918_s18 }
  0x54   : > { %p7895_p5 = pnand %p8553_p2, %p6702_p4  ;;  %p6928_p12 = por %p6927_p11, %p6926_p10 }
  0x56   : > { %p7901_p6 = pneg %p7895_p5 }
  0x58   : > { %p6921_p8 = pnand %p6919_p7, %p7901_p6 }
  0x5a   : > { %p6922_p9 = pneg %p6921_p8 }
  0x5c   : > { %p6929_p13 = pnand %p6928_p12, %p6922_p9 }
  0x5e   : > { %6932 = shalt.err (!%p6929_p13)
}
  0x5f   : > { %s7655_s22 = smov 32   ;;  %s8584_s3 = sld [smem:[#allocation59_spill]] }
  0x60   : > { %s7656_s23 = smov 2   ;;  %s6944_s26 = scalar_lea.vmem %s974_s15, 256 }
  0x61   : > { %p6945_p0 = scmp.ne.s32.totalorder %s974_s15, %s6944_s26  ;;  %p6952_p2 = scmp.lt.s32.totalorder %s974_s15, %s974_s15 }
  0x62   : > { %p6953_p7 = scmp.lt.s32.totalorder %s6944_s26, %s6944_s26 }
  0x63   : > { %p6947_p1 = pnand %p6945_p0, %p7901_p6 }
  0x64   : > { %p6954_p8 = por %p6953_p7, %p6952_p2 }
  0x65   : > { %6708 = dma.hbm_to_vmem [thread:$0]  (!%p7895_p5), %s8584_s3, 96, %s945_s1, [#allocation5], %s7655_s22, %s7655_s22, %s7656_s23  }
  0x66   : > { %p6948_p4 = pneg %p6947_p1 }
  0x68   : > { %p6955_p3 = pnand %p6954_p8, %p6948_p4 }
  0x6a   : > { %6958 = shalt.err (!%p6955_p3)
}
  0x6b   : > { %s8555_s0 = smov 128   ;;  %s7658_s11 = smov 8  }
  0x6c   : > { %6714 = dma.hbm_to_vmem [thread:$0]  (!%p7895_p5), %s7744_s19, 256, %s974_s15, [#allocation8], %s8555_s0, %s8555_s0, %s7658_s11  }
  0x6d   : > { %s7659_s1 = smov [#allocation10]   ;;  %s7660_s22 = smov [#allocation13]  }
  0x6e   : > { %s997_s18 = sshll.u32 %s7659_s1, 4  ;;  %s1024_s23 = sshll.u32 %s7660_s22, 4  ;;  %s998_s18 = int_to_ptr.vmem [resolvable:$true] %s997_s18  ;;  %s1025_s23 = int_to_ptr.vmem [resolvable:$true] %s1024_s23 }
  0x6f   : > { %s6970_s3 = scalar_lea.vmem %s998_s18, 192  ;;  %p6978_p10 = scmp.lt.s32.totalorder %s998_s18, %s998_s18 }
  0x70   : > { %p6971_p9 = scmp.ne.s32.totalorder %s998_s18, %s6970_s3  ;;  %p6979_p11 = scmp.lt.s32.totalorder %s6970_s3, %s6970_s3 }
  0x72   : > { %p6973_p2 = pnand %p6971_p9, %p7901_p6  ;;  %p6980_p12 = por %p6979_p11, %p6978_p10 }
  0x74   : > { %p6974_p3 = pneg %p6973_p2 }
  0x76   : > { %p6981_p13 = pnand %p6980_p12, %p6974_p3 }
  0x78   : > { %6984 = shalt.err (!%p6981_p13)
}
  0x79   : > { %s8557_s26 = smov 64   ;;  %s8558_s15 = smov 4  }
  0x7a   : > { %6720 = dma.hbm_to_vmem [thread:$0]  (!%p7895_p5), %s7754_s30, 192, %s998_s18, [#allocation11], %s8557_s26, %s8557_s26, %s8558_s15  }
  0x7b   : > { %s6996_s1 = scalar_lea.vmem %s1025_s23, 16  ;;  %s7003_s3 = scalar_lea.vmem %s1025_s23, 32 }
  0x7c   : > { %p6997_p0 = scmp.ne.s32.totalorder %s1025_s23, %s6996_s1  ;;  %p7004_p7 = scmp.lt.s32.totalorder %s1025_s23, %s1025_s23 }
  0x7d   : > { %p7005_p8 = scmp.lt.s32.totalorder %s7003_s3, %s6996_s1 }
  0x7e   : > { %p6999_p1 = pnand %p6997_p0, %p7901_p6 }
  0x7f   : > { %p7006_p9 = por %p7005_p8, %p7004_p7 }
  0x80   : > { %p7000_p4 = pneg %p6999_p1 }
  0x82   : > { %p7007_p2 = pnand %p7006_p9, %p7000_p4 }
  0x84   : > { %7010 = shalt.err (!%p7007_p2)
}
  0x85   : > { %6726 = dma.hbm_to_vmem [thread:$0]  (!%p7895_p5), %s7764_s12, 16, %s1025_s23, [#allocation14]  }
  0x86   : > { %s7663_s22 = smov [#allocation16]   ;;  %s7664_s18 = smov [#allocation19]  }
  0x87   : > { %s1045_s0 = sshll.u32 %s7663_s22, 4  ;;  %s1071_s26 = sshll.u32 %s7664_s18, 4  ;;  %s1046_s0 = int_to_ptr.vmem [resolvable:$true] %s1045_s0  ;;  %s1072_s26 = int_to_ptr.vmem [resolvable:$true] %s1071_s26 }
  0x88   : > { %s7022_s15 = scalar_lea.vmem %s1046_s0, 256  ;;  %p7030_p12 = scmp.lt.s32.totalorder %s1046_s0, %s1046_s0 }
  0x89   : > { %p7023_p3 = scmp.ne.s32.totalorder %s1046_s0, %s7022_s15  ;;  %p7031_p13 = scmp.lt.s32.totalorder %s7022_s15, %s7022_s15 }
  0x8b   : > { %p7025_p10 = pnand %p7023_p3, %p7901_p6  ;;  %p7032_p0 = por %p7031_p13, %p7030_p12 }
  0x8d   : > { %p7026_p11 = pneg %p7025_p10 }
  0x8f   : > { %p7033_p1 = pnand %p7032_p0, %p7026_p11 }
  0x91   : > { %7036 = shalt.err (!%p7033_p1)
}
  0x92   : > { %s8585_s1 = smov 128   ;;  %s7048_s23 = scalar_lea.vmem %s1072_s26, 3072 }
  0x93   : > { %6732 = dma.hbm_to_vmem [thread:$0]  (!%p7895_p5), %s7774_s27, 256, %s1046_s0, [#allocation17], %s8585_s1, %s8585_s1, %s7658_s11  }
  0x94   : > { %p7049_p4 = scmp.ne.s32.totalorder %s1072_s26, %s7048_s23  ;;  %p7056_p9 = scmp.lt.s32.totalorder %s1072_s26, %s1072_s26 }
  0x95   : > { %p7057_p2 = scmp.lt.s32.totalorder %s7048_s23, %s7048_s23 }
  0x96   : > { %p7051_p7 = pnand %p7049_p4, %p7901_p6 }
  0x97   : > { %p7058_p3 = por %p7057_p2, %p7056_p9 }
  0x98   : > { %p7052_p8 = pneg %p7051_p7 }
  0x9a   : > { %p7059_p10 = pnand %p7058_p3, %p7052_p8 }
  0x9c   : > { %7062 = shalt.err (!%p7059_p10)
}
  0x9d   : > { %6738 = dma.hbm_to_vmem [thread:$0]  (!%p7895_p5), %s7784_s14, 3072, %s1072_s26, [#allocation20], %s8585_s1, %s8585_s1, %s7658_s11  }
  0x9e   : > { %s7665_s0 = smov [#allocation22]   ;;  %s7666_s3 = smov [#allocation25]  }
  0x9f   : > { %s1096_s15 = sshll.u32 %s7665_s0, 4  ;;  %s1122_s22 = sshll.u32 %s7666_s3, 4  ;;  %s1097_s15 = int_to_ptr.vmem [resolvable:$true] %s1096_s15  ;;  %s1123_s22 = int_to_ptr.vmem [resolvable:$true] %s1122_s22 }
  0xa0   : > { %s7074_s18 = scalar_lea.vmem %s1097_s15, 128  ;;  %p7082_p0 = scmp.lt.s32.totalorder %s1097_s15, %s1097_s15 }
  0xa1   : > { %p7075_p11 = scmp.ne.s32.totalorder %s1097_s15, %s7074_s18  ;;  %p7083_p1 = scmp.lt.s32.totalorder %s7074_s18, %s7074_s18 }
  0xa3   : > { %p7077_p12 = pnand %p7075_p11, %p7901_p6  ;;  %p7084_p4 = por %p7083_p1, %p7082_p0 }
  0xa5   : > { %p7078_p13 = pneg %p7077_p12 }
  0xa7   : > { %p7085_p7 = pnand %p7084_p4, %p7078_p13 }
  0xa9   : > { %7088 = shalt.err (!%p7085_p7)
}
  0xaa   : > { %6744 = dma.hbm_to_vmem [thread:$0]  (!%p7895_p5), %s7794_s17, 128, %s1097_s15, [#allocation23]  }
  0xab   : > { %s7100_s26 = scalar_lea.vmem %s1123_s22, 3072  ;;  %p7108_p3 = scmp.lt.s32.totalorder %s1123_s22, %s1123_s22 }
  0xac   : > { %p7101_p8 = scmp.ne.s32.totalorder %s1123_s22, %s7100_s26  ;;  %p7109_p10 = scmp.lt.s32.totalorder %s7100_s26, %s7100_s26 }
  0xae   : > { %p7103_p9 = pnand %p7101_p8, %p7901_p6  ;;  %p7110_p11 = por %p7109_p10, %p7108_p3 }
  0xb0   : > { %p7104_p2 = pneg %p7103_p9 }
  0xb2   : > { %p7111_p12 = pnand %p7110_p11, %p7104_p2 }
  0xb4   : > { %7114 = shalt.err (!%p7111_p12)
}
  0xb5   : > { %6750 = dma.hbm_to_vmem [thread:$0]  (!%p7895_p5), %s7809_s9, 3072, %s1123_s22, [#allocation26], %s8585_s1, %s8585_s1, %s7658_s11  }
  0xb6   : > { %s7667_s23 = smov [#allocation28]   ;;  %s7668_s15 = smov [#allocation31]  }
  0xb7   : > { %s1146_s0 = sshll.u32 %s7667_s23, 4  ;;  %s1172_s3 = sshll.u32 %s7668_s15, 4  ;;  %s1147_s0 = int_to_ptr.vmem [resolvable:$true] %s1146_s0  ;;  %s1173_s3 = int_to_ptr.vmem [resolvable:$true] %s1172_s3 }
  0xb8   : > { %s7126_s18 = scalar_lea.vmem %s1147_s0, 256  ;;  %p7134_p4 = scmp.lt.s32.totalorder %s1147_s0, %s1147_s0 }
  0xb9   : > { %p7127_p13 = scmp.ne.s32.totalorder %s1147_s0, %s7126_s18  ;;  %p7135_p7 = scmp.lt.s32.totalorder %s7126_s18, %s7126_s18 }
  0xbb   : > { %p7129_p0 = pnand %p7127_p13, %p7901_p6  ;;  %p7136_p8 = por %p7135_p7, %p7134_p4 }
  0xbd   : > { %p7130_p1 = pneg %p7129_p0 }
  0xbf   : > { %p7137_p9 = pnand %p7136_p8, %p7130_p1 }
  0xc1   : > { %7140 = shalt.err (!%p7137_p9)
}
  0xc2   : > { %6756 = dma.hbm_to_vmem [thread:$0]  (!%p7895_p5), %s7819_s25, 256, %s1147_s0, [#allocation29], %s8585_s1, %s8585_s1, %s7658_s11  }
  0xc3   : > { %s7152_s22 = scalar_lea.vmem %s1173_s3, 512  ;;  %p7160_p11 = scmp.lt.s32.totalorder %s1173_s3, %s1173_s3 }
  0xc4   : > { %p7153_p2 = scmp.ne.s32.totalorder %s1173_s3, %s7152_s22  ;;  %p7161_p12 = scmp.lt.s32.totalorder %s7152_s22, %s7152_s22 }
  0xc6   : > { %p7155_p3 = pnand %p7153_p2, %p7901_p6  ;;  %p7162_p13 = por %p7161_p12, %p7160_p11 }
  0xc8   : > { %p7156_p10 = pneg %p7155_p3 }
  0xca   : > { %p7163_p0 = pnand %p7162_p13, %p7156_p10 }
  0xcc   : > { %7166 = shalt.err (!%p7163_p0)
}
  0xcd   : > { %6762 = dma.hbm_to_vmem [thread:$0]  (!%p7895_p5), %s7829_s29, 512, %s1173_s3, [#allocation32], %s8585_s1, %s8585_s1, %s7658_s11  }
  0xce   : > { %s7669_s26 = smov [#allocation34]   ;;  %s7670_s0 = smov [#allocation37]  }
  0xcf   : > { %s1196_s23 = sshll.u32 %s7669_s26, 4  ;;  %s1220_s15 = sshll.u32 %s7670_s0, 4  ;;  %s1197_s23 = int_to_ptr.vmem [resolvable:$true] %s1196_s23  ;;  %s1221_s15 = int_to_ptr.vmem [resolvable:$true] %s1220_s15 }
  0xd0   : > { %s7178_s18 = scalar_lea.vmem %s1197_s23, 1024  ;;  %p7186_p8 = scmp.lt.s32.totalorder %s1197_s23, %s1197_s23 }
  0xd1   : > { %p7179_p1 = scmp.ne.s32.totalorder %s1197_s23, %s7178_s18  ;;  %p7187_p9 = scmp.lt.s32.totalorder %s7178_s18, %s7178_s18 }
  0xd3   : > { %p7181_p4 = pnand %p7179_p1, %p7901_p6  ;;  %p7188_p2 = por %p7187_p9, %p7186_p8 }
  0xd5   : > { %p7182_p7 = pneg %p7181_p4 }
  0xd7   : > { %p7189_p3 = pnand %p7188_p2, %p7182_p7 }
  0xd9   : > { %7192 = shalt.err (!%p7189_p3)
}
  0xda   : > { %s8586_s4 = sld [smem:[#allocation72_spill]]  ;;  %s7204_s3 = scalar_lea.vmem %s1221_s15, 2048 }
  0xdb   : > { %p7205_p10 = scmp.ne.s32.totalorder %s1221_s15, %s7204_s3  ;;  %p7212_p13 = scmp.lt.s32.totalorder %s1221_s15, %s1221_s15 }
  0xdc   : > { %p7213_p0 = scmp.lt.s32.totalorder %s7204_s3, %s7204_s3 }
  0xdd   : > { %p7207_p11 = pnand %p7205_p10, %p7901_p6 }
  0xde   : > { %p7214_p1 = por %p7213_p0, %p7212_p13 }
  0xdf   : > { %p7208_p12 = pneg %p7207_p11 }
  0xe0   : > { %6768 = dma.hbm_to_vmem [thread:$0]  (!%p7895_p5), %s8586_s4, 1024, %s1197_s23, [#allocation35], %s8585_s1, %s8585_s1, %s7658_s11  }
  0xe1   : > { %p7215_p4 = pnand %p7214_p1, %p7208_p12 }
  0xe3   : > { %7218 = shalt.err (!%p7215_p4)
}
  0xe4   : > { %6774 = dma.hbm_to_vmem [thread:$0]  (!%p7895_p5), %s7849_s20, 2048, %s1221_s15, [#allocation38], %s8585_s1, %s8585_s1, %s7658_s11  }
  0xe5   : > { %s7671_s22 = smov [#allocation2]   ;;  %s7672_s23 = smov [#allocation6]  }
  0xe6   : > { %s925_s26 = sshll.u32 %s7671_s22, 4  ;;  %s957_s0 = sshll.u32 %s7672_s23, 4  ;;  %s926_s26 = int_to_ptr.vmem [resolvable:$true] %s925_s26  ;;  %s958_s0 = int_to_ptr.vmem [resolvable:$true] %s957_s0 }
  0xe7   : > { %s7230_s18 = scalar_lea.vmem %s926_s26, 192  ;;  %p7238_p2 = scmp.lt.s32.totalorder %s926_s26, %s926_s26 }
  0xe8   : > { %p7231_p7 = scmp.ne.s32.totalorder %s926_s26, %s7230_s18  ;;  %p7239_p3 = scmp.lt.s32.totalorder %s7230_s18, %s7230_s18 }
  0xea   : > { %p7233_p8 = pnand %p7231_p7, %p7901_p6  ;;  %p7240_p10 = por %p7239_p3, %p7238_p2 }
  0xec   : > { %p7234_p9 = pneg %p7233_p8 }
  0xee   : > { %p7241_p11 = pnand %p7240_p10, %p7234_p9 }
  0xf0   : > { %7244 = shalt.err (!%p7241_p11)
}
  0xf1   : > { %s8587_s3 = smov 4   ;;  %s8588_s4 = smov 64  }
  0xf2   : > { %6705 = dma.hbm_to_vmem [thread:$0]  (!%p7895_p5), %s7714_s21, 192, %s926_s26, [#allocation3], %s8588_s4, %s8588_s4, %s8587_s3  }
  0xf3   : > { %s7256_s15 = scalar_lea.vmem %s958_s0, 1536  ;;  %p7264_p1 = scmp.lt.s32.totalorder %s958_s0, %s958_s0 }
  0xf4   : > { %p7257_p12 = scmp.ne.s32.totalorder %s958_s0, %s7256_s15  ;;  %p7265_p4 = scmp.lt.s32.totalorder %s7256_s15, %s7256_s15 }
  0xf6   : > { %p7259_p13 = pnand %p7257_p12, %p7901_p6  ;;  %p7266_p7 = por %p7265_p4, %p7264_p1 }
  0xf8   : > { %p7260_p0 = pneg %p7259_p13 }
  0xfa   : > { %p7267_p8 = pnand %p7266_p7, %p7260_p0 }
  0xfc   : > { %7270 = shalt.err (!%p7267_p8)
}
  0xfd   : > { %s8589_s8 = sld [smem:[#allocation60_spill]]  ;;  %s7673_s4 = smov [#allocation9]  }
  0xfe   : > { %s987_s22 = sshll.u32 %s7673_s4, 4  ;;  %s7674_s26 = smov [#allocation12]   ;;  %s988_s22 = int_to_ptr.vmem [resolvable:$true] %s987_s22 }
  0xff   : > { %s1010_s23 = sshll.u32 %s7674_s26, 4  ;;  %s7282_s18 = scalar_lea.vmem %s988_s22, 16  ;;  %s1011_s23 = int_to_ptr.vmem [resolvable:$true] %s1010_s23 }
 0x100   : > { %p7283_p9 = scmp.ne.s32.totalorder %s988_s22, %s7282_s18  ;;  %s7289_s3 = scalar_lea.vmem %s988_s22, 32 }
 0x101   : > { %p7290_p10 = scmp.lt.s32.totalorder %s988_s22, %s988_s22  ;;  %p7291_p11 = scmp.lt.s32.totalorder %s7289_s3, %s7282_s18 }
 0x102   : > { %p7285_p2 = pnand %p7283_p9, %p7901_p6 }
 0x103   : > { %6711 = dma.hbm_to_vmem [thread:$0]  (!%p7895_p5), %s8589_s8, 1536, %s958_s0, [#allocation5], %s8585_s1, %s8585_s1, %s7658_s11  }
 0x104   : > { %p7286_p3 = pneg %p7285_p2  ;;  %p7292_p12 = por %p7291_p11, %p7290_p10 }
 0x106   : > { %p7293_p13 = pnand %p7292_p12, %p7286_p3 }
 0x108   : > { %7296 = shalt.err (!%p7293_p13)
}
 0x109   : > { %s8590_s15 = sld [smem:[#allocation62_spill]]  ;;  %s7308_s0 = scalar_lea.vmem %s1011_s23, 1536 }
 0x10a   : > { %p7309_p0 = scmp.ne.s32.totalorder %s1011_s23, %s7308_s0  ;;  %p7316_p7 = scmp.lt.s32.totalorder %s1011_s23, %s1011_s23 }
 0x10b   : > { %p7317_p8 = scmp.lt.s32.totalorder %s7308_s0, %s7308_s0 }
 0x10c   : > { %p7311_p1 = pnand %p7309_p0, %p7901_p6 }
 0x10d   : > { %p7318_p9 = por %p7317_p8, %p7316_p7 }
 0x10e   : > { %p7312_p4 = pneg %p7311_p1 }
 0x10f   : > { %6717 = dma.hbm_to_vmem [thread:$0]  (!%p7895_p5), %s8590_s15, 16, %s988_s22, [#allocation8]  }
 0x110   : > { %p7319_p2 = pnand %p7318_p9, %p7312_p4 }
 0x112   : > { %7322 = shalt.err (!%p7319_p2)
}
 0x113   : > { %s8591_s4 = sld [smem:[#allocation63_spill]]  ;;  %s7675_s22 = smov [#allocation15]  }
 0x114   : > { %s1035_s26 = sshll.u32 %s7675_s22, 4  ;;  %s7676_s18 = smov [#allocation18]   ;;  %s1036_s26 = int_to_ptr.vmem [resolvable:$true] %s1035_s26 }
 0x115   : > { %s1058_s3 = sshll.u32 %s7676_s18, 4  ;;  %s7334_s15 = scalar_lea.vmem %s1036_s26, 64  ;;  %s1059_s3 = int_to_ptr.vmem [resolvable:$true] %s1058_s3 }
 0x116   : > { %p7335_p3 = scmp.ne.s32.totalorder %s1036_s26, %s7334_s15  ;;  %p7342_p12 = scmp.lt.s32.totalorder %s1036_s26, %s1036_s26 }
 0x117   : > { %p7343_p13 = scmp.lt.s32.totalorder %s7334_s15, %s7334_s15 }
 0x118   : > { %p7337_p10 = pnand %p7335_p3, %p7901_p6 }
 0x119   : > { %6723 = dma.hbm_to_vmem [thread:$0]  (!%p7895_p5), %s8591_s4, 1536, %s1011_s23, [#allocation11], %s8585_s1, %s8585_s1, %s7658_s11  }
 0x11a   : > { %p7338_p11 = pneg %p7337_p10  ;;  %p7344_p0 = por %p7343_p13, %p7342_p12 }
 0x11c   : > { %p7345_p1 = pnand %p7344_p0, %p7338_p11 }
 0x11e   : > { %7348 = shalt.err (!%p7345_p1)
}
 0x11f   : > { %s8592_s0 = sld [smem:[#allocation64_spill]]  ;;  %s7360_s23 = scalar_lea.vmem %s1059_s3, 384 }
 0x120   : > { %p7361_p4 = scmp.ne.s32.totalorder %s1059_s3, %s7360_s23  ;;  %p7368_p9 = scmp.lt.s32.totalorder %s1059_s3, %s1059_s3 }
 0x121   : > { %p7369_p2 = scmp.lt.s32.totalorder %s7360_s23, %s7360_s23 }
 0x122   : > { %p7363_p7 = pnand %p7361_p4, %p7901_p6 }
 0x123   : > { %p7370_p3 = por %p7369_p2, %p7368_p9 }
 0x124   : > { %p7364_p8 = pneg %p7363_p7 }
 0x125   : > { %6729 = dma.hbm_to_vmem [thread:$0]  (!%p7895_p5), %s8592_s0, 64, %s1036_s26, [#allocation14]  }
 0x126   : > { %p7371_p10 = pnand %p7370_p3, %p7364_p8 }
 0x128   : > { %7374 = shalt.err (!%p7371_p10)
}
 0x129   : > { %s8593_s4 = sld [smem:[#allocation65_spill]]  ;;  %s7677_s22 = smov [#allocation21]  }
 0x12a   : > { %s1085_s26 = sshll.u32 %s7677_s22, 4  ;;  %s7678_s18 = smov [#allocation24]   ;;  %s1086_s26 = int_to_ptr.vmem [resolvable:$true] %s1085_s26 }
 0x12b   : > { %s1106_s15 = sshll.u32 %s7678_s18, 4  ;;  %s7386_s0 = scalar_lea.vmem %s1086_s26, 16  ;;  %s1107_s15 = int_to_ptr.vmem [resolvable:$true] %s1106_s15 }
 0x12c   : > { %p7387_p11 = scmp.ne.s32.totalorder %s1086_s26, %s7386_s0  ;;  %s7393_s23 = scalar_lea.vmem %s1086_s26, 32 }
 0x12d   : > { %p7394_p0 = scmp.lt.s32.totalorder %s1086_s26, %s1086_s26  ;;  %p7395_p1 = scmp.lt.s32.totalorder %s7393_s23, %s7386_s0 }
 0x12e   : > { %p7389_p12 = pnand %p7387_p11, %p7901_p6 }
 0x12f   : > { %6735 = dma.hbm_to_vmem [thread:$0]  (!%p7895_p5), %s8593_s4, 384, %s1059_s3, [#allocation17], %s8585_s1, %s8585_s1, %s7658_s11  }
 0x130   : > { %p7390_p13 = pneg %p7389_p12  ;;  %p7396_p4 = por %p7395_p1, %p7394_p0 }
 0x132   : > { %p7397_p7 = pnand %p7396_p4, %p7390_p13 }
 0x134   : > { %7400 = shalt.err (!%p7397_p7)
}
 0x135   : > { %s8594_s8 = sld [smem:[#allocation66_spill]]  ;;  %s7412_s3 = scalar_lea.vmem %s1107_s15, 512 }
 0x136   : > { %p7413_p8 = scmp.ne.s32.totalorder %s1107_s15, %s7412_s3  ;;  %p7420_p3 = scmp.lt.s32.totalorder %s1107_s15, %s1107_s15 }
 0x137   : > { %p7421_p10 = scmp.lt.s32.totalorder %s7412_s3, %s7412_s3 }
 0x138   : > { %p7415_p9 = pnand %p7413_p8, %p7901_p6 }
 0x139   : > { %p7422_p11 = por %p7421_p10, %p7420_p3 }
 0x13a   : > { %p7416_p2 = pneg %p7415_p9 }
 0x13b   : > { %6741 = dma.hbm_to_vmem [thread:$0]  (!%p7895_p5), %s8594_s8, 16, %s1086_s26, [#allocation20]  }
 0x13c   : > { %p7423_p12 = pnand %p7422_p11, %p7416_p2 }
 0x13e   : > { %7426 = shalt.err (!%p7423_p12)
}
 0x13f   : > { %s8595_s4 = sld [smem:[#allocation67_spill]]  ;;  %s7679_s8 = smov [#allocation27]  }
 0x140   : > { %s1136_s22 = sshll.u32 %s7679_s8, 4  ;;  %s7680_s26 = smov [#allocation30]   ;;  %s1137_s22 = int_to_ptr.vmem [resolvable:$true] %s1136_s22 }
 0x141   : > { %s1159_s18 = sshll.u32 %s7680_s26, 4  ;;  %s7438_s0 = scalar_lea.vmem %s1137_s22, 16  ;;  %s1160_s18 = int_to_ptr.vmem [resolvable:$true] %s1159_s18 }
 0x142   : > { %p7439_p13 = scmp.ne.s32.totalorder %s1137_s22, %s7438_s0  ;;  %s7445_s23 = scalar_lea.vmem %s1137_s22, 32 }
 0x143   : > { %p7446_p4 = scmp.lt.s32.totalorder %s1137_s22, %s1137_s22  ;;  %p7447_p7 = scmp.lt.s32.totalorder %s7445_s23, %s7438_s0 }
 0x144   : > { %p7441_p0 = pnand %p7439_p13, %p7901_p6 }
 0x145   : > { %6747 = dma.hbm_to_vmem [thread:$0]  (!%p7895_p5), %s8595_s4, 512, %s1107_s15, [#allocation23], %s8585_s1, %s8585_s1, %s7658_s11  }
 0x146   : > { %p7442_p1 = pneg %p7441_p0  ;;  %p7448_p8 = por %p7447_p7, %p7446_p4 }
 0x148   : > { %p7449_p9 = pnand %p7448_p8, %p7442_p1 }
 0x14a   : > { %7452 = shalt.err (!%p7449_p9)
}
 0x14b   : > { %s8596_s3 = sld [smem:[#allocation69_spill]]  ;;  %s7464_s15 = scalar_lea.vmem %s1160_s18, 1024 }
 0x14c   : > { %p7465_p2 = scmp.ne.s32.totalorder %s1160_s18, %s7464_s15  ;;  %p7472_p11 = scmp.lt.s32.totalorder %s1160_s18, %s1160_s18 }
 0x14d   : > { %p7473_p12 = scmp.lt.s32.totalorder %s7464_s15, %s7464_s15 }
 0x14e   : > { %p7467_p3 = pnand %p7465_p2, %p7901_p6 }
 0x14f   : > { %p7474_p13 = por %p7473_p12, %p7472_p11 }
 0x150   : > { %p7468_p10 = pneg %p7467_p3 }
 0x151   : > { %6753 = dma.hbm_to_vmem [thread:$0]  (!%p7895_p5), %s8596_s3, 16, %s1137_s22, [#allocation26]  }
 0x152   : > { %p7475_p0 = pnand %p7474_p13, %p7468_p10 }
 0x154   : > { %7478 = shalt.err (!%p7475_p0)
}
 0x155   : > { %s8597_s4 = sld [smem:[#allocation70_spill]]  ;;  %s7681_s8 = smov [#allocation33]  }
 0x156   : > { %s1186_s22 = sshll.u32 %s7681_s8, 4  ;;  %s7682_s26 = smov [#allocation36]   ;;  %s1187_s22 = int_to_ptr.vmem [resolvable:$true] %s1186_s22 }
 0x157   : > { %s1210_s0 = sshll.u32 %s7682_s26, 4  ;;  %s7490_s23 = scalar_lea.vmem %s1187_s22, 16  ;;  %s1211_s0 = int_to_ptr.vmem [resolvable:$true] %s1210_s0 }
 0x158   : > { %p7491_p1 = scmp.ne.s32.totalorder %s1187_s22, %s7490_s23  ;;  %s7497_s3 = scalar_lea.vmem %s1187_s22, 32 }
 0x159   : > { %p7498_p8 = scmp.lt.s32.totalorder %s1187_s22, %s1187_s22  ;;  %p7499_p9 = scmp.lt.s32.totalorder %s7497_s3, %s7490_s23 }
 0x15a   : > { %p7493_p4 = pnand %p7491_p1, %p7901_p6 }
 0x15b   : > { %6759 = dma.hbm_to_vmem [thread:$0]  (!%p7895_p5), %s8597_s4, 1024, %s1160_s18, [#allocation29], %s8585_s1, %s8585_s1, %s7658_s11  }
 0x15c   : > { %p7494_p7 = pneg %p7493_p4  ;;  %p7500_p2 = por %p7499_p9, %p7498_p8 }
 0x15e   : > { %p7501_p3 = pnand %p7500_p2, %p7494_p7 }
 0x160   : > { %7504 = shalt.err (!%p7501_p3)
}
 0x161   : > { %s8598_s15 = sld [smem:[#allocation71_spill]]  ;;  %s7516_s11 = scalar_lea.vmem %s1211_s0, 16 }
 0x162   : > { %p7517_p10 = scmp.ne.s32.totalorder %s1211_s0, %s7516_s11  ;;  %s7523_s1 = scalar_lea.vmem %s1211_s0, 32 }
 0x163   : > { %p7524_p13 = scmp.lt.s32.totalorder %s1211_s0, %s1211_s0  ;;  %p7525_p0 = scmp.lt.s32.totalorder %s7523_s1, %s7516_s11 }
 0x164   : > { %p7519_p11 = pnand %p7517_p10, %p7901_p6 }
 0x165   : > { %p7526_p1 = por %p7525_p0, %p7524_p13 }
 0x166   : > { %p7520_p12 = pneg %p7519_p11 }
 0x167   : > { %6765 = dma.hbm_to_vmem [thread:$0]  (!%p7895_p5), %s8598_s15, 16, %s1187_s22, [#allocation32]  }
 0x168   : > { %p7527_p4 = pnand %p7526_p1, %p7520_p12 }
 0x16a   : > { %7530 = shalt.err (!%p7527_p4)
}
 0x16b   : > { %s8599_s18 = sld [smem:[#allocation73_spill]]  ;;  %s7683_s4 = smov [#allocation39]  }
 0x16c   : > { %s1234_s8 = sshll.u32 %s7683_s4, 4  ;;  %s1235_s8 = int_to_ptr.vmem [resolvable:$true] %s1234_s8 }
 0x16d   : > { %s7542_s22 = scalar_lea.vmem %s1235_s8, 16  ;;  %s7549_s26 = scalar_lea.vmem %s1235_s8, 32 }
 0x16e   : > { %p7543_p7 = scmp.ne.s32.totalorder %s1235_s8, %s7542_s22  ;;  %p7550_p2 = scmp.lt.s32.totalorder %s1235_s8, %s1235_s8 }
 0x16f   : > { %p7551_p3 = scmp.lt.s32.totalorder %s7549_s26, %s7542_s22 }
 0x170   : > { %p7545_p8 = pnand %p7543_p7, %p7901_p6 }
 0x171   : > { %6771 = dma.hbm_to_vmem [thread:$0]  (!%p7895_p5), %s8599_s18, 16, %s1211_s0, [#allocation35]  }
 0x172   : > { %p7546_p9 = pneg %p7545_p8  ;;  %p7552_p10 = por %p7551_p3, %p7550_p2 }
 0x174   : > { %p7553_p11 = pnand %p7552_p10, %p7546_p9 }
 0x176   : > { %7556 = shalt.err (!%p7553_p11)
}
 0x177   : > { %s8600_s23 = sld [smem:[#allocation74_spill]]  ;;  %p8601_p12 = scmp.ne.s32.totalorder %s8581_s7, 0 }
 0x178   : > { %p8602_p13 = scmp.eq.s32.totalorder (!%p8601_p12), %s7882_s2, 0 }
 0x179   : > { %1255 = sbr.rel (%p8601_p12) target bundleno = 3806 (0xede), region = 152 }
 0x17d   : > { %6777 = dma.hbm_to_vmem [thread:$0]  (!%p7895_p5), %s8600_s23, 16, %s1235_s8, [#allocation38]  }
 0x17e   : > { %7562 = dma.done.wait (%p8602_p13), [#allocation3], 192   ;;  %p8603_p0 = pmov %p8602_p13 }
 0x180   : > { %7564 = vsyncadd (%p8603_p0), [#allocation3], 4294967104  ;;  %p8604_p6 = pmov %p8603_p0 }
 0x181   : > { %p8605_p1 = pmov %p8603_p0 }
 0x182   : > { %7566 = dma.done.wait (%p8604_p6), [#allocation5], 1632  }
 0x183   : > { %7568 = vsyncadd (%p8605_p1), [#allocation5], 4294965664  ;;  %p8606_p4 = pmov %p8603_p0 }
 0x184   : > { %p8607_p5 = pmov %p8603_p0 }
 0x185   : > { %7570 = dma.done.wait (%p8606_p4), [#allocation8], 272  }
 0x186   : > { %7572 = vsyncadd (%p8607_p5), [#allocation8], 4294967024  ;;  %p8608_p7 = pmov %p8603_p0 }
 0x187   : > { %p8609_p8 = pmov %p8603_p0 }
 0x188   : > { %7574 = dma.done.wait (%p8608_p7), [#allocation11], 1728  }
 0x189   : > { %7576 = vsyncadd (%p8609_p8), [#allocation11], 4294965568  ;;  %p8610_p9 = pmov %p8603_p0 }
 0x18a   : > { %p8611_p2 = pmov %p8603_p0 }
 0x18b   : > { %7578 = dma.done.wait (%p8610_p9), [#allocation14], 80  }
 0x18c   : > { %7580 = vsyncadd (%p8611_p2), [#allocation14], 4294967216  ;;  %p8612_p3 = pmov %p8603_p0 }
 0x18d   : > { %p8613_p10 = pmov %p8603_p0 }
 0x18e   : > { %7582 = dma.done.wait (%p8612_p3), [#allocation17], 640  }
 0x18f   : > { %7584 = vsyncadd (%p8613_p10), [#allocation17], 4294966656  ;;  %p8614_p11 = pmov %p8603_p0 }
 0x190   : > { %p8615_p12 = pmov %p8603_p0 }
 0x191   : > { %7586 = dma.done.wait (%p8614_p11), [#allocation20], 3088  }
 0x192   : > { %7588 = vsyncadd (%p8615_p12), [#allocation20], 4294964208  ;;  %p8616_p13 = pmov %p8603_p0 }
 0x194   : > { %7590 = dma.done.wait (%p8616_p13), [#allocation23], 640  }
 0x195   : > { %7592 = vsyncadd (%p8603_p0), [#allocation23], 4294966656  ;;  %p8617_p6 = pmov %p8603_p0 }
 0x196   : > { %p8618_p1 = pmov %p8603_p0 }
 0x197   : > { %7594 = dma.done.wait (%p8617_p6), [#allocation26], 3088  }
 0x198   : > { %7596 = vsyncadd (%p8618_p1), [#allocation26], 4294964208  ;;  %p8619_p4 = pmov %p8603_p0 }
 0x199   : > { %p8620_p5 = pmov %p8603_p0 }
 0x19a   : > { %7598 = dma.done.wait (%p8619_p4), [#allocation29], 1280  }
 0x19b   : > { %7600 = vsyncadd (%p8620_p5), [#allocation29], 4294966016  ;;  %p8621_p7 = pmov %p8603_p0 }
 0x19c   : > { %p8622_p8 = pmov %p8603_p0 }
 0x19d   : > { %7602 = dma.done.wait (%p8621_p7), [#allocation32], 528  }
 0x19e   : > { %7604 = vsyncadd (%p8622_p8), [#allocation32], 4294966768  ;;  %p8623_p9 = pmov %p8603_p0 }
 0x19f   : > { %p8624_p2 = pmov %p8603_p0 }
 0x1a0   : > { %7606 = dma.done.wait (%p8623_p9), [#allocation35], 1040  }
 0x1a1   : > { %7608 = vsyncadd (%p8624_p2), [#allocation35], 4294966256  ;;  %p8625_p3 = pmov %p8603_p0 }
 0x1a2   : > { %p8626_p10 = pmov %p8603_p0 }
 0x1a3   : > { %7610 = dma.done.wait (%p8625_p3), [#allocation38], 2064  }
 0x1a4   : > { %7612 = vsyncadd (%p8626_p10), [#allocation38], 4294965232  ;;  %s8627_s7 = sld [smem:[#allocation53_spill]]  ;;  %p1453_p11 = scmp.lt.s32.totalorder %s7882_s2, 1  ;;  %v7684_v0 = vmov 0.0   ;;  %vm7685_vm0 = vmmov 0  }
 0x1a5   : > { %s8628_s10 = sld [smem:[#allocation54_spill]]  ;;  %6082 = vmatprep.subr.mxu0 %v7684_v0  ;;  %6089 = vmatprep.subr.mxu1 %v7684_v0  ;;  %vm1478_vm1 = vcmask 130048   ;;  %vm1644_vm2 = vcmask 523264   ;;  %v1958_v54 = vld [vmem:[#allocation2] sm:$0xf]  ;;  %vm1959_vm3 = vcmask 64512  }
 0x1a6   : > { %s8636_s2 = smov (!%p1453_p11, %s7882_s2), 1  ;;  %s8629_s16 = sld [smem:[#allocation55_spill]]  ;;  %6086 = vmatprep.mubr.msk.f32.mxu0 %vm7685_vm0, %v7684_v0  ;;  %6093 = vmatprep.mubr.msk.f32.mxu1 %vm7685_vm0, %v7684_v0  ;;  %v2042_v55 = vld [vmem:[#allocation2 + $0x4] sm:$0xf]  ;;  %vm2443_vm4 = vcmask 1043456   ;;  %vm2439_vm5 = vcmask 31744  }
 0x1a7   : > { %s5834_s0 = sshll.u32 %s8636_s2, 4  ;;  %s8630_s15 = sld [smem:[#allocation57_spill]]  ;;  %vm2601_vm6 = vcmask 261120   ;;  %vm4957_vm7 = vcmask 123904   ;;  %vm3466_vm8 = vcmask 1041408   ;;  %vm3462_vm9 = vcmask 15360  }
 0x1a8   : > { %s8631_s11 = sld [smem:[#allocation56_spill]]  ;;  %s5718_s4 = sshll.u32 %s8636_s2, 1  ;;  %vm5043_vm10 = vcmask 257024  }
 0x1a9   : > { %s8632_s1 = sld [smem:[#allocation58_spill]]  ;;  %s1461_s8 = scalar_lea.vmem %s7859_s6, %s5718_s4 }
 0x1aa   : > { %s8143_s3 = scalar_lea.vmem %s8627_s7, %s5834_s0  ;;  %s8633_s18 = sld [smem:[#allocation61_spill]] }
 0x1ab   : > { %v8146_v1 = vld [vmem:[%s8143_s3 + $0x8] sm:$0xff]  ;;  %v8149_v2 = vld [vmem:[%s8143_s3] sm:$0xff]  ;;  %v5736_v25 = vld [vmem:[%s8628_s10 + $0x10] sm:$0xff]  ;;  %s8634_s22 = sld [smem:[#allocation68_spill]]  ;;  %s5719_s26 = sshll.u32 %s8636_s2, 2 }
 0x1ac   : > { %6083 = vmatpush3.msra.mxu0 %v8146_v1  ;;  %6090 = vmatpush3.msra.mxu1 %v8146_v1  ;;  %v1477_v3 = vld [vmem:[%s8628_s10] sm:$0xff]  ;;  %v5724_v4 = vld [vmem:[%s8628_s10 + $0x8] sm:$0xff]  ;;  %v5733_v5 = vld [vmem:[%s8629_s16 + $0x78] sm:$0xff]  ;;  %s1465_s23 = scalar_lea.vmem %s7864_s13, %s5719_s26  ;;  %s5720_s7 = sshll.u32 %s8636_s2, 3 }
 0x1ad   : > { %6084 = vmatprep.subr.mxu0 %v7684_v0  ;;  %6091 = vmatprep.subr.mxu1 %v7684_v0  ;;  %v1559_v6 = vld [vmem:[%s8629_s16 + $0x38] sm:$0xff]  ;;  %v5732_v7 = vld [vmem:[%s8629_s16 + $0x70] sm:$0xff]  ;;  %v5731_v9 = vld [vmem:[%s8629_s16 + $0x68] sm:$0xff] }
 0x1ae   : > { %6085 = vmatpush3.msra.mxu0 %v8149_v2  ;;  %6092 = vmatpush3.msra.mxu1 %v8149_v2  ;;  %v1558_v8 = vld [vmem:[%s8629_s16 + $0x30] sm:$0xff]  ;;  %v1557_v10 = vld [vmem:[%s8629_s16 + $0x28] sm:$0xff]  ;;  %v5730_v11 = vld [vmem:[%s8629_s16 + $0x60] sm:$0xff] }
 0x1af   : > { %6087 = vmatmul.mubr.msk.f32.vlgmr.msra.gmra.mxu0 %vm1478_vm1, %v1477_v3  ;;  %6094 = vmatmul.mubr.msk.f32.vlgmr.msra.gmra.mxu1 %vm1478_vm1, %v5724_v4  ;;  %v1556_v12 = vld [vmem:[%s8629_s16 + $0x20] sm:$0xff]  ;;  %v5729_v13 = vld [vmem:[%s8629_s16 + $0x58] sm:$0xff]  ;;  %v5728_v15 = vld [vmem:[%s8629_s16 + $0x50] sm:$0xff] }
 0x1b0   : > { %6096 = vmatprep.subr.mxu0 %v7684_v0  ;;  %6115 = vmatprep.subr.mxu1 %v7684_v0  ;;  %v1555_v14 = vld [vmem:[%s8629_s16 + $0x18] sm:$0xff]  ;;  %v1554_v16 = vld [vmem:[%s8629_s16 + $0x10] sm:$0xff]  ;;  %v5727_v17 = vld [vmem:[%s8629_s16 + $0x48] sm:$0xff] }
 0x1b1   : > { %6097 = vmatpush3.msra.mxu0 %v5733_v5  ;;  %6116 = vmatpush3.msra.mxu1 %v1559_v6  ;;  %v1553_v18 = vld [vmem:[%s8629_s16 + $0x8] sm:$0xff]  ;;  %v5726_v19 = vld [vmem:[%s8629_s16 + $0x40] sm:$0xff]  ;;  %v5745_v23 = vld [vmem:[%s8629_s16 + $0xb8] sm:$0xff] }
 0x1b2   : > { %6098 = vmatprep.subr.mxu0 %v7684_v0  ;;  %6117 = vmatprep.subr.mxu1 %v7684_v0  ;;  %v1552_v20 = vld [vmem:[%s8629_s16] sm:$0xff]  ;;  %v5744_v27 = vld [vmem:[%s8629_s16 + $0xb0] sm:$0xff]  ;;  %v5743_v28 = vld [vmem:[%s8629_s16 + $0xa8] sm:$0xff] }
 0x1b3   : > { %6099 = vmatpush3.msra.mxu0 %v5732_v7  ;;  %6118 = vmatpush3.msra.mxu1 %v1558_v8  ;;  %v5742_v29 = vld [vmem:[%s8629_s16 + $0xa0] sm:$0xff]  ;;  %v5741_v30 = vld [vmem:[%s8629_s16 + $0x98] sm:$0xff]  ;;  %v5740_v31 = vld [vmem:[%s8629_s16 + $0x90] sm:$0xff] }
 0x1b4   : > { %6100 = vmatprep.subr.mxu0 %v7684_v0  ;;  %6119 = vmatprep.subr.mxu1 %v7684_v0  ;;  %v5739_v32 = vld [vmem:[%s8629_s16 + $0x88] sm:$0xff]  ;;  %v5738_v33 = vld [vmem:[%s8629_s16 + $0x80] sm:$0xff]  ;;  %v2040_v41 = vld [vmem:[%s8630_s15 + $0x38] sm:$0xff] }
 0x1b5   : > { %6101 = vmatpush3.msra.mxu0 %v5731_v9  ;;  %6120 = vmatpush3.msra.mxu1 %v1557_v10  ;;  %v2039_v42 = vld [vmem:[%s8630_s15 + $0x30] sm:$0xff]  ;;  %v2038_v43 = vld [vmem:[%s8630_s15 + $0x28] sm:$0xff]  ;;  %v2037_v44 = vld [vmem:[%s8630_s15 + $0x20] sm:$0xff] }
 0x1b6   : > { %6102 = vmatprep.subr.mxu0 %v7684_v0  ;;  %6121 = vmatprep.subr.mxu1 %v7684_v0  ;;  %v2036_v45 = vld [vmem:[%s8630_s15 + $0x18] sm:$0xff]  ;;  %v2035_v46 = vld [vmem:[%s8630_s15 + $0x10] sm:$0xff]  ;;  %v2034_v47 = vld [vmem:[%s8630_s15 + $0x8] sm:$0xff] }
 0x1b7   : > { %6103 = vmatpush3.msra.mxu0 %v5730_v11  ;;  %6122 = vmatpush3.msra.mxu1 %v1556_v12  ;;  %v5747_v49 = vld [vmem:[%s8631_s11] ss:$0 sm:$0xff]  ;;  %v5757_v56 = vld [vmem:[%s8630_s15 + $0x78] sm:$0xff]  ;;  %v5756_v57 = vld [vmem:[%s8630_s15 + $0x70] sm:$0xff]  ;;  %s1474_s11 = scalar_lea.vmem %s7874_s5, %s5834_s0 }
 0x1b8   : > { %6104 = vmatprep.subr.mxu0 %v7684_v0  ;;  %6123 = vmatprep.subr.mxu1 %v7684_v0  ;;  %v5755_v58 = vld [vmem:[%s8630_s15 + $0x68] sm:$0xff]  ;;  %v5754_v59 = vld [vmem:[%s8630_s15 + $0x60] sm:$0xff]  ;;  %v5753_v60 = vld [vmem:[%s8630_s15 + $0x58] sm:$0xff] }
 0x1b9   : > { %6105 = vmatpush3.msra.mxu0 %v5729_v13  ;;  %6124 = vmatpush3.msra.mxu1 %v1555_v14  ;;  %v5752_v61 = vld [vmem:[%s8630_s15 + $0x50] sm:$0xff]  ;;  %v2033_v62 = vld [vmem:[%s8630_s15] sm:$0xff]  ;;  %v5751_v63 = vld [vmem:[%s8630_s15 + $0x48] sm:$0xff] }
 0x1ba   : > { %6106 = vmatprep.subr.mxu0 %v7684_v0  ;;  %6125 = vmatprep.subr.mxu1 %v7684_v0  ;;  %v2272_v6 = vld [vmem:[#allocation2 + $0x8] sm:$0xf]  ;;  %v5768_v7 = vld [vmem:[%s8630_s15 + $0xb8] sm:$0xff]  ;;  %v5767_v8 = vld [vmem:[%s8630_s15 + $0xb0] sm:$0xff] }
 0x1bb   : > { %6107 = vmatpush3.msra.mxu0 %v5728_v15  ;;  %6126 = vmatpush3.msra.mxu1 %v1554_v16  ;;  %v5766_v9 = vld [vmem:[%s8630_s15 + $0xa8] sm:$0xff]  ;;  %v5765_v10 = vld [vmem:[%s8630_s15 + $0xa0] sm:$0xff]  ;;  %v5764_v11 = vld [vmem:[%s8630_s15 + $0x98] sm:$0xff] }
 0x1bc   : > { %6108 = vmatprep.subr.mxu0 %v7684_v0  ;;  %6127 = vmatprep.subr.mxu1 %v7684_v0  ;;  %v5763_v12 = vld [vmem:[%s8630_s15 + $0x90] sm:$0xff]  ;;  %v5762_v13 = vld [vmem:[%s8630_s15 + $0x88] sm:$0xff]  ;;  %v5761_v14 = vld [vmem:[%s8630_s15 + $0x80] sm:$0xff] }
 0x1bd   : > { %6109 = vmatpush3.msra.mxu0 %v5727_v17  ;;  %6128 = vmatpush3.msra.mxu1 %v1553_v18 }
 0x1be   : > { %6110 = vmatprep.subr.mxu0 %v7684_v0  ;;  %6129 = vmatprep.subr.mxu1 %v7684_v0 }
 0x1bf   : > { %6112 = vmatprep.mubr.msk.f32.mxu0 %vm7685_vm0, %v7684_v0  ;;  %6131 = vmatprep.mubr.msk.f32.mxu1 %vm7685_vm0, %v7684_v0 }
 0x1c0   : > { %6111 = vmatpush3.msra.mxu0 %v5726_v19  ;;  %6130 = vmatpush3.msra.mxu1 %v1552_v20 }
 0x1c1   : > { %6134 = vmatprep.subr.mxu0 %v7684_v0  ;;  %6141 = vmatprep.subr.mxu1 %v7684_v0 }
 0x26f   : > { %v1548_v21 = vpop.f32.mrf.mxu0  ;;  %v1631_v22 = vpop.f32.mrf.mxu1 }
 0x270   : > { %6113 = vmatmul.mubr.msk.f32.vlgmr.msra.gmra.mxu0 %vm1644_vm2, %v1631_v22  ;;  %6132 = vmatmul.mubr.msk.f32.vlgmr.msra.gmra.mxu1 %vm1644_vm2, %v1548_v21 }
 0x271   : > { %v6095_v24 = vpop.f32.mrf.mxu1  ;;  %6135 = vmatpush3.msra.mxu0 %v8146_v1  ;;  %6138 = vmatprep.mubr.msk.f32.mxu0 %vm7685_vm0, %v7684_v0  ;;  %v6088_v26 = vpop.f32.mrf.mxu0  ;;  %v5750_v1 = vld [vmem:[%s8630_s15 + $0x40] sm:$0xff] }
 0x272   : > { %6136 = vmatprep.subr.mxu0 %v7684_v0  ;;  %6142 = vmatpush3.msra.mxu1 %v5745_v23  ;;  %v5770_v23 = vld [vmem:[%s8632_s1] ss:$0 sm:$0xff] }
 0x273   : > { %6137 = vmatpush3.msra.mxu0 %v8149_v2  ;;  %6143 = vmatprep.subr.mxu1 %v7684_v0 }
 0x274   : > { %6139 = vmatmul.mubr.msk.f32.vlgmr.msra.gmra.mxu0 %vm1478_vm1, %v5736_v25  ;;  %6144 = vmatpush3.msra.mxu1 %v5744_v27 }
 0x275   : > { %6145 = vmatprep.subr.mxu1 %v7684_v0  ;;  %6157 = vmatprep.mubr.msk.f32.mxu1 %vm7685_vm0, %v7684_v0 }
 0x276   : > { %6146 = vmatpush3.msra.mxu1 %v5743_v28  ;;  %6160 = vmatprep.subr.mxu0 %v7684_v0  ;;  %v2438_v28 = vld [vmem:[#allocation4] sm:$0x3] }
 0x277   : > { %6147 = vmatprep.subr.mxu1 %v7684_v0  ;;  %6162 = vmatprep.mubr.msk.f32.mxu0 %vm7685_vm0, %v7684_v0 }
 0x278   : > { %6148 = vmatpush3.msra.mxu1 %v5742_v29  ;;  %v2522_v29 = vld [vmem:[#allocation4 + $0x2] sm:$0x3] }
 0x279   : > { %6149 = vmatprep.subr.mxu1 %v7684_v0 }
 0x27a   : > { %6150 = vmatpush3.msra.mxu1 %v5741_v30  ;;  %v2600_v30 = vld [vmem:[#allocation6 + $0x38] sm:$0xff] }
 0x27b   : > { %6151 = vmatprep.subr.mxu1 %v7684_v0 }
 0x27c   : > { %6152 = vmatpush3.msra.mxu1 %v5740_v31  ;;  %v2599_v31 = vld [vmem:[#allocation6 + $0x30] sm:$0xff] }
 0x27d   : > { %6153 = vmatprep.subr.mxu1 %v7684_v0 }
 0x27e   : > { %6154 = vmatpush3.msra.mxu1 %v5739_v32  ;;  %v2598_v32 = vld [vmem:[#allocation6 + $0x28] sm:$0xff] }
 0x27f   : > { %6155 = vmatprep.subr.mxu1 %v7684_v0 }
 0x280   : > { %6156 = vmatpush3.msra.mxu1 %v5738_v33  ;;  %v2597_v33 = vld [vmem:[#allocation6 + $0x20] sm:$0xff] }
 0x281   : > { %6189 = vmatprep.subr.mxu1 %v7684_v0 }
 0x330   : > { %v1714_v34 = vpop.f32.mrf.mxu0  ;;  %v1787_v35 = vpop.f32.mrf.mxu1 }
 0x331   : > { %v1788_v36 = vadd.f32 %v1787_v35, %v1714_v34 }
 0x332   : > { %v6114_v37 = vpop.f32.mrf.mxu0  ;;  %v6133_v38 = vpop.f32.mrf.mxu1 }
 0x333   : > { %v2519_v38 = vld [vmem:[#allocation6 + $0x10] sm:$0xff] }
 0x334   : > { %v1862_v39 = vpop.f32.mrf.mxu0 }
 0x335   : > { %6158 = vmatmul.mubr.msk.f32.vlgmr.msra.gmra.mxu1 %vm1644_vm2, %v1862_v39 }
 0x336   : > { %v6140_v40 = vpop.f32.mrf.mxu0  ;;  %6205 = vmatprep.mubr.msk.f32.mxu1 %vm7685_vm0, %v7684_v0  ;;  %6190 = vmatpush3.msra.mxu1 %v2040_v41  ;;  %v2517_v41 = vld [vmem:[#allocation6] sm:$0xff] }
 0x337   : > { %6191 = vmatprep.subr.mxu1 %v7684_v0  ;;  %v2518_v40 = vld [vmem:[#allocation6 + $0x8] sm:$0xff] }
 0x338   : > { %6192 = vmatpush3.msra.mxu1 %v2039_v42  ;;  %v2749_v42 = vld [vmem:[#allocation4 + $0x4] sm:$0x3] }
 0x339   : > { %6193 = vmatprep.subr.mxu1 %v7684_v0 }
 0x33a   : > { %6194 = vmatpush3.msra.mxu1 %v2038_v43  ;;  %v2827_v43 = vld [vmem:[#allocation6 + $0x58] sm:$0xff] }
 0x33b   : > { %6195 = vmatprep.subr.mxu1 %v7684_v0 }
 0x33c   : > { %6196 = vmatpush3.msra.mxu1 %v2037_v44  ;;  %v2826_v44 = vld [vmem:[#allocation6 + $0x50] sm:$0xff] }
 0x33d   : > { %6197 = vmatprep.subr.mxu1 %v7684_v0 }
 0x33e   : > { %6198 = vmatpush3.msra.mxu1 %v2036_v45  ;;  %v2825_v45 = vld [vmem:[#allocation6 + $0x48] sm:$0xff] }
 0x33f   : > { %6199 = vmatprep.subr.mxu1 %v7684_v0 }
 0x340   : > { %6200 = vmatpush3.msra.mxu1 %v2035_v46  ;;  %v2824_v46 = vld [vmem:[#allocation6 + $0x40] sm:$0xff] }
 0x341   : > { %6201 = vmatprep.subr.mxu1 %v7684_v0 }
 0x342   : > { %6202 = vmatpush3.msra.mxu1 %v2034_v47 }
 0x343   : > { %6203 = vmatprep.subr.mxu1 %v7684_v0 }
 0x344   : > { %6204 = vmatpush3.msra.mxu1 %v2033_v62 }
 0x345   : > { %6232 = vmatprep.subr.mxu1 %v7684_v0 }
 0x3f5   : > { %v1944_v48 = vpop.f32.mrf.mxu1 }
 0x3f6   : > { %v1948_v50 = vadd.f32 %v1944_v48, %v1788_v36  ;;  %v2520_v36 = vld [vmem:[#allocation6 + $0x18] sm:$0xff] }
 0x3f7   : > { %v6159_v51 = vpop.f32.mrf.mxu1 }
 0x3f8   : > { %v1956_v52 = vadd.f32 %v5747_v49, %v1948_v50 }
 0x3fa   : > { %v8247_v53 = vmax.f32 %v1956_v52, 0.0 }
 0x3fc   : > { %6161 = vmatpush3.msra.mxu0 %v8247_v53 }
 0x3fd   : > { %6163 = vmatmul.mubr.msk.f32.vlgmr.msra.gmra.mxu0 %vm1959_vm3, %v1958_v54  ;;  %6165 = vmatprep.subr.mxu0 %v7684_v0 }
 0x3fe   : > { %6166 = vmatpush3.msra.mxu0 %v8247_v53  ;;  %6167 = vmatprep.mubr.msk.f32.mxu0 %vm7685_vm0, %v7684_v0 }
 0x3ff   : > { %6170 = vmatprep.subr.mxu0 %v7684_v0 }
 0x401   : > { %6168 = vmatmul.mubr.msk.f32.vlgmr.msra.gmra.mxu0 %vm1959_vm3, %v2042_v55  ;;  %v3073_v55 = vld [vmem:[#allocation10 + $0x4] sm:$0xf] }
 0x402   : > { %6171 = vmatpush3.msra.mxu0 %v5757_v56  ;;  %6186 = vmatprep.mubr.msk.f32.mxu0 %vm7685_vm0, %v7684_v0  ;;  %v2912_v56 = vld [vmem:[#allocation7 + $0x8] sm:$0xff] }
 0x403   : > { %6172 = vmatprep.subr.mxu0 %v7684_v0 }
 0x404   : > { %6173 = vmatpush3.msra.mxu0 %v5756_v57  ;;  %v2911_v57 = vld [vmem:[#allocation7] sm:$0xff] }
 0x405   : > { %6174 = vmatprep.subr.mxu0 %v7684_v0 }
 0x406   : > { %6175 = vmatpush3.msra.mxu0 %v5755_v58  ;;  %v3071_v58 = vld [vmem:[#allocation12 + $0x18] sm:$0xff] }
 0x407   : > { %6176 = vmatprep.subr.mxu0 %v7684_v0 }
 0x408   : > { %6177 = vmatpush3.msra.mxu0 %v5754_v59 }
 0x409   : > { %6178 = vmatprep.subr.mxu0 %v7684_v0 }
 0x40a   : > { %6179 = vmatpush3.msra.mxu0 %v5753_v60  ;;  %v5780_v60 = vld [vmem:[%s8633_s18] ss:$0 sm:$0xff] }
 0x40b   : > { %6180 = vmatprep.subr.mxu0 %v7684_v0 }
 0x40c   : > { %6181 = vmatpush3.msra.mxu0 %v5752_v61 }
 0x40d   : > { %6182 = vmatprep.subr.mxu0 %v7684_v0 }
 0x40e   : > { %6183 = vmatpush3.msra.mxu0 %v5751_v63 }
 0x40f   : > { %6184 = vmatprep.subr.mxu0 %v7684_v0 }
 0x410   : > { %6185 = vmatpush3.msra.mxu0 %v5750_v1 }
 0x411   : > { %6208 = vmatprep.subr.mxu0 %v7684_v0 }
 0x4bd   : > { %v2029_v2 = vpop.f32.mrf.mxu0 }
 0x4be   : > { %6206 = vmatmul.mubr.msk.f32.vlgmr.msra.gmra.mxu1 %vm1644_vm2, %v2029_v2 }
 0x4bf   : > { %v6164_v3 = vpop.f32.mrf.mxu0  ;;  %6234 = vmatprep.mubr.msk.f32.mxu1 %vm7685_vm0, %v7684_v0 }
 0x4c1   : > { %v2112_v4 = vpop.f32.mrf.mxu0 }
 0x4c2   : > { %6187 = vmatmul.mubr.msk.f32.vlgmr.msra.gmra.mxu0 %vm1644_vm2, %v2112_v4  ;;  %v2994_v4 = vld [vmem:[#allocation10] sm:$0xf] }
 0x4c3   : > { %6209 = vmatpush3.msra.mxu0 %v8247_v53  ;;  %v6169_v5 = vpop.f32.mrf.mxu0  ;;  %6210 = vmatprep.mubr.msk.f32.mxu0 %vm7685_vm0, %v7684_v0 }
 0x4c4   : > { %6213 = vmatprep.subr.mxu0 %v7684_v0  ;;  %v3151_v5 = vld [vmem:[#allocation12 + $0x38] sm:$0xff] }
 0x4c6   : > { %6211 = vmatmul.mubr.msk.f32.vlgmr.msra.gmra.mxu0 %vm1959_vm3, %v2272_v6  ;;  %v3150_v6 = vld [vmem:[#allocation12 + $0x30] sm:$0xff] }
 0x4c7   : > { %6214 = vmatpush3.msra.mxu0 %v5768_v7  ;;  %6229 = vmatprep.mubr.msk.f32.mxu0 %vm7685_vm0, %v7684_v0  ;;  %v3149_v7 = vld [vmem:[#allocation12 + $0x28] sm:$0xff] }
 0x4c8   : > { %6215 = vmatprep.subr.mxu0 %v7684_v0 }
 0x4c9   : > { %6216 = vmatpush3.msra.mxu0 %v5767_v8  ;;  %v3148_v8 = vld [vmem:[#allocation12 + $0x20] sm:$0xff] }
 0x4ca   : > { %6217 = vmatprep.subr.mxu0 %v7684_v0 }
 0x4cb   : > { %6218 = vmatpush3.msra.mxu0 %v5766_v9  ;;  %v3299_v9 = vld [vmem:[#allocation10 + $0x8] sm:$0xf] }
 0x4cc   : > { %6219 = vmatprep.subr.mxu0 %v7684_v0 }
 0x4cd   : > { %6220 = vmatpush3.msra.mxu0 %v5765_v10  ;;  %v3070_v10 = vld [vmem:[#allocation12 + $0x10] sm:$0xff] }
 0x4ce   : > { %6221 = vmatprep.subr.mxu0 %v7684_v0 }
 0x4cf   : > { %6222 = vmatpush3.msra.mxu0 %v5764_v11  ;;  %v3069_v11 = vld [vmem:[#allocation12 + $0x8] sm:$0xff] }
 0x4d0   : > { %6223 = vmatprep.subr.mxu0 %v7684_v0 }
 0x4d1   : > { %6224 = vmatpush3.msra.mxu0 %v5763_v12  ;;  %v3068_v12 = vld [vmem:[#allocation12] sm:$0xff] }
 0x4d2   : > { %6225 = vmatprep.subr.mxu0 %v7684_v0 }
 0x4d3   : > { %6226 = vmatpush3.msra.mxu0 %v5762_v13  ;;  %v5781_v13 = vld [vmem:[#allocation9] ss:$0 sm:$0xff] }
 0x4d4   : > { %6227 = vmatprep.subr.mxu0 %v7684_v0 }
 0x4d5   : > { %6228 = vmatpush3.msra.mxu0 %v5761_v14 }
 0x4d6   : > { %6280 = vmatprep.subr.mxu0 %v7684_v0 }
 0x57e   : > { %v2267_v15 = vpop.f32.mrf.mxu1 }
 0x580   : > { %v6207_v16 = vpop.f32.mrf.mxu1 }
 0x582   : > { %v2194_v17 = vpop.f32.mrf.mxu0 }
 0x583   : > { %v2268_v18 = vadd.f32 %v2267_v15, %v2194_v17 }
 0x584   : > { %v6188_v19 = vpop.f32.mrf.mxu0 }
 0x585   : > { %v3377_v19 = vld [vmem:[#allocation12 + $0x58] sm:$0xff] }
 0x586   : > { %v2342_v20 = vpop.f32.mrf.mxu0 }
 0x587   : > { %6230 = vmatmul.mubr.msk.f32.vlgmr.msra.gmra.mxu0 %vm1644_vm2, %v2342_v20 }
 0x588   : > { %v6212_v21 = vpop.f32.mrf.mxu0  ;;  %6284 = vmatprep.mubr.msk.f32.mxu0 %vm7685_vm0, %v7684_v0  ;;  %6281 = vmatpush3.msra.mxu0 %v2912_v56  ;;  %v3691_v56 = vld [vmem:[#allocation19 + $0x8] sm:$0xff] }
 0x589   : > { %6282 = vmatprep.subr.mxu0 %v7684_v0  ;;  %v3376_v21 = vld [vmem:[#allocation12 + $0x50] sm:$0xff] }
 0x58a   : > { %6283 = vmatpush3.msra.mxu0 %v2911_v57  ;;  %v3690_v57 = vld [vmem:[#allocation19] sm:$0xff] }
 0x58b   : > { %6287 = vmatprep.subr.mxu0 %v7684_v0 }
 0x647   : > { %v2424_v22 = vpop.f32.mrf.mxu0 }
 0x648   : > { %v2428_v24 = vadd.f32 %v2424_v22, %v2268_v18  ;;  %v3461_v18 = vld [vmem:[#allocation15] sm:$0xf] }
 0x649   : > { %v6231_v25 = vpop.f32.mrf.mxu0 }
 0x64a   : > { %v2436_v26 = vadd.f32 %v5770_v23, %v2428_v24  ;;  %v3541_v23 = vld [vmem:[#allocation16 + $0x8] sm:$0xff]  ;;  %v3374_v25 = vld [vmem:[#allocation12 + $0x40] sm:$0xff] }
 0x64b   : > { %v3375_v24 = vld [vmem:[#allocation12 + $0x48] sm:$0xff] }
 0x64c   : > { %v8308_v27 = vmax.f32 %v2436_v26, 0.0 }
 0x64e   : > { %6233 = vmatpush3.msk.msra.mxu1 %vm2443_vm4, %v8308_v27 }
 0x64f   : > { %6235 = vmatmul.mubr.msk.f32.vlgmr.msra.gmra.mxu1 %vm2439_vm5, %v2438_v28  ;;  %6237 = vmatprep.subr.mxu1 %v7684_v0 }
 0x650   : > { %6238 = vmatpush3.msk.msra.mxu1 %vm2443_vm4, %v8308_v27  ;;  %6239 = vmatprep.mubr.msk.f32.mxu1 %vm7685_vm0, %v7684_v0 }
 0x651   : > { %6242 = vmatprep.subr.mxu1 %v7684_v0 }
 0x653   : > { %6240 = vmatmul.mubr.msk.f32.vlgmr.msra.gmra.mxu1 %vm2439_vm5, %v2522_v29 }
 0x654   : > { %6243 = vmatpush3.msra.mxu1 %v2600_v30  ;;  %6250 = vmatprep.mubr.msk.f32.mxu1 %vm7685_vm0, %v7684_v0  ;;  %v3540_v30 = vld [vmem:[#allocation16] sm:$0xff] }
 0x655   : > { %6244 = vmatprep.subr.mxu1 %v7684_v0 }
 0x656   : > { %6245 = vmatpush3.msra.mxu1 %v2599_v31  ;;  %v3616_v31 = vld [vmem:[#allocation18] sm:$0xff] }
 0x657   : > { %6246 = vmatprep.subr.mxu1 %v7684_v0 }
 0x658   : > { %6247 = vmatpush3.msra.mxu1 %v2598_v32  ;;  %v3781_v32 = vld [vmem:[#allocation19 + $0x78] sm:$0xff] }
 0x659   : > { %6248 = vmatprep.subr.mxu1 %v7684_v0 }
 0x65a   : > { %6249 = vmatpush3.msra.mxu1 %v2597_v33  ;;  %v3780_v33 = vld [vmem:[#allocation19 + $0x70] sm:$0xff] }
 0x65b   : > { %6253 = vmatprep.subr.mxu1 %v7684_v0 }
 0x70f   : > { %v2513_v34 = vpop.f32.mrf.mxu1 }
 0x711   : > { %v6236_v35 = vpop.f32.mrf.mxu1 }
 0x712   : > { %v3778_v35 = vld [vmem:[#allocation19 + $0x60] sm:$0xff] }
 0x713   : > { %v2592_v37 = vpop.f32.mrf.mxu1 }
 0x714   : > { %6251 = vmatmul.mubr.msk.f32.vlgmr.msra.gmra.mxu1 %vm2601_vm6, %v2592_v37  ;;  %v3776_v37 = vld [vmem:[#allocation19 + $0x50] sm:$0xff] }
 0x715   : > { %6254 = vmatpush3.msra.mxu1 %v2520_v36  ;;  %v6241_v39 = vpop.f32.mrf.mxu1  ;;  %6261 = vmatprep.mubr.msk.f32.mxu1 %vm7685_vm0, %v7684_v0  ;;  %v3777_v36 = vld [vmem:[#allocation19 + $0x58] sm:$0xff] }
 0x716   : > { %6255 = vmatprep.subr.mxu1 %v7684_v0 }
 0x717   : > { %6256 = vmatpush3.msra.mxu1 %v2519_v38 }
 0x718   : > { %6257 = vmatprep.subr.mxu1 %v7684_v0 }
 0x719   : > { %6258 = vmatpush3.msra.mxu1 %v2518_v40 }
 0x71a   : > { %6259 = vmatprep.subr.mxu1 %v7684_v0 }
 0x71b   : > { %6260 = vmatpush3.msra.mxu1 %v2517_v41 }
 0x71c   : > { %6262 = vmatmul.mubr.msk.f32.vlgmr.msra.gmra.mxu1 %vm2601_vm6, %v2513_v34  ;;  %6264 = vmatprep.subr.mxu1 %v7684_v0  ;;  %v3779_v34 = vld [vmem:[#allocation19 + $0x68] sm:$0xff] }
 0x71d   : > { %6265 = vmatpush3.msk.msra.mxu1 %vm2443_vm4, %v8308_v27  ;;  %6266 = vmatprep.mubr.msk.f32.mxu1 %vm7685_vm0, %v7684_v0 }
 0x71e   : > { %6269 = vmatprep.subr.mxu1 %v7684_v0 }
 0x720   : > { %6267 = vmatmul.mubr.msk.f32.vlgmr.msra.gmra.mxu1 %vm2439_vm5, %v2749_v42  ;;  %v3699_v42 = vld [vmem:[#allocation18 + $0x8] sm:$0xff] }
 0x721   : > { %6277 = vmatprep.mubr.msk.f32.mxu1 %vm7685_vm0, %v7684_v0  ;;  %6270 = vmatpush3.msra.mxu1 %v2827_v43  ;;  %v3697_v43 = vld [vmem:[#allocation19 + $0x38] sm:$0xff] }
 0x722   : > { %6271 = vmatprep.subr.mxu1 %v7684_v0 }
 0x723   : > { %6272 = vmatpush3.msra.mxu1 %v2826_v44  ;;  %v3696_v44 = vld [vmem:[#allocation19 + $0x30] sm:$0xff] }
 0x724   : > { %6273 = vmatprep.subr.mxu1 %v7684_v0 }
 0x725   : > { %6274 = vmatpush3.msra.mxu1 %v2825_v45  ;;  %v3695_v45 = vld [vmem:[#allocation19 + $0x28] sm:$0xff] }
 0x726   : > { %6275 = vmatprep.subr.mxu1 %v7684_v0 }
 0x727   : > { %6276 = vmatpush3.msra.mxu1 %v2824_v46  ;;  %v3694_v46 = vld [vmem:[#allocation19 + $0x20] sm:$0xff] }
 0x728   : > { %6292 = vmatprep.subr.mxu1 %v7684_v0 }
 0x7d4   : > { %v2671_v47 = vpop.f32.mrf.mxu1 }
 0x7d6   : > { %v6252_v48 = vpop.f32.mrf.mxu1 }
 0x7dc   : > { %v2744_v49 = vpop.f32.mrf.mxu1 }
 0x7dd   : > { %v2745_v50 = vadd.f32 %v2744_v49, %v2671_v47 }
 0x7de   : > { %v6263_v51 = vpop.f32.mrf.mxu1 }
 0x7df   : > { %v3693_v51 = vld [vmem:[#allocation19 + $0x18] sm:$0xff] }
 0x7e0   : > { %v2819_v52 = vpop.f32.mrf.mxu1 }
 0x7e1   : > { %6278 = vmatmul.mubr.msk.f32.vlgmr.msra.gmra.mxu1 %vm2601_vm6, %v2819_v52  ;;  %v3775_v52 = vld [vmem:[#allocation19 + $0x48] sm:$0xff] }
 0x7e2   : > { %6293 = vmatpush3.msk.msra.mxu1 %vm2443_vm4, %v8308_v27  ;;  %v6268_v54 = vpop.f32.mrf.mxu1  ;;  %6294 = vmatprep.mubr.msk.f32.mxu1 %vm7685_vm0, %v7684_v0 }
 0x7e3   : > { %6308 = vmatprep.subr.mxu1 %v7684_v0  ;;  %v3692_v54 = vld [vmem:[#allocation19 + $0x10] sm:$0xff] }
 0x7e5   : > { %6295 = vmatmul.mubr.msk.f32.vlgmr.msra.gmra.mxu1 %vm2439_vm5, %v3073_v55  ;;  %v3774_v55 = vld [vmem:[#allocation19 + $0x40] sm:$0xff] }
 0x7e6   : > { %6316 = vmatprep.mubr.msk.f32.mxu1 %vm7685_vm0, %v7684_v0  ;;  %6309 = vmatpush3.msra.mxu1 %v3071_v58 }
 0x7e7   : > { %6310 = vmatprep.subr.mxu1 %v7684_v0 }
 0x7e8   : > { %6311 = vmatpush3.msra.mxu1 %v3070_v10 }
 0x7e9   : > { %6312 = vmatprep.subr.mxu1 %v7684_v0 }
 0x7ea   : > { %6313 = vmatpush3.msra.mxu1 %v3069_v11  ;;  %v4095_v11 = vld [vmem:[#allocation22] sm:$0xff] }
 0x7eb   : > { %6314 = vmatprep.subr.mxu1 %v7684_v0 }
 0x7ec   : > { %6315 = vmatpush3.msra.mxu1 %v3068_v12  ;;  %v4005_v12 = vld [vmem:[#allocation19 + $0x88] sm:$0xff] }
 0x7ed   : > { %6324 = vmatprep.subr.mxu1 %v7684_v0 }
 0x8a1   : > { %v2897_v59 = vpop.f32.mrf.mxu1 }
 0x8a2   : > { %v2901_v61 = vadd.f32 %v2897_v59, %v2745_v50 }
 0x8a3   : > { %v6279_v62 = vpop.f32.mrf.mxu1 }
 0x8a4   : > { %v2909_v63 = vadd.f32 %v5780_v60, %v2901_v61  ;;  %v4011_v60 = vld [vmem:[#allocation19 + $0xb8] sm:$0xff]  ;;  %v4010_v61 = vld [vmem:[#allocation19 + $0xb0] sm:$0xff]  ;;  %v4009_v62 = vld [vmem:[#allocation19 + $0xa8] sm:$0xff] }
 0x8a5   : > { %v3143_v1 = vpop.f32.mrf.mxu1 }
 0x8a6   : > { %v2910_v2 = vmax.f32 %v2909_v63, 0.0  ;;  %v4008_v63 = vld [vmem:[#allocation19 + $0xa0] sm:$0xff] }
 0x8a7   : > { %v6296_v3 = vpop.f32.mrf.mxu1 }
 0x8a8   : > { %6285 = vmatmul.mubr.msk.f32.vlgmr.msra.gmra.mxu0 %vm1478_vm1, %v2910_v2  ;;  %v5792_v2 = vld [vmem:[#allocation13] ss:$0 sm:$0xff] }
 0x8a9   : > { %6288 = vmatpush3.msk.msra.mxu0 %vm2443_vm4, %v8308_v27  ;;  %6289 = vmatprep.mubr.msk.f32.mxu0 %vm7685_vm0, %v7684_v0 }
 0x8aa   : > { %6297 = vmatprep.subr.mxu0 %v7684_v0 }
 0x8ac   : > { %6290 = vmatmul.mubr.msk.f32.vlgmr.msra.gmra.mxu0 %vm2439_vm5, %v2994_v4 }
 0x8ad   : > { %6298 = vmatpush3.msra.mxu0 %v3151_v5  ;;  %6305 = vmatprep.mubr.msk.f32.mxu0 %vm7685_vm0, %v7684_v0 }
 0x8ae   : > { %6299 = vmatprep.subr.mxu0 %v7684_v0 }
 0x8af   : > { %6300 = vmatpush3.msra.mxu0 %v3150_v6 }
 0x8b0   : > { %6301 = vmatprep.subr.mxu0 %v7684_v0 }
 0x8b1   : > { %6302 = vmatpush3.msra.mxu0 %v3149_v7 }
 0x8b2   : > { %6303 = vmatprep.subr.mxu0 %v7684_v0 }
 0x8b3   : > { %6304 = vmatpush3.msra.mxu0 %v3148_v8 }
 0x8b4   : > { %6306 = vmatmul.mubr.msk.f32.vlgmr.msra.gmra.mxu0 %vm2601_vm6, %v3143_v1  ;;  %6319 = vmatprep.subr.mxu0 %v7684_v0  ;;  %v4007_v1 = vld [vmem:[#allocation19 + $0x98] sm:$0xff] }
 0x8b5   : > { %6320 = vmatpush3.msk.msra.mxu0 %vm2443_vm4, %v8308_v27  ;;  %6321 = vmatprep.mubr.msk.f32.mxu0 %vm7685_vm0, %v7684_v0 }
 0x8b6   : > { %6335 = vmatprep.subr.mxu0 %v7684_v0 }
 0x8b8   : > { %6322 = vmatmul.mubr.msk.f32.vlgmr.msra.gmra.mxu0 %vm2439_vm5, %v3299_v9  ;;  %v3929_v9 = vld [vmem:[#allocation18 + $0x10] sm:$0xff] }
 0x8b9   : > { %6337 = vmatprep.mubr.msk.f32.mxu0 %vm7685_vm0, %v7684_v0 }
 0x968   : > { %v2989_v14 = vpop.f32.mrf.mxu0 }
 0x969   : > { %v2990_v15 = vadd.f32 %v5781_v13, %v2989_v14  ;;  %v4175_v13 = vld [vmem:[#allocation24 + $0x18] sm:$0xff] }
 0x96a   : > { %v6286_v16 = vpop.f32.mrf.mxu0 }
 0x96b   : > { %v2993_v17 = vmax.f32 %v2990_v15, 0.0  ;;  %v4004_v15 = vld [vmem:[#allocation19 + $0x80] sm:$0xff] }
 0x96c   : > { %v3064_v20 = vpop.f32.mrf.mxu0  ;;  %v4174_v16 = vld [vmem:[#allocation24 + $0x10] sm:$0xff] }
 0x96d   : > { %4958 = vst.msk [vmem:[%s1461_s8] sm:$0x3] %vm4957_vm7, %v2993_v17  ;;  %6317 = vmatmul.mubr.msk.f32.vlgmr.msra.gmra.mxu1 %vm2601_vm6, %v3064_v20  ;;  %6336 = vmatpush3.msk.msra.mxu0 %vm3466_vm8, %v2993_v17  ;;  %v4172_v20 = vld [vmem:[#allocation24] sm:$0xff] }
 0x96e   : > { %6338 = vmatmul.mubr.msk.f32.vlgmr.msra.gmra.mxu0 %vm3462_vm9, %v3461_v18  ;;  %6325 = vmatpush3.msra.mxu1 %v3377_v19  ;;  %v6291_v22 = vpop.f32.mrf.mxu0  ;;  %v8461_v18 = vld [vmem:[%s8143_s3 + $0x8] sm:$0xff]  ;;  %v4173_v19 = vld [vmem:[#allocation24 + $0x8] sm:$0xff] }
 0x96f   : > { %6326 = vmatprep.subr.mxu1 %v7684_v0  ;;  %6332 = vmatprep.mubr.msk.f32.mxu1 %vm7685_vm0, %v7684_v0 }
 0x970   : > { %6327 = vmatpush3.msra.mxu1 %v3376_v21  ;;  %6340 = vmatprep.subr.mxu0 %v7684_v0 }
 0x971   : > { %6328 = vmatprep.subr.mxu1 %v7684_v0  ;;  %6341 = vmatpush3.msra.mxu0 %v3541_v23  ;;  %v5808_v23 = vld [vmem:[%s8634_s22 + $0x10] sm:$0xff] }
 0x972   : > { %6329 = vmatpush3.msra.mxu1 %v3375_v24  ;;  %6342 = vmatprep.subr.mxu0 %v7684_v0 }
 0x973   : > { %6330 = vmatprep.subr.mxu1 %v7684_v0  ;;  %6344 = vmatprep.mubr.msk.f32.mxu0 %vm7685_vm0, %v7684_v0 }
 0x974   : > { %v3221_v26 = vpop.f32.mrf.mxu0  ;;  %6331 = vmatpush3.msra.mxu1 %v3374_v25  ;;  %6343 = vmatpush3.msra.mxu0 %v3540_v30  ;;  %v4340_v30 = vld [vmem:[#allocation25 + $0x38] sm:$0xff] }
 0x975   : > { %6347 = vmatprep.subr.mxu1 %v7684_v0  ;;  %6352 = vmatprep.subr.mxu0 %v7684_v0 }
 0x976   : > { %v6307_v27 = vpop.f32.mrf.mxu0 }
 0x977   : > { %v8474_v27 = vld [vmem:[%s8143_s3] sm:$0xff]  ;;  %s1469_s3 = scalar_lea.vmem %s7869_s24, %s5720_s7 }
 0x978   : > { %v3369_v28 = vpop.f32.mrf.mxu0 }
 0x979   : > { %6333 = vmatmul.mubr.msk.f32.vlgmr.msra.gmra.mxu1 %vm2601_vm6, %v3369_v28  ;;  %v4250_v28 = vld [vmem:[%s8634_s22] sm:$0xff] }
 0x97a   : > { %6348 = vmatpush3.msra.mxu1 %v8247_v53  ;;  %v6323_v29 = vpop.f32.mrf.mxu0  ;;  %6349 = vmatprep.mubr.msk.f32.mxu1 %vm7685_vm0, %v7684_v0 }
 0x97b   : > { %6357 = vmatprep.subr.mxu1 %v7684_v0 }
 0x97d   : > { %6350 = vmatmul.mubr.msk.f32.vlgmr.msra.gmra.mxu1 %vm1959_vm3, %v3616_v31  ;;  %v4251_v31 = vld [vmem:[%s8634_s22 + $0x8] sm:$0xff] }
 0x97e   : > { %6373 = vmatprep.mubr.msk.f32.mxu1 %vm7685_vm0, %v7684_v0  ;;  %6358 = vmatpush3.msra.mxu1 %v3781_v32 }
 0x97f   : > { %6359 = vmatprep.subr.mxu1 %v7684_v0 }
 0x980   : > { %6360 = vmatpush3.msra.mxu1 %v3780_v33  ;;  %v4433_v33 = vld [vmem:[#allocation25 + $0x78] sm:$0xff] }
 0x981   : > { %6361 = vmatprep.subr.mxu1 %v7684_v0 }
 0x982   : > { %6362 = vmatpush3.msra.mxu1 %v3779_v34  ;;  %v4339_v34 = vld [vmem:[#allocation25 + $0x30] sm:$0xff] }
 0x983   : > { %6363 = vmatprep.subr.mxu1 %v7684_v0 }
 0x984   : > { %6364 = vmatpush3.msra.mxu1 %v3778_v35  ;;  %v4432_v35 = vld [vmem:[#allocation25 + $0x70] sm:$0xff] }
 0x985   : > { %6365 = vmatprep.subr.mxu1 %v7684_v0 }
 0x986   : > { %6366 = vmatpush3.msra.mxu1 %v3777_v36  ;;  %v4431_v36 = vld [vmem:[#allocation25 + $0x68] sm:$0xff] }
 0x987   : > { %6367 = vmatprep.subr.mxu1 %v7684_v0 }
 0x988   : > { %6368 = vmatpush3.msra.mxu1 %v3776_v37  ;;  %v4430_v37 = vld [vmem:[#allocation25 + $0x60] sm:$0xff] }
 0x989   : > { %6369 = vmatprep.subr.mxu1 %v7684_v0 }
 0x98a   : > { %6370 = vmatpush3.msra.mxu1 %v3775_v52 }
 0x98b   : > { %6371 = vmatprep.subr.mxu1 %v7684_v0 }
 0x98c   : > { %6372 = vmatpush3.msra.mxu1 %v3774_v55 }
 0x98d   : > { %6395 = vmatprep.subr.mxu1 %v7684_v0 }
 0xa2d   : > { %v3294_v38 = vpop.f32.mrf.mxu1 }
 0xa2e   : > { %v3536_v39 = vpop.f32.mrf.mxu0  ;;  %v3295_v47 = vadd.f32 %v3294_v38, %v3221_v26  ;;  %v5809_v26 = vld [vmem:[%s8634_s22 + $0x18] sm:$0xff]  ;;  %v4429_v38 = vld [vmem:[#allocation25 + $0x58] sm:$0xff] }
 0xa2f   : > { %6345 = vmatmul.mubr.msk.f32.vlgmr.msra.gmra.mxu0 %vm1478_vm1, %v3536_v39  ;;  %v6318_v40 = vpop.f32.mrf.mxu1  ;;  %v4338_v39 = vld [vmem:[#allocation25 + $0x28] sm:$0xff] }
 0xa30   : > { %6353 = vmatpush3.msra.mxu0 %v8247_v53  ;;  %v6339_v41 = vpop.f32.mrf.mxu0  ;;  %6354 = vmatprep.mubr.msk.f32.mxu0 %vm7685_vm0, %v7684_v0  ;;  %v4428_v40 = vld [vmem:[#allocation25 + $0x50] sm:$0xff] }
 0xa31   : > { %6376 = vmatprep.subr.mxu0 %v7684_v0  ;;  %v4337_v41 = vld [vmem:[#allocation25 + $0x20] sm:$0xff] }
 0xa33   : > { %6355 = vmatmul.mubr.msk.f32.vlgmr.msra.gmra.mxu0 %vm1959_vm3, %v3699_v42  ;;  %v4427_v42 = vld [vmem:[#allocation25 + $0x48] sm:$0xff] }
 0xa34   : > { %6377 = vmatpush3.msra.mxu0 %v3697_v43  ;;  %6392 = vmatprep.mubr.msk.f32.mxu0 %vm7685_vm0, %v7684_v0  ;;  %v4336_v43 = vld [vmem:[#allocation25 + $0x18] sm:$0xff] }
 0xa35   : > { %6378 = vmatprep.subr.mxu0 %v7684_v0 }
 0xa36   : > { %6379 = vmatpush3.msra.mxu0 %v3696_v44  ;;  %v4426_v44 = vld [vmem:[#allocation25 + $0x40] sm:$0xff] }
 0xa37   : > { %6380 = vmatprep.subr.mxu0 %v7684_v0 }
 0xa38   : > { %6381 = vmatpush3.msra.mxu0 %v3695_v45  ;;  %v4335_v45 = vld [vmem:[#allocation25 + $0x10] sm:$0xff] }
 0xa39   : > { %v3447_v48 = vpop.f32.mrf.mxu1  ;;  %6382 = vmatprep.subr.mxu0 %v7684_v0 }
 0xa3a   : > { %v3451_v49 = vadd.f32 %v3447_v48, %v3295_v47  ;;  %6383 = vmatpush3.msra.mxu0 %v3694_v46  ;;  %v4334_v46 = vld [vmem:[#allocation25 + $0x8] sm:$0xff]  ;;  %v4333_v47 = vld [vmem:[#allocation25] sm:$0xff]  ;;  %v4688_v48 = vld [vmem:[#allocation25 + $0xb8] sm:$0xff] }
 0xa3b   : > { %v6334_v50 = vpop.f32.mrf.mxu1  ;;  %6384 = vmatprep.subr.mxu0 %v7684_v0 }
 0xa3c   : > { %6385 = vmatpush3.msra.mxu0 %v3693_v51  ;;  %v3459_v4 = vadd.f32 %v5792_v2, %v3451_v49  ;;  %v5802_v51 = vld [vmem:[#allocation21] ss:$0 sm:$0xff]  ;;  %v5817_v2 = vld [vmem:[%s8634_s22 + $0x28] sm:$0xff] }
 0xa3d   : > { %6386 = vmatprep.subr.mxu0 %v7684_v0  ;;  %v3686_v58 = vpop.f32.mrf.mxu1 }
 0xa3e   : > { %6387 = vmatpush3.msra.mxu0 %v3692_v54  ;;  %v3460_v7 = vmax.f32 %v3459_v4, 0.0  ;;  %v4687_v4 = vld [vmem:[#allocation25 + $0xb0] sm:$0xff] }
 0xa3f   : > { %6388 = vmatprep.subr.mxu0 %v7684_v0  ;;  %v6351_v59 = vpop.f32.mrf.mxu1 }
 0xa40   : > { %6389 = vmatpush3.msra.mxu0 %v3691_v56 }
 0xa41   : > { %6390 = vmatprep.subr.mxu0 %v7684_v0 }
 0xa42   : > { %6391 = vmatpush3.msra.mxu0 %v3690_v57 }
 0xa43   : > { %6393 = vmatmul.mubr.msk.f32.vlgmr.msra.gmra.mxu0 %vm1644_vm2, %v3686_v58  ;;  %6400 = vmatprep.subr.mxu0 %v7684_v0 }
 0xa44   : > { %6416 = vmatprep.mubr.msk.f32.mxu0 %vm7685_vm0, %v7684_v0  ;;  %6401 = vmatpush3.msra.mxu0 %v4011_v60 }
 0xa45   : > { %6402 = vmatprep.subr.mxu0 %v7684_v0 }
 0xa46   : > { %6403 = vmatpush3.msra.mxu0 %v4010_v61  ;;  %v5816_v61 = vld [vmem:[%s8634_s22 + $0x20] sm:$0xff] }
 0xa47   : > { %6404 = vmatprep.subr.mxu0 %v7684_v0 }
 0xa48   : > { %6405 = vmatpush3.msra.mxu0 %v4009_v62 }
 0xa49   : > { %6406 = vmatprep.subr.mxu0 %v7684_v0 }
 0xa4a   : > { %6407 = vmatpush3.msra.mxu0 %v4008_v63 }
 0xa4b   : > { %6408 = vmatprep.subr.mxu0 %v7684_v0 }
 0xa4c   : > { %6409 = vmatpush3.msra.mxu0 %v4007_v1 }
 0xa4d   : > { %6410 = vmatprep.subr.mxu0 %v7684_v0 }
 0xaef   : > { %v3611_v3 = vpop.f32.mrf.mxu0 }
 0xaf0   : > { %v8443_v10 = vadd.f32 %v3611_v3, %v3460_v7  ;;  %v4783_v3 = vld [vmem:[#allocation28] sm:$0xff] }
 0xaf1   : > { %v6346_v5 = vpop.f32.mrf.mxu0  ;;  %v4686_v7 = vld [vmem:[#allocation25 + $0xa8] sm:$0xff] }
 0xaf2   : > { %v4873_v5 = vld [vmem:[#allocation30 + $0x38] sm:$0xff] }
 0xaf3   : > { %v3769_v6 = vpop.f32.mrf.mxu0 }
 0xaf4   : > { %6374 = vmatmul.mubr.msk.f32.vlgmr.msra.gmra.mxu1 %vm1644_vm2, %v3769_v6  ;;  %v4784_v6 = vld [vmem:[#allocation28 + $0x8] sm:$0xff] }
 0xaf5   : > { %6396 = vmatpush3.msra.mxu1 %v8247_v53  ;;  %v6356_v8 = vpop.f32.mrf.mxu0  ;;  %6397 = vmatprep.mubr.msk.f32.mxu1 %vm7685_vm0, %v7684_v0  ;;  %v4006_v53 = vld [vmem:[#allocation19 + $0x90] sm:$0xff] }
 0xaf6   : > { %6419 = vmatprep.subr.mxu1 %v7684_v0  ;;  %6411 = vmatpush3.msra.mxu0 %v4006_v53  ;;  %v4685_v8 = vld [vmem:[#allocation25 + $0xa0] sm:$0xff] }
 0xaf7   : > { %6412 = vmatprep.subr.mxu0 %v7684_v0  ;;  %v4871_v53 = vld [vmem:[#allocation30 + $0x28] sm:$0xff] }
 0xaf8   : > { %6398 = vmatmul.mubr.msk.f32.vlgmr.msra.gmra.mxu1 %vm1959_vm3, %v3929_v9  ;;  %6413 = vmatpush3.msra.mxu0 %v4005_v12  ;;  %v4872_v9 = vld [vmem:[#allocation30 + $0x30] sm:$0xff]  ;;  %v4683_v12 = vld [vmem:[#allocation25 + $0x90] sm:$0xff] }
 0xaf9   : > { %6420 = vmatpush3.msk.msra.mxu1 %vm2443_vm4, %v8443_v10  ;;  %6421 = vmatprep.mubr.msk.f32.mxu1 %vm7685_vm0, %v7684_v0 }
 0xafa   : > { %6424 = vmatprep.subr.mxu1 %v7684_v0  ;;  %6414 = vmatprep.subr.mxu0 %v7684_v0 }
 0xafb   : > { %6415 = vmatpush3.msra.mxu0 %v4004_v15  ;;  %v4869_v15 = vld [vmem:[#allocation30 + $0x18] sm:$0xff] }
 0xafc   : > { %6422 = vmatmul.mubr.msk.f32.vlgmr.msra.gmra.mxu1 %vm2439_vm5, %v4095_v11  ;;  %6442 = vmatprep.subr.mxu0 %v8461_v18  ;;  %v4684_v11 = vld [vmem:[#allocation25 + $0x98] sm:$0xff] }
 0xafd   : > { %6432 = vmatprep.mubr.msk.f32.mxu1 %vm7685_vm0, %v7684_v0  ;;  %6425 = vmatpush3.msra.mxu1 %v4175_v13  ;;  %v4870_v13 = vld [vmem:[#allocation30 + $0x20] sm:$0xff] }
 0xafe   : > { %6426 = vmatprep.subr.mxu1 %v7684_v0 }
 0xaff   : > { %6427 = vmatpush3.msra.mxu1 %v4174_v16  ;;  %v4681_v16 = vld [vmem:[#allocation25 + $0x80] sm:$0xff] }
 0xb00   : > { %6428 = vmatprep.subr.mxu1 %v7684_v0 }
 0xb01   : > { %6429 = vmatpush3.msra.mxu1 %v4173_v19  ;;  %v4866_v19 = vld [vmem:[#allocation30] sm:$0xff] }
 0xb02   : > { %6430 = vmatprep.subr.mxu1 %v7684_v0 }
 0xb03   : > { %v8455_v14 = vpop.f32.mrf.mxu0  ;;  %6431 = vmatpush3.msra.mxu1 %v4172_v20 }
 0xb04   : > { %6435 = vmatprep.subr.mxu1 %v8461_v18 }
 0xb05   : > { %v6394_v17 = vpop.f32.mrf.mxu0 }
 0xb06   : > { %v4868_v17 = vld [vmem:[#allocation30 + $0x10] sm:$0xff] }
 0xbb4   : > { %v8466_v21 = vpop.f32.mrf.mxu1 }
 0xbb5   : > { %v3925_v49 = vadd.f32 %v8455_v14, %v8466_v21  ;;  %v4682_v14 = vld [vmem:[#allocation25 + $0x88] sm:$0xff] }
 0xbb6   : > { %v6375_v22 = vpop.f32.mrf.mxu1 }
 0xbb8   : > { %v3999_v24 = vpop.f32.mrf.mxu1 }
 0xbb9   : > { %6417 = vmatmul.mubr.msk.f32.vlgmr.msra.gmra.mxu0 %vm1644_vm2, %v3999_v24  ;;  %v4962_v24 = vld [vmem:[#allocation31 + $0x18] sm:$0xff] }
 0xbba   : > { %v6399_v25 = vpop.f32.mrf.mxu1  ;;  %6443 = vmatpush3.msra.mxu0 %v8461_v18  ;;  %6446 = vmatprep.mubr.msk.f32.mxu0 %vm1478_vm1, %v5808_v23 }
 0xbbb   : > { %6444 = vmatprep.subr.mxu0 %v8474_v27 }
 0xbbc   : > { %v4168_v29 = vpop.f32.mrf.mxu1  ;;  %6445 = vmatpush3.msra.mxu0 %v8474_v27 }
 0xbbd   : > { %6433 = vmatmul.mubr.msk.f32.vlgmr.msra.gmra.mxu1 %vm2601_vm6, %v4168_v29  ;;  %6447 = vmatmul.mubr.msk.f32.vlgmr.msra.gmra.mxu0 %vm1478_vm1, %v5809_v26  ;;  %v4961_v26 = vld [vmem:[#allocation31 + $0x10] sm:$0xff]  ;;  %v5052_v29 = vld [vmem:[#allocation34 + $0x38] sm:$0xff] }
 0xbbe   : > { %6436 = vmatpush3.msra.mxu1 %v8461_v18  ;;  %6439 = vmatprep.mubr.msk.f32.mxu1 %vm1478_vm1, %v4250_v28  ;;  %v6423_v32 = vpop.f32.mrf.mxu1  ;;  %v4960_v28 = vld [vmem:[#allocation31 + $0x8] sm:$0xff] }
 0xbbf   : > { %6437 = vmatprep.subr.mxu1 %v8474_v27  ;;  %6468 = vmatprep.subr.mxu0 %v4340_v30  ;;  %v5050_v32 = vld [vmem:[#allocation34 + $0x28] sm:$0xff] }
 0xbc0   : > { %6438 = vmatpush3.msra.mxu1 %v8474_v27  ;;  %6469 = vmatpush3.msra.mxu0 %v4340_v30  ;;  %v4959_v30 = vld [vmem:[#allocation31] sm:$0xff] }
 0xbc1   : > { %6440 = vmatmul.mubr.msk.f32.vlgmr.msra.gmra.mxu1 %vm1478_vm1, %v4251_v31  ;;  %6449 = vmatprep.subr.mxu1 %v4433_v33  ;;  %v5051_v31 = vld [vmem:[#allocation34 + $0x30] sm:$0xff] }
 0xbc2   : > { %6450 = vmatpush3.msra.mxu1 %v4433_v33  ;;  %6470 = vmatprep.subr.mxu0 %v4339_v34  ;;  %v5150_v33 = vld [vmem:[#allocation37 + $0x78] sm:$0xff] }
 0xbc3   : > { %6451 = vmatprep.subr.mxu1 %v4432_v35  ;;  %6471 = vmatpush3.msra.mxu0 %v4339_v34  ;;  %v5049_v34 = vld [vmem:[#allocation34 + $0x20] sm:$0xff] }
 0xbc4   : > { %6452 = vmatpush3.msra.mxu1 %v4432_v35  ;;  %6472 = vmatprep.subr.mxu0 %v4338_v39  ;;  %v5149_v35 = vld [vmem:[#allocation37 + $0x70] sm:$0xff] }
 0xbc5   : > { %6453 = vmatprep.subr.mxu1 %v4431_v36  ;;  %6473 = vmatpush3.msra.mxu0 %v4338_v39  ;;  %v5046_v39 = vld [vmem:[#allocation34 + $0x8] sm:$0xff] }
 0xbc6   : > { %6454 = vmatpush3.msra.mxu1 %v4431_v36  ;;  %6474 = vmatprep.subr.mxu0 %v4337_v41  ;;  %v5048_v36 = vld [vmem:[#allocation34 + $0x18] sm:$0xff] }
 0xbc7   : > { %6455 = vmatprep.subr.mxu1 %v4430_v37  ;;  %6475 = vmatpush3.msra.mxu0 %v4337_v41  ;;  %v5045_v41 = vld [vmem:[#allocation34] sm:$0xff] }
 0xbc8   : > { %6456 = vmatpush3.msra.mxu1 %v4430_v37  ;;  %6476 = vmatprep.subr.mxu0 %v4336_v43  ;;  %v5148_v37 = vld [vmem:[#allocation37 + $0x68] sm:$0xff] }
 0xbc9   : > { %6457 = vmatprep.subr.mxu1 %v4429_v38  ;;  %6477 = vmatpush3.msra.mxu0 %v4336_v43  ;;  %v5144_v43 = vld [vmem:[#allocation37 + $0x48] sm:$0xff] }
 0xbca   : > { %6458 = vmatpush3.msra.mxu1 %v4429_v38  ;;  %6478 = vmatprep.subr.mxu0 %v4335_v45  ;;  %v5047_v38 = vld [vmem:[#allocation34 + $0x10] sm:$0xff] }
 0xbcb   : > { %6459 = vmatprep.subr.mxu1 %v4428_v40  ;;  %6479 = vmatpush3.msra.mxu0 %v4335_v45  ;;  %v5142_v45 = vld [vmem:[#allocation37 + $0x38] sm:$0xff] }
 0xbcc   : > { %6460 = vmatpush3.msra.mxu1 %v4428_v40  ;;  %6480 = vmatprep.subr.mxu0 %v4334_v46  ;;  %v5146_v40 = vld [vmem:[#allocation37 + $0x58] sm:$0xff] }
 0xbcd   : > { %6461 = vmatprep.subr.mxu1 %v4427_v42  ;;  %6481 = vmatpush3.msra.mxu0 %v4334_v46  ;;  %v5141_v46 = vld [vmem:[#allocation37 + $0x30] sm:$0xff] }
 0xbce   : > { %6462 = vmatpush3.msra.mxu1 %v4427_v42  ;;  %6482 = vmatprep.subr.mxu0 %v4333_v47  ;;  %v5145_v42 = vld [vmem:[#allocation37 + $0x50] sm:$0xff] }
 0xbcf   : > { %6463 = vmatprep.subr.mxu1 %v4426_v44  ;;  %6483 = vmatpush3.msra.mxu0 %v4333_v47  ;;  %v5139_v47 = vld [vmem:[#allocation37 + $0x20] sm:$0xff] }
 0xbd0   : > { %6464 = vmatpush3.msra.mxu1 %v4426_v44  ;;  %6494 = vmatprep.subr.mxu0 %v4688_v48  ;;  %v5143_v44 = vld [vmem:[#allocation37 + $0x40] sm:$0xff] }
 0xbd1   : > { %6487 = vmatprep.subr.mxu1 %v8461_v18 }
 0xc79   : > { %v4081_v50 = vpop.f32.mrf.mxu0 }
 0xc7a   : > { %v4085_v52 = vadd.f32 %v4081_v50, %v3925_v49  ;;  %v5137_v49 = vld [vmem:[#allocation37 + $0x10] sm:$0xff]  ;;  %v5136_v50 = vld [vmem:[#allocation37 + $0x8] sm:$0xff] }
 0xc7b   : > { %v6418_v54 = vpop.f32.mrf.mxu0 }
 0xc7c   : > { %v4093_v55 = vadd.f32 %v5802_v51, %v4085_v52  ;;  %v5135_v51 = vld [vmem:[#allocation37] sm:$0xff] }
 0xc7d   : > { %v4245_v56 = vpop.f32.mrf.mxu1  ;;  %v6448_v57 = vpop.f32.mrf.mxu0 }
 0xc7e   : > { %v4094_v58 = vmax.f32 %v4093_v55, 0.0 }
 0xc7f   : > { %v6434_v59 = vpop.f32.mrf.mxu1  ;;  %v4416_v60 = vpop.f32.mrf.mxu0 }
 0xc80   : > { %6465 = vmatprep.mubr.msk.f32.mxu1 %vm1644_vm2, %v4416_v60  ;;  %v8495_v63 = vadd.f32 %v4245_v56, %v4094_v58 }
 0xc81   : > { %v6441_v62 = vpop.f32.mrf.mxu1  ;;  %6466 = vmatmul.mubr.msk.f32.vlgmr.msra.gmra.mxu1 %vm1644_vm2, %v6448_v57  ;;  %v5822_v57 = vld [vmem:[#allocation27] ss:$0 sm:$0xff] }
 0xc82   : > { %6488 = vmatpush3.msra.mxu1 %v8461_v18  ;;  %6491 = vmatprep.mubr.msk.f32.mxu1 %vm1478_vm1, %v5816_v61  ;;  %v4867_v18 = vld [vmem:[#allocation30 + $0x8] sm:$0xff] }
 0xc83   : > { %6489 = vmatprep.subr.mxu1 %v8474_v27  ;;  %v4324_v1 = vpop.f32.mrf.mxu1 }
 0xc84   : > { %6490 = vmatpush3.msra.mxu1 %v8474_v27  ;;  %6484 = vmatprep.mubr.msk.f32.mxu0 %vm1644_vm2, %v4324_v1 }
 0xc85   : > { %6513 = vmatprep.subr.mxu1 %v8495_v63  ;;  %6485 = vmatmul.mubr.msk.f32.vlgmr.msra.gmra.mxu0 %vm1644_vm2, %v6441_v62 }
 0xc86   : > { %6492 = vmatmul.mubr.msk.f32.vlgmr.msra.gmra.mxu1 %vm1478_vm1, %v5817_v2  ;;  %6495 = vmatpush3.msra.mxu0 %v4688_v48  ;;  %v5138_v48 = vld [vmem:[#allocation37 + $0x18] sm:$0xff] }
 0xc87   : > { %6514 = vmatpush3.msra.mxu1 %v8495_v63  ;;  %6515 = vmatprep.mubr.msk.f32.mxu1 %vm1959_vm3, %v4783_v3  ;;  %v5827_v3 = vld [vmem:[#allocation33] ss:$0 sm:$0xff] }
 0xc88   : > { %6496 = vmatprep.subr.mxu0 %v4687_v4  ;;  %6518 = vmatprep.subr.mxu1 %v4873_v5 }
 0xc89   : > { %6497 = vmatpush3.msra.mxu0 %v4687_v4 }
 0xc8a   : > { %6516 = vmatmul.mubr.msk.f32.vlgmr.msra.gmra.mxu1 %vm1959_vm3, %v4784_v6  ;;  %6498 = vmatprep.subr.mxu0 %v4686_v7 }
 0xc8b   : > { %6499 = vmatpush3.msra.mxu0 %v4686_v7  ;;  %6519 = vmatpush3.msra.mxu1 %v4873_v5 }
 0xc8c   : > { %6500 = vmatprep.subr.mxu0 %v4685_v8  ;;  %6520 = vmatprep.subr.mxu1 %v4872_v9 }
 0xc8d   : > { %6501 = vmatpush3.msra.mxu0 %v4685_v8  ;;  %6521 = vmatpush3.msra.mxu1 %v4872_v9 }
 0xc8e   : > { %6502 = vmatprep.subr.mxu0 %v4684_v11  ;;  %6522 = vmatprep.subr.mxu1 %v4871_v53 }
 0xc8f   : > { %6503 = vmatpush3.msra.mxu0 %v4684_v11  ;;  %6523 = vmatpush3.msra.mxu1 %v4871_v53 }
 0xc90   : > { %6504 = vmatprep.subr.mxu0 %v4683_v12  ;;  %6524 = vmatprep.subr.mxu1 %v4870_v13 }
 0xc91   : > { %6505 = vmatpush3.msra.mxu0 %v4683_v12  ;;  %6525 = vmatpush3.msra.mxu1 %v4870_v13  ;;  %v5829_v12 = vld [vmem:[#allocation36] ss:$0 sm:$0xff] }
 0xc92   : > { %6506 = vmatprep.subr.mxu0 %v4682_v14  ;;  %6526 = vmatprep.subr.mxu1 %v4869_v15 }
 0xc93   : > { %6507 = vmatpush3.msra.mxu0 %v4682_v14  ;;  %6527 = vmatpush3.msra.mxu1 %v4869_v15 }
 0xc94   : > { %6508 = vmatprep.subr.mxu0 %v4681_v16  ;;  %6528 = vmatprep.subr.mxu1 %v4868_v17 }
 0xc95   : > { %6509 = vmatpush3.msra.mxu0 %v4681_v16  ;;  %6529 = vmatpush3.msra.mxu1 %v4868_v17  ;;  %v5831_v17 = vld [vmem:[#allocation39] ss:$0 sm:$0xff] }
 0xc96   : > { %6537 = vmatprep.subr.mxu0 %v7684_v0  ;;  %6530 = vmatprep.subr.mxu1 %v4867_v18 }
 0xc97   : > { %6531 = vmatpush3.msra.mxu1 %v4867_v18 }
 0xc98   : > { %6532 = vmatprep.subr.mxu1 %v4866_v19 }
 0xc99   : > { %6533 = vmatpush3.msra.mxu1 %v4866_v19 }
 0xc9a   : > { %6548 = vmatprep.subr.mxu1 %v7684_v0 }
 0xd41   : > { %v8509_v20 = vpop.f32.mrf.mxu1 }
 0xd43   : > { %v8511_v21 = vpop.f32.mrf.mxu1 }
 0xd45   : > { %v6486_v52 = vpop.f32.mrf.mxu0 }
 0xd46   : > { %v6493_v22 = vpop.f32.mrf.mxu1  ;;  %v4593_v55 = vadd.f32 %v6486_v52, %v8509_v20 }
 0xd47   : > { %v4587_v54 = vpop.f32.mrf.mxu0 }
 0xd48   : > { %v4671_v23 = vpop.f32.mrf.mxu1  ;;  %v4588_v58 = vadd.f32 %v4587_v54, %v8511_v21 }
 0xd49   : > { %6510 = vmatprep.mubr.msk.f32.mxu0 %vm1644_vm2, %v4671_v23 }
 0xd4a   : > { %6511 = vmatmul.mubr.msk.f32.vlgmr.msra.gmra.mxu0 %vm1644_vm2, %v6493_v22  ;;  %v6517_v25 = vpop.f32.mrf.mxu1 }
 0xd4b   : > { %6538 = vmatpush3.msra.mxu0 %v4962_v24  ;;  %6545 = vmatprep.mubr.msk.f32.mxu0 %vm7685_vm0, %v7684_v0 }
 0xd4c   : > { %6539 = vmatprep.subr.mxu0 %v7684_v0  ;;  %v4857_v27 = vpop.f32.mrf.mxu1 }
 0xd4d   : > { %6540 = vmatpush3.msra.mxu0 %v4961_v26  ;;  %6534 = vmatprep.mubr.msk.f32.mxu1 %vm1644_vm2, %v4857_v27 }
 0xd4e   : > { %6541 = vmatprep.subr.mxu0 %v7684_v0  ;;  %6535 = vmatmul.mubr.msk.f32.vlgmr.msra.gmra.mxu1 %vm1644_vm2, %v6517_v25 }
 0xd4f   : > { %6542 = vmatpush3.msra.mxu0 %v4960_v28  ;;  %6549 = vmatpush3.msra.mxu1 %v5052_v29 }
 0xd50   : > { %6543 = vmatprep.subr.mxu0 %v7684_v0  ;;  %6550 = vmatprep.subr.mxu1 %v7684_v0 }
 0xd51   : > { %6544 = vmatpush3.msra.mxu0 %v4959_v30  ;;  %6551 = vmatpush3.msra.mxu1 %v5051_v31 }
 0xd52   : > { %6546 = vmatmul.mubr.msk.f32.vlgmr.msra.gmra.mxu0 %vm2601_vm6, %v8443_v10  ;;  %6552 = vmatprep.subr.mxu1 %v7684_v0  ;;  %v5147_v10 = vld [vmem:[#allocation37 + $0x60] sm:$0xff] }
 0xd53   : > { %6553 = vmatpush3.msra.mxu1 %v5050_v32  ;;  %6564 = vmatprep.mubr.msk.f32.mxu1 %vm7685_vm0, %v7684_v0 }
 0xd54   : > { %6554 = vmatprep.subr.mxu1 %v7684_v0  ;;  %6567 = vmatprep.subr.mxu0 %v5150_v33 }
 0xd55   : > { %6555 = vmatpush3.msra.mxu1 %v5049_v34  ;;  %6568 = vmatpush3.msra.mxu0 %v5150_v33 }
 0xd56   : > { %6556 = vmatprep.subr.mxu1 %v7684_v0  ;;  %6569 = vmatprep.subr.mxu0 %v5149_v35 }
 0xd57   : > { %6557 = vmatpush3.msra.mxu1 %v5048_v36  ;;  %6570 = vmatpush3.msra.mxu0 %v5149_v35 }
 0xd58   : > { %6558 = vmatprep.subr.mxu1 %v7684_v0  ;;  %6571 = vmatprep.subr.mxu0 %v5148_v37 }
 0xd59   : > { %6559 = vmatpush3.msra.mxu1 %v5047_v38  ;;  %6572 = vmatpush3.msra.mxu0 %v5148_v37 }
 0xd5a   : > { %6560 = vmatprep.subr.mxu1 %v7684_v0  ;;  %6573 = vmatprep.subr.mxu0 %v5147_v10 }
 0xd5b   : > { %6561 = vmatpush3.msra.mxu1 %v5046_v39  ;;  %6574 = vmatpush3.msra.mxu0 %v5147_v10 }
 0xd5c   : > { %6562 = vmatprep.subr.mxu1 %v7684_v0  ;;  %6575 = vmatprep.subr.mxu0 %v5146_v40  ;;  %v5140_v0 = vld [vmem:[#allocation37 + $0x28] sm:$0xff] }
 0xd5d   : > { %6563 = vmatpush3.msra.mxu1 %v5045_v41  ;;  %6576 = vmatpush3.msra.mxu0 %v5146_v40 }
 0xd5e   : > { %6565 = vmatmul.mubr.msk.f32.vlgmr.msra.gmra.mxu1 %vm1644_vm2, %v8495_v63  ;;  %6577 = vmatprep.subr.mxu0 %v5145_v42 }
 0xd5f   : > { %6578 = vmatpush3.msra.mxu0 %v5145_v42 }
 0xd60   : > { %6579 = vmatprep.subr.mxu0 %v5144_v43 }
 0xd61   : > { %6580 = vmatpush3.msra.mxu0 %v5144_v43 }
 0xd62   : > { %6581 = vmatprep.subr.mxu0 %v5143_v44 }
 0xd63   : > { %6582 = vmatpush3.msra.mxu0 %v5143_v44 }
 0xd64   : > { %6583 = vmatprep.subr.mxu0 %v5142_v45 }
 0xd65   : > { %6584 = vmatpush3.msra.mxu0 %v5142_v45 }
 0xd66   : > { %6585 = vmatprep.subr.mxu0 %v5141_v46 }
 0xd67   : > { %6586 = vmatpush3.msra.mxu0 %v5141_v46 }
 0xd68   : > { %6587 = vmatprep.subr.mxu0 %v5140_v0 }
 0xd69   : > { %6588 = vmatpush3.msra.mxu0 %v5140_v0 }
 0xd6a   : > { %6589 = vmatprep.subr.mxu0 %v5139_v47 }
 0xd6b   : > { %6590 = vmatpush3.msra.mxu0 %v5139_v47 }
 0xd6c   : > { %6591 = vmatprep.subr.mxu0 %v5138_v48 }
 0xd6d   : > { %6592 = vmatpush3.msra.mxu0 %v5138_v48 }
 0xd6e   : > { %6593 = vmatprep.subr.mxu0 %v5137_v49 }
 0xd6f   : > { %6594 = vmatpush3.msra.mxu0 %v5137_v49 }
 0xd70   : > { %6595 = vmatprep.subr.mxu0 %v5136_v50 }
 0xd71   : > { %6596 = vmatpush3.msra.mxu0 %v5136_v50 }
 0xd72   : > { %6597 = vmatprep.subr.mxu0 %v5135_v51 }
 0xd73   : > { %6598 = vmatpush3.msra.mxu0 %v5135_v51 }
 0xe0a   : > { %v6512_v56 = vpop.f32.mrf.mxu0 }
 0xe0b   : > { %v4771_v59 = vadd.f32 %v6512_v56, %v4593_v55 }
 0xe0c   : > { %v4761_v60 = vpop.f32.mrf.mxu0 }
 0xe0d   : > { %v4780_v61 = vadd.f32 %v5822_v57, %v4771_v59  ;;  %v4770_v62 = vadd.f32 %v4761_v60, %v4588_v58 }
 0xe0e   : > { %v6536_v63 = vpop.f32.mrf.mxu1 }
 0xe0f   : > { %v4779_v1 = vadd.f32 %v5822_v57, %v4770_v62  ;;  %v4782_v2 = vmax.f32 %v4780_v61, 0.0 }
 0xe10   : > { %v4946_v5 = vpop.f32.mrf.mxu1 }
 0xe11   : > { %v4781_v4 = vmax.f32 %v4779_v1, 0.0  ;;  %v4956_v9 = vadd.f32 %v6536_v63, %v4782_v2 }
 0xe12   : > { %v5038_v6 = vpop.f32.mrf.mxu0 }
 0xe13   : > { %v4955_v7 = vadd.f32 %v4946_v5, %v4781_v4  ;;  %v5039_v8 = vadd.f32 %v5827_v3, %v5038_v6 }
 0xe14   : > { %v6547_v11 = vpop.f32.mrf.mxu0 }
 0xe15   : > { %v5042_v53 = vmax.f32 %v5039_v8, 0.0  ;;  %6599 = vmatprep.mubr.f32.mxu0 %v4955_v7 }
 0xe16   : > { %6600 = vmatmul.mubr.f32.vlgmr.msra.gmra.mxu0 %v4956_v9 }
 0xe17   : > { %5044 = vst.msk [vmem:[%s1465_s23] sm:$0xf] %vm5043_vm10, %v5042_v53 }
 0xe1e   : > { %v5129_v13 = vpop.f32.mrf.mxu1 }
 0xe1f   : > { %v5130_v14 = vadd.f32 %v5829_v12, %v5129_v13 }
 0xe20   : > { %v6566_v15 = vpop.f32.mrf.mxu1 }
 0xe21   : > { %v5133_v16 = vmax.f32 %v5130_v14, 0.0 }
 0xe23   : > { %5134 = vst.msk [vmem:[%s1469_s3] sm:$0xff] %vm1644_vm2, %v5133_v16 }
 0xed6   : > { %v6601_v18 = vpop.f32.mrf.mxu0 }
 0xed7   : > { %v5230_v19 = vadd.f32 %v6601_v18, %v5831_v17 }
 0xed8   : > { %v5224_v20 = vpop.f32.mrf.mxu0 }
 0xed9   : > { %v5234_v21 = vmax.f32 %v5230_v19, 0.0  ;;  %v5225_v22 = vadd.f32 %v5831_v17, %v5224_v20 }
 0xedb   : > { %5236 = vst [vmem:[%s1474_s11 + $0x8] sm:$0xff] %v5234_v21  ;;  %v5233_v23 = vmax.f32 %v5225_v22, 0.0 }
 0xedd   : > { %5235 = vst [vmem:[%s1474_s11] sm:$0xff] %v5233_v23 }
 0xede PF: > { %s97_s28 = sadd.s32 1, %s7615_s28  }
 0xedf   : > { %p94_p12 = scmp.ge.s32.totalorder %s97_s28, 4  }
 0xee1   :  { %96 = sbr.rel (!%p94_p12) target bundleno = 75 (0x4b), region = 379 }
 0xee6   :  { %5300 = vsyncpa [#allocation3], 1 }
 0xee7   :  { %5302 = vsyncpa [#allocation3 + $0x1], 1 }
 0xee8   :  { %5303 = vsyncpa [#allocation5], 1 }
 0xee9   :  { %5304 = vsyncpa [#allocation8], 1 }
 0xeea   :  { %5305 = vsyncpa [#allocation11], 1 }
 0xeeb   :  { %5306 = vsyncpa [#allocation14], 1 }
 0xeec   :  { %5307 = vsyncpa [#allocation17], 1 }
 0xeed   :  { %5308 = vsyncpa [#allocation20], 1 }
 0xeee   :  { %5309 = vsyncpa [#allocation23], 1 }
 0xeef   :  { %5310 = vsyncpa [#allocation26], 1 }
 0xef0   :  { %5311 = vsyncpa [#allocation29], 1 }
 0xef1   :  { %5312 = vsyncpa [#allocation32], 1 }
 0xef2   :  { %5313 = vsyncpa [#allocation35], 1 }
 0xef3   :  { %5314 = vsyncpa [#allocation38], 1 }

</bundles_post_ra>
